<compile_context>
chip_gen: v7x
topology: tpu7x:2x2x1
jax: 0.10.0
libtpu: 0.0.40
codegen_flags: <defaults>
</compile_context>

<pallas_src>
import numpy as np
import jax
import jax.numpy as jnp
from jax.experimental import pallas as pl
from jax.experimental.pallas import tpu as pltpu

L = 0.2
LMBDA = 5e-7
Z = 100.0


# ----------------------------------------------------------------------------
# Kernel helpers
# ----------------------------------------------------------------------------
def _triplet(r, i, dtype):
    """(real, imag, real+imag) cast to the MXU compute dtype (sum in src dtype)."""
    return r.astype(dtype), i.astype(dtype), (r + i).astype(dtype)


def _cgauss(ar, ai, as_, br, bi, bs):
    """Complex matmul (ar + j*ai) @ (br + j*bi), Gauss/Karatsuba 3-mult form.

    All operands already in the MXU dtype (bf16); accumulation in f32.
    """
    dot = lambda x, y: jnp.dot(x, y, preferred_element_type=jnp.float32)
    t1 = dot(ar, br)
    t2 = dot(ai, bi)
    t3 = dot(as_, bs)
    return t1 - t2, t3 - t1 - t2


def _fwd_kernel(x_ref, fl_ref, fr_ref, h_ref, u2_ref):
    """U2[row block] = H[row block] .* ((FL[row block] @ x) @ FR)."""
    cdt = fl_ref.dtype
    xr, xi, xs = _triplet(x_ref[0, 0], x_ref[0, 1], cdt)          # (Mp, Mp)
    flr, fli, fls = _triplet(fl_ref[0], fl_ref[1], cdt)            # (tm, Mp)

    ar, ai = _cgauss(flr, fli, fls, xr, xi, xs)                    # FL_blk @ x

    frr, fri, frs = _triplet(fr_ref[0], fr_ref[1], cdt)            # (Mp, Mp)
    arb, aib, asb = _triplet(ar, ai, cdt)
    u1r, u1i = _cgauss(arb, aib, asb, frr, fri, frs)               # (.) @ FR

    hr = h_ref[0].astype(jnp.float32)                              # (tm, Mp)
    hi = h_ref[1].astype(jnp.float32)
    u2_ref[0, 0] = (hr * u1r - hi * u1i).astype(u2_ref.dtype)      # VPU
    u2_ref[0, 1] = (hr * u1i + hi * u1r).astype(u2_ref.dtype)


def _inv_kernel(u2_ref, gl_ref, gr_ref, o_ref):
    """out[row block] = (GL[row block] @ U2) @ GR."""
    cdt = gl_ref.dtype
    ur, ui, us = _triplet(u2_ref[0, 0], u2_ref[0, 1], cdt)         # (Mp, Mp)
    glr, gli, gls = _triplet(gl_ref[0], gl_ref[1], cdt)            # (tm, Mp)

    wr, wi = _cgauss(glr, gli, gls, ur, ui, us)                    # GL_blk @ U2

    grr, gri, grs = _triplet(gr_ref[0], gr_ref[1], cdt)            # (Mp, Mp)
    wrb, wib, wsb = _triplet(wr, wi, cdt)
    or_, oi_ = _cgauss(wrb, wib, wsb, grr, gri, grs)               # (.) @ GR

    o_ref[0, 0] = or_.astype(o_ref.dtype)
    o_ref[0, 1] = oi_.astype(o_ref.dtype)


# ----------------------------------------------------------------------------
# Host-side constant construction (float64 numpy, then cast)
# ----------------------------------------------------------------------------
def _transfer_function(M, L_, lmbda, z):
    """fftshift-ed Fresnel transfer function H (complex128 numpy)."""
    dx = L_ / M
    k = 2.0 * np.pi / lmbda
    fx = np.linspace(-1.0 / (2 * dx), 1.0 / (2 * dx) - 1.0 / L_, M)
    FX, FY = np.meshgrid(fx, fx, indexing="ij")   # torch.meshgrid default 'ij'
    H = np.exp(-1j * np.pi * lmbda * z * (FX ** 2 + FY ** 2)) * np.exp(1j * k * z)
    return np.fft.fftshift(H)                     # over both axes


def _build_constants(M, Mp, L_, lmbda, z, dtype):
    """Constant planes (2, Mp, Mp) each: FL, FR, GL, GR, H (shifts folded in)."""
    n = np.arange(M)
    F = np.exp(-2j * np.pi * np.outer(n, n) / M)  # DFT matrix (symmetric)
    G = np.conj(F) / M                            # inverse-DFT matrix

    perm_f = np.fft.fftshift(np.arange(M))        # fftshift(v)  = v[perm_f]
    inv_f = np.argsort(perm_f)
    perm_i = np.fft.ifftshift(np.arange(M))       # ifftshift(v) = v[perm_i]

    FL = F[:, inv_f]     # F @ P      (input fftshift, row side)
    FR = F[inv_f, :]     # P^T @ F    (input fftshift, column side)
    GL = G[perm_i, :]    # Q @ G      (output ifftshift, row side)
    GR = G[:, perm_i]    # G @ Q^T    (output ifftshift, column side)
    H = _transfer_function(M, L_, lmbda, z)

    def pack(Zc):
        out = np.zeros((2, Mp, Mp), np.float32)
        out[0, :M, :M] = Zc.real
        out[1, :M, :M] = Zc.imag
        return jnp.asarray(out, dtype=dtype)

    return pack(FL), pack(FR), pack(GL), pack(GR), pack(H)


# ----------------------------------------------------------------------------
# Wrapper
# ----------------------------------------------------------------------------
def _vmem_limit_bytes():
    """Scoped-VMEM budget capped to the current generation's physical VMEM."""
    cap = 64 * 2 ** 20            # conservative fallback (v7x per-TC size)
    try:
        cap = int(pltpu.get_tpu_info().vmem_capacity_bytes)
    except Exception:
        pass
    return int(0.85 * cap)


def _pick_row_tile(Mp):
    """Row-tile: 256-multiples where Mp already is one (v6e/v7x 2x256x256 MXU),
    otherwise 128 (native on v5e); never inflate Mp for this."""
    return 256 if Mp % 256 == 0 else 128


def propagation_layer_pallas(u1, L_=L, lmbda=LMBDA, z=Z,
                             compute_dtype=jnp.bfloat16):
    """u1: complex64 array of shape (B, M, M). Returns complex64 (B, M, M)."""
    B, M, N = u1.shape
    assert M == N, "square field expected"

    # Lane-dense padding to a multiple of 128. Zero-padding the field and the
    # constant matrices is exact for this pipeline; padded region is sliced off.
    Mp = max(128, ((M + 127) // 128) * 128)
    tm = min(_pick_row_tile(Mp), Mp)
    R = Mp // tm
    # TODO(synk): for M << 128 (and small Mp with large B) fold several batch
    # elements per grid step to amortize per-step overhead / raise MXU occupancy.
    # TODO(synk): for Mp >= ~2048 the full-width right-hand DFT factors and the
    # resident field plane exceed VMEM; add a column (K) tiling axis as well.

    FL, FR, GL, GR, H = _build_constants(M, Mp, L_, lmbda, z, compute_dtype)

    # Pack real/imag into one (B, 2, Mp, Mp) bf16 slab: one DMA per grid step.
    x = jnp.stack([jnp.real(u1), jnp.imag(u1)], axis=1).astype(jnp.float32)
    if Mp != M:
        x = jnp.pad(x, ((0, 0), (0, 0), (0, Mp - M), (0, Mp - M)))
    x = x.astype(compute_dtype)

    cparams = pltpu.CompilerParams(
        dimension_semantics=("parallel", "parallel"),
        vmem_limit_bytes=_vmem_limit_bytes())

    field_full = pl.BlockSpec((1, 2, Mp, Mp), lambda b, r: (b, 0, 0, 0))
    field_rows = pl.BlockSpec((1, 2, tm, Mp), lambda b, r: (b, 0, r, 0))
    const_rows = pl.BlockSpec((2, tm, Mp), lambda b, r: (0, r, 0))

    def const_full(single_buffer):
        # Grid-invariant index -> double buffering buys nothing; single-buffer
        # to halve the resident VMEM of the full-width DFT factor.
        if single_buffer:
            return pl.BlockSpec((2, Mp, Mp), lambda b, r: (0, 0, 0),
                                pipeline_mode=pl.Buffered(1))
        return pl.BlockSpec((2, Mp, Mp), lambda b, r: (0, 0, 0))

    def run(single_buffer):
        u2 = pl.pallas_call(
            _fwd_kernel,
            out_shape=jax.ShapeDtypeStruct((B, 2, Mp, Mp), compute_dtype),
            grid=(B, R),
            in_specs=[field_full, const_rows, const_full(single_buffer),
                      const_rows],
            out_specs=field_rows,
            compiler_params=cparams,
        )(x, FL, FR, H)
        out = pl.pallas_call(
            _inv_kernel,
            out_shape=jax.ShapeDtypeStruct((B, 2, Mp, Mp), jnp.float32),
            grid=(B, R),
            in_specs=[field_full, const_rows, const_full(single_buffer)],
            out_specs=field_rows,
            compiler_params=cparams,
        )(u2, GL, GR)
        return out

    try:
        out = run(True)
        jax.block_until_ready(out)
    except Exception:
        # Fallback for jax versions without BlockSpec(pipeline_mode=...).
        out = run(False)

    u2 = (out[:, 0, :M, :M] + 1j * out[:, 1, :M, :M]).astype(jnp.complex64)
    return u2


# ----------------------------------------------------------------------------
# Plain-JAX reference mirroring the PyTorch forward (complex64)
# ----------------------------------------------------------------------------
def _reference_jax(u1, L_=L, lmbda=LMBDA, z=Z):
    M = u1.shape[-1]
    H = jnp.asarray(_transfer_function(M, L_, lmbda, z), jnp.complex64)
    U1 = jnp.fft.fft2(jnp.fft.fftshift(u1, axes=(-2, -1)))
    U2 = H * U1
    return jnp.fft.ifftshift(jnp.fft.ifft2(U2), axes=(-2, -1))


if __name__ == "__main__":
    key = jax.random.PRNGKey(0)
    B, M = 2, 16
    kr, ki = jax.random.split(key)
    u1 = (jax.random.normal(kr, (B, M, M), jnp.float32)
          + 1j * jax.random.normal(ki, (B, M, M), jnp.float32)).astype(jnp.complex64)

    u2 = jax.block_until_ready(propagation_layer_pallas(u1))
    ref = jax.block_until_ready(_reference_jax(u1))

    err = float(jnp.max(jnp.abs(u2 - ref)))
    scale = float(jnp.max(jnp.abs(ref)))
    # bf16 MXU operands (f32 accumulate) against the complex64 FFT reference:
    # typical error ~0.5-1% of signal scale; gate at 5% of the output peak
    # (structural bugs — wrong shift / sign — would show up as O(1) errors).
    if err > 5e-2 * scale:
        raise AssertionError(
            f"Pallas propagation kernel mismatch: max|err|={err:.3e}, "
            f"peak|ref|={scale:.3e}")
    print("KERNEL_OK")
</pallas_src>

<mosaic_0001>
module attributes {stable_mosaic.version = 11 : i64} {
  func.func @_fwd_kernel(%arg0: i32, %arg1: i32, %arg2: memref<1x2x128x128xbf16, #tpu.memory_space<vmem>>, %arg3: memref<2x128x128xbf16, #tpu.memory_space<vmem>>, %arg4: memref<2x128x128xbf16, #tpu.memory_space<vmem>>, %arg5: memref<2x128x128xbf16, #tpu.memory_space<vmem>>, %arg6: memref<1x2x128x128xbf16, #tpu.memory_space<vmem>>) attributes {dimension_semantics = [#tpu.dimension_semantics<parallel>, #tpu.dimension_semantics<parallel>], iteration_bounds = array<i64: 2, 1>, scalar_prefetch = 0 : i64, scratch_operands = 0 : i64, tpu.core_type = #tpu.core_type<tc>, window_params = [{transform_indices = @transform_0, window_bounds = array<i64: 1, 2, 128, 128>}, {transform_indices = @transform_1, window_bounds = array<i64: 2, 128, 128>}, {pipeline_mode = #tpu.pipeline_mode<synchronous>, transform_indices = @transform_2, window_bounds = array<i64: 2, 128, 128>}, {transform_indices = @transform_3, window_bounds = array<i64: 2, 128, 128>}, {transform_indices = @transform_4, window_bounds = array<i64: 1, 2, 128, 128>}]} {
    %c0 = arith.constant 0 : index
    %c0_0 = arith.constant 0 : index
    %c0_1 = arith.constant 0 : index
    %c0_2 = arith.constant 0 : index
    %0 = vector.load %arg2[%c0, %c0_0, %c0_1, %c0_2] : memref<1x2x128x128xbf16, #tpu.memory_space<vmem>>, vector<1x1x128x128xbf16>
    %1 = vector.shape_cast %0 : vector<1x1x128x128xbf16> to vector<128x128xbf16>
    %c0_3 = arith.constant 0 : index
    %c1 = arith.constant 1 : index
    %c0_4 = arith.constant 0 : index
    %c0_5 = arith.constant 0 : index
    %2 = vector.load %arg2[%c0_3, %c1, %c0_4, %c0_5] : memref<1x2x128x128xbf16, #tpu.memory_space<vmem>>, vector<1x1x128x128xbf16>
    %3 = vector.shape_cast %2 : vector<1x1x128x128xbf16> to vector<128x128xbf16>
    %4 = arith.addf %1, %3 : vector<128x128xbf16>
    %c0_6 = arith.constant 0 : index
    %c0_7 = arith.constant 0 : index
    %c0_8 = arith.constant 0 : index
    %5 = vector.load %arg3[%c0_6, %c0_7, %c0_8] : memref<2x128x128xbf16, #tpu.memory_space<vmem>>, vector<1x128x128xbf16>
    %6 = vector.shape_cast %5 : vector<1x128x128xbf16> to vector<128x128xbf16>
    %c1_9 = arith.constant 1 : index
    %c0_10 = arith.constant 0 : index
    %c0_11 = arith.constant 0 : index
    %7 = vector.load %arg3[%c1_9, %c0_10, %c0_11] : memref<2x128x128xbf16, #tpu.memory_space<vmem>>, vector<1x128x128xbf16>
    %8 = vector.shape_cast %7 : vector<1x128x128xbf16> to vector<128x128xbf16>
    %9 = arith.addf %6, %8 : vector<128x128xbf16>
    %cst = arith.constant dense<0.000000e+00> : vector<128x128xf32>
    %10 = tpu.matmul %6, %1, %cst {dimension_numbers = #tpu.dot_dimension_numbers<[1], [0], [0], [1], [0, 0, 1, 1], [], []>} : vector<128x128xbf16>, vector<128x128xbf16>, vector<128x128xf32> -> vector<128x128xf32>
    %cst_12 = arith.constant dense<0.000000e+00> : vector<128x128xf32>
    %11 = tpu.matmul %8, %3, %cst_12 {dimension_numbers = #tpu.dot_dimension_numbers<[1], [0], [0], [1], [0, 0, 1, 1], [], []>} : vector<128x128xbf16>, vector<128x128xbf16>, vector<128x128xf32> -> vector<128x128xf32>
    %cst_13 = arith.constant dense<0.000000e+00> : vector<128x128xf32>
    %12 = tpu.matmul %9, %4, %cst_13 {dimension_numbers = #tpu.dot_dimension_numbers<[1], [0], [0], [1], [0, 0, 1, 1], [], []>} : vector<128x128xbf16>, vector<128x128xbf16>, vector<128x128xf32> -> vector<128x128xf32>
    %13 = arith.subf %10, %11 : vector<128x128xf32>
    %14 = arith.subf %12, %10 : vector<128x128xf32>
    %15 = arith.subf %14, %11 : vector<128x128xf32>
    %c0_14 = arith.constant 0 : index
    %c0_15 = arith.constant 0 : index
    %c0_16 = arith.constant 0 : index
    %16 = vector.load %arg4[%c0_14, %c0_15, %c0_16] : memref<2x128x128xbf16, #tpu.memory_space<vmem>>, vector<1x128x128xbf16>
    %17 = vector.shape_cast %16 : vector<1x128x128xbf16> to vector<128x128xbf16>
    %c1_17 = arith.constant 1 : index
    %c0_18 = arith.constant 0 : index
    %c0_19 = arith.constant 0 : index
    %18 = vector.load %arg4[%c1_17, %c0_18, %c0_19] : memref<2x128x128xbf16, #tpu.memory_space<vmem>>, vector<1x128x128xbf16>
    %19 = vector.shape_cast %18 : vector<1x128x128xbf16> to vector<128x128xbf16>
    %20 = arith.addf %17, %19 : vector<128x128xbf16>
    %21 = arith.truncf %13 : vector<128x128xf32> to vector<128x128xbf16>
    %22 = arith.truncf %15 : vector<128x128xf32> to vector<128x128xbf16>
    %23 = arith.addf %13, %15 : vector<128x128xf32>
    %24 = arith.truncf %23 : vector<128x128xf32> to vector<128x128xbf16>
    %cst_20 = arith.constant dense<0.000000e+00> : vector<128x128xf32>
    %25 = tpu.matmul %21, %17, %cst_20 {dimension_numbers = #tpu.dot_dimension_numbers<[1], [0], [0], [1], [0, 0, 1, 1], [], []>} : vector<128x128xbf16>, vector<128x128xbf16>, vector<128x128xf32> -> vector<128x128xf32>
    %cst_21 = arith.constant dense<0.000000e+00> : vector<128x128xf32>
    %26 = tpu.matmul %22, %19, %cst_21 {dimension_numbers = #tpu.dot_dimension_numbers<[1], [0], [0], [1], [0, 0, 1, 1], [], []>} : vector<128x128xbf16>, vector<128x128xbf16>, vector<128x128xf32> -> vector<128x128xf32>
    %cst_22 = arith.constant dense<0.000000e+00> : vector<128x128xf32>
    %27 = tpu.matmul %24, %20, %cst_22 {dimension_numbers = #tpu.dot_dimension_numbers<[1], [0], [0], [1], [0, 0, 1, 1], [], []>} : vector<128x128xbf16>, vector<128x128xbf16>, vector<128x128xf32> -> vector<128x128xf32>
    %28 = arith.subf %25, %26 : vector<128x128xf32>
    %29 = arith.subf %27, %25 : vector<128x128xf32>
    %30 = arith.subf %29, %26 : vector<128x128xf32>
    %c0_23 = arith.constant 0 : index
    %c0_24 = arith.constant 0 : index
    %c0_25 = arith.constant 0 : index
    %31 = vector.load %arg5[%c0_23, %c0_24, %c0_25] : memref<2x128x128xbf16, #tpu.memory_space<vmem>>, vector<1x128x128xbf16>
    %32 = vector.shape_cast %31 : vector<1x128x128xbf16> to vector<128x128xbf16>
    %33 = arith.extf %32 : vector<128x128xbf16> to vector<128x128xf32>
    %c1_26 = arith.constant 1 : index
    %c0_27 = arith.constant 0 : index
    %c0_28 = arith.constant 0 : index
    %34 = vector.load %arg5[%c1_26, %c0_27, %c0_28] : memref<2x128x128xbf16, #tpu.memory_space<vmem>>, vector<1x128x128xbf16>
    %35 = vector.shape_cast %34 : vector<1x128x128xbf16> to vector<128x128xbf16>
    %36 = arith.extf %35 : vector<128x128xbf16> to vector<128x128xf32>
    %37 = arith.mulf %33, %28 : vector<128x128xf32>
    %38 = arith.mulf %36, %30 : vector<128x128xf32>
    %39 = arith.subf %37, %38 : vector<128x128xf32>
    %40 = arith.truncf %39 : vector<128x128xf32> to vector<128x128xbf16>
    %c0_29 = arith.constant 0 : index
    %c0_30 = arith.constant 0 : index
    %c0_31 = arith.constant 0 : index
    %c0_32 = arith.constant 0 : index
    %41 = vector.load %arg6[%c0_29, %c0_30, %c0_31, %c0_32] : memref<1x2x128x128xbf16, #tpu.memory_space<vmem>>, vector<1x1x128x128xbf16>
    %42 = vector.shape_cast %41 : vector<1x1x128x128xbf16> to vector<128x128xbf16>
    %43 = vector.shape_cast %40 : vector<128x128xbf16> to vector<1x1x128x128xbf16>
    tpu.vector_store %arg6[%c0_29, %c0_30, %c0_31, %c0_32], %43 {strides = array<i32>} : memref<1x2x128x128xbf16, #tpu.memory_space<vmem>>, vector<1x1x128x128xbf16>,
    %44 = arith.mulf %33, %30 : vector<128x128xf32>
    %45 = arith.mulf %36, %28 : vector<128x128xf32>
    %46 = arith.addf %44, %45 : vector<128x128xf32>
    %47 = arith.truncf %46 : vector<128x128xf32> to vector<128x128xbf16>
    %c0_33 = arith.constant 0 : index
    %c1_34 = arith.constant 1 : index
    %c0_35 = arith.constant 0 : index
    %c0_36 = arith.constant 0 : index
    %48 = vector.load %arg6[%c0_33, %c1_34, %c0_35, %c0_36] : memref<1x2x128x128xbf16, #tpu.memory_space<vmem>>, vector<1x1x128x128xbf16>
    %49 = vector.shape_cast %48 : vector<1x1x128x128xbf16> to vector<128x128xbf16>
    %50 = vector.shape_cast %47 : vector<128x128xbf16> to vector<1x1x128x128xbf16>
    tpu.vector_store %arg6[%c0_33, %c1_34, %c0_35, %c0_36], %50 {strides = array<i32>} : memref<1x2x128x128xbf16, #tpu.memory_space<vmem>>, vector<1x1x128x128xbf16>,
    return
  }
  func.func @transform_0(%arg0: i32, %arg1: i32) -> (i32, i32, i32, i32) {
    %c0_i32 = arith.constant 0 : i32
    %c0_i32_0 = arith.constant 0 : i32
    %c0_i32_1 = arith.constant 0 : i32
    %c0_i32_2 = arith.constant 0 : i32
    return %arg0, %c0_i32, %c0_i32_0, %c0_i32_1 : i32, i32, i32, i32
  }
  func.func @transform_1(%arg0: i32, %arg1: i32) -> (i32, i32, i32) {
    %c0_i32 = arith.constant 0 : i32
    %c0_i32_0 = arith.constant 0 : i32
    %c0_i32_1 = arith.constant 0 : i32
    return %c0_i32, %arg1, %c0_i32_0 : i32, i32, i32
  }
  func.func @transform_2(%arg0: i32, %arg1: i32) -> (i32, i32, i32) {
    %c0_i32 = arith.constant 0 : i32
    %c0_i32_0 = arith.constant 0 : i32
    %c0_i32_1 = arith.constant 0 : i32
    %c0_i32_2 = arith.constant 0 : i32
    return %c0_i32, %c0_i32_0, %c0_i32_1 : i32, i32, i32
  }
  func.func @transform_3(%arg0: i32, %arg1: i32) -> (i32, i32, i32) {
    %c0_i32 = arith.constant 0 : i32
    %c0_i32_0 = arith.constant 0 : i32
    %c0_i32_1 = arith.constant 0 : i32
    return %c0_i32, %arg1, %c0_i32_0 : i32, i32, i32
  }
  func.func @transform_4(%arg0: i32, %arg1: i32) -> (i32, i32, i32, i32) {
    %c0_i32 = arith.constant 0 : i32
    %c0_i32_0 = arith.constant 0 : i32
    %c0_i32_1 = arith.constant 0 : i32
    return %arg0, %c0_i32, %arg1, %c0_i32_0 : i32, i32, i32, i32
  }
}

module attributes {stable_mosaic.version = 11 : i64} {
  func.func @_fwd_kernel(%arg0: i32, %arg1: i32, %arg2: memref<1x2x128x128xbf16, #tpu.memory_space<vmem>>, %arg3: memref<2x128x128xbf16, #tpu.memory_space<vmem>>, %arg4: memref<2x128x128xbf16, #tpu.memory_space<vmem>>, %arg5: memref<2x128x128xbf16, #tpu.memory_space<vmem>>, %arg6: memref<1x2x128x128xbf16, #tpu.memory_space<vmem>>) attributes {dimension_semantics = [#tpu.dimension_semantics<parallel>, #tpu.dimension_semantics<parallel>], iteration_bounds = array<i64: 2, 1>, scalar_prefetch = 0 : i64, scratch_operands = 0 : i64, tpu.core_type = #tpu.core_type<tc>, window_params = [{transform_indices = @transform_0, window_bounds = array<i64: 1, 2, 128, 128>}, {transform_indices = @transform_1, window_bounds = array<i64: 2, 128, 128>}, {pipeline_mode = #tpu.pipeline_mode<synchronous>, transform_indices = @transform_2, window_bounds = array<i64: 2, 128, 128>}, {transform_indices = @transform_3, window_bounds = array<i64: 2, 128, 128>}, {transform_indices = @transform_4, window_bounds = array<i64: 1, 2, 128, 128>}]} {
    %c0 = arith.constant 0 : index
    %c0_0 = arith.constant 0 : index
    %c0_1 = arith.constant 0 : index
    %c0_2 = arith.constant 0 : index
    %0 = vector.load %arg2[%c0, %c0_0, %c0_1, %c0_2] : memref<1x2x128x128xbf16, #tpu.memory_space<vmem>>, vector<1x1x128x128xbf16>
    %1 = vector.shape_cast %0 : vector<1x1x128x128xbf16> to vector<128x128xbf16>
    %c0_3 = arith.constant 0 : index
    %c1 = arith.constant 1 : index
    %c0_4 = arith.constant 0 : index
    %c0_5 = arith.constant 0 : index
    %2 = vector.load %arg2[%c0_3, %c1, %c0_4, %c0_5] : memref<1x2x128x128xbf16, #tpu.memory_space<vmem>>, vector<1x1x128x128xbf16>
    %3 = vector.shape_cast %2 : vector<1x1x128x128xbf16> to vector<128x128xbf16>
    %4 = arith.addf %1, %3 : vector<128x128xbf16>
    %c0_6 = arith.constant 0 : index
    %c0_7 = arith.constant 0 : index
    %c0_8 = arith.constant 0 : index
    %5 = vector.load %arg3[%c0_6, %c0_7, %c0_8] : memref<2x128x128xbf16, #tpu.memory_space<vmem>>, vector<1x128x128xbf16>
    %6 = vector.shape_cast %5 : vector<1x128x128xbf16> to vector<128x128xbf16>
    %c1_9 = arith.constant 1 : index
    %c0_10 = arith.constant 0 : index
    %c0_11 = arith.constant 0 : index
    %7 = vector.load %arg3[%c1_9, %c0_10, %c0_11] : memref<2x128x128xbf16, #tpu.memory_space<vmem>>, vector<1x128x128xbf16>
    %8 = vector.shape_cast %7 : vector<1x128x128xbf16> to vector<128x128xbf16>
    %9 = arith.addf %6, %8 : vector<128x128xbf16>
    %cst = arith.constant dense<0.000000e+00> : vector<128x128xf32>
    %10 = tpu.matmul %6, %1, %cst {dimension_numbers = #tpu.dot_dimension_numbers<[1], [0], [0], [1], [0, 0, 1, 1], [], []>} : vector<128x128xbf16>, vector<128x128xbf16>, vector<128x128xf32> -> vector<128x128xf32>
    %cst_12 = arith.constant dense<0.000000e+00> : vector<128x128xf32>
    %11 = tpu.matmul %8, %3, %cst_12 {dimension_numbers = #tpu.dot_dimension_numbers<[1], [0], [0], [1], [0, 0, 1, 1], [], []>} : vector<128x128xbf16>, vector<128x128xbf16>, vector<128x128xf32> -> vector<128x128xf32>
    %cst_13 = arith.constant dense<0.000000e+00> : vector<128x128xf32>
    %12 = tpu.matmul %9, %4, %cst_13 {dimension_numbers = #tpu.dot_dimension_numbers<[1], [0], [0], [1], [0, 0, 1, 1], [], []>} : vector<128x128xbf16>, vector<128x128xbf16>, vector<128x128xf32> -> vector<128x128xf32>
    %13 = arith.subf %10, %11 : vector<128x128xf32>
    %14 = arith.subf %12, %10 : vector<128x128xf32>
    %15 = arith.subf %14, %11 : vector<128x128xf32>
    %c0_14 = arith.constant 0 : index
    %c0_15 = arith.constant 0 : index
    %c0_16 = arith.constant 0 : index
    %16 = vector.load %arg4[%c0_14, %c0_15, %c0_16] : memref<2x128x128xbf16, #tpu.memory_space<vmem>>, vector<1x128x128xbf16>
    %17 = vector.shape_cast %16 : vector<1x128x128xbf16> to vector<128x128xbf16>
    %c1_17 = arith.constant 1 : index
    %c0_18 = arith.constant 0 : index
    %c0_19 = arith.constant 0 : index
    %18 = vector.load %arg4[%c1_17, %c0_18, %c0_19] : memref<2x128x128xbf16, #tpu.memory_space<vmem>>, vector<1x128x128xbf16>
    %19 = vector.shape_cast %18 : vector<1x128x128xbf16> to vector<128x128xbf16>
    %20 = arith.addf %17, %19 : vector<128x128xbf16>
    %21 = arith.truncf %13 : vector<128x128xf32> to vector<128x128xbf16>
    %22 = arith.truncf %15 : vector<128x128xf32> to vector<128x128xbf16>
    %23 = arith.addf %13, %15 : vector<128x128xf32>
    %24 = arith.truncf %23 : vector<128x128xf32> to vector<128x128xbf16>
    %cst_20 = arith.constant dense<0.000000e+00> : vector<128x128xf32>
    %25 = tpu.matmul %21, %17, %cst_20 {dimension_numbers = #tpu.dot_dimension_numbers<[1], [0], [0], [1], [0, 0, 1, 1], [], []>} : vector<128x128xbf16>, vector<128x128xbf16>, vector<128x128xf32> -> vector<128x128xf32>
    %cst_21 = arith.constant dense<0.000000e+00> : vector<128x128xf32>
    %26 = tpu.matmul %22, %19, %cst_21 {dimension_numbers = #tpu.dot_dimension_numbers<[1], [0], [0], [1], [0, 0, 1, 1], [], []>} : vector<128x128xbf16>, vector<128x128xbf16>, vector<128x128xf32> -> vector<128x128xf32>
    %cst_22 = arith.constant dense<0.000000e+00> : vector<128x128xf32>
    %27 = tpu.matmul %24, %20, %cst_22 {dimension_numbers = #tpu.dot_dimension_numbers<[1], [0], [0], [1], [0, 0, 1, 1], [], []>} : vector<128x128xbf16>, vector<128x128xbf16>, vector<128x128xf32> -> vector<128x128xf32>
    %28 = arith.subf %25, %26 : vector<128x128xf32>
    %29 = arith.subf %27, %25 : vector<128x128xf32>
    %30 = arith.subf %29, %26 : vector<128x128xf32>
    %c0_23 = arith.constant 0 : index
    %c0_24 = arith.constant 0 : index
    %c0_25 = arith.constant 0 : index
    %31 = vector.load %arg5[%c0_23, %c0_24, %c0_25] : memref<2x128x128xbf16, #tpu.memory_space<vmem>>, vector<1x128x128xbf16>
    %32 = vector.shape_cast %31 : vector<1x128x128xbf16> to vector<128x128xbf16>
    %33 = arith.extf %32 : vector<128x128xbf16> to vector<128x128xf32>
    %c1_26 = arith.constant 1 : index
    %c0_27 = arith.constant 0 : index
    %c0_28 = arith.constant 0 : index
    %34 = vector.load %arg5[%c1_26, %c0_27, %c0_28] : memref<2x128x128xbf16, #tpu.memory_space<vmem>>, vector<1x128x128xbf16>
    %35 = vector.shape_cast %34 : vector<1x128x128xbf16> to vector<128x128xbf16>
    %36 = arith.extf %35 : vector<128x128xbf16> to vector<128x128xf32>
    %37 = arith.mulf %33, %28 : vector<128x128xf32>
    %38 = arith.mulf %36, %30 : vector<128x128xf32>
    %39 = arith.subf %37, %38 : vector<128x128xf32>
    %40 = arith.truncf %39 : vector<128x128xf32> to vector<128x128xbf16>
    %c0_29 = arith.constant 0 : index
    %c0_30 = arith.constant 0 : index
    %c0_31 = arith.constant 0 : index
    %c0_32 = arith.constant 0 : index
    %41 = vector.load %arg6[%c0_29, %c0_30, %c0_31, %c0_32] : memref<1x2x128x128xbf16, #tpu.memory_space<vmem>>, vector<1x1x128x128xbf16>
    %42 = vector.shape_cast %41 : vector<1x1x128x128xbf16> to vector<128x128xbf16>
    %43 = vector.shape_cast %40 : vector<128x128xbf16> to vector<1x1x128x128xbf16>
    tpu.vector_store %arg6[%c0_29, %c0_30, %c0_31, %c0_32], %43 {strides = array<i32>} : memref<1x2x128x128xbf16, #tpu.memory_space<vmem>>, vector<1x1x128x128xbf16>,
    %44 = arith.mulf %33, %30 : vector<128x128xf32>
    %45 = arith.mulf %36, %28 : vector<128x128xf32>
    %46 = arith.addf %44, %45 : vector<128x128xf32>
    %47 = arith.truncf %46 : vector<128x128xf32> to vector<128x128xbf16>
    %c0_33 = arith.constant 0 : index
    %c1_34 = arith.constant 1 : index
    %c0_35 = arith.constant 0 : index
    %c0_36 = arith.constant 0 : index
    %48 = vector.load %arg6[%c0_33, %c1_34, %c0_35, %c0_36] : memref<1x2x128x128xbf16, #tpu.memory_space<vmem>>, vector<1x1x128x128xbf16>
    %49 = vector.shape_cast %48 : vector<1x1x128x128xbf16> to vector<128x128xbf16>
    %50 = vector.shape_cast %47 : vector<128x128xbf16> to vector<1x1x128x128xbf16>
    tpu.vector_store %arg6[%c0_33, %c1_34, %c0_35, %c0_36], %50 {strides = array<i32>} : memref<1x2x128x128xbf16, #tpu.memory_space<vmem>>, vector<1x1x128x128xbf16>,
    return
  }
  func.func @transform_0(%arg0: i32, %arg1: i32) -> (i32, i32, i32, i32) {
    %c0_i32 = arith.constant 0 : i32
    %c0_i32_0 = arith.constant 0 : i32
    %c0_i32_1 = arith.constant 0 : i32
    %c0_i32_2 = arith.constant 0 : i32
    return %arg0, %c0_i32, %c0_i32_0, %c0_i32_1 : i32, i32, i32, i32
  }
  func.func @transform_1(%arg0: i32, %arg1: i32) -> (i32, i32, i32) {
    %c0_i32 = arith.constant 0 : i32
    %c0_i32_0 = arith.constant 0 : i32
    %c0_i32_1 = arith.constant 0 : i32
    return %c0_i32, %arg1, %c0_i32_0 : i32, i32, i32
  }
  func.func @transform_2(%arg0: i32, %arg1: i32) -> (i32, i32, i32) {
    %c0_i32 = arith.constant 0 : i32
    %c0_i32_0 = arith.constant 0 : i32
    %c0_i32_1 = arith.constant 0 : i32
    %c0_i32_2 = arith.constant 0 : i32
    return %c0_i32, %c0_i32_0, %c0_i32_1 : i32, i32, i32
  }
  func.func @transform_3(%arg0: i32, %arg1: i32) -> (i32, i32, i32) {
    %c0_i32 = arith.constant 0 : i32
    %c0_i32_0 = arith.constant 0 : i32
    %c0_i32_1 = arith.constant 0 : i32
    return %c0_i32, %arg1, %c0_i32_0 : i32, i32, i32
  }
  func.func @transform_4(%arg0: i32, %arg1: i32) -> (i32, i32, i32, i32) {
    %c0_i32 = arith.constant 0 : i32
    %c0_i32_0 = arith.constant 0 : i32
    %c0_i32_1 = arith.constant 0 : i32
    return %arg0, %c0_i32, %arg1, %c0_i32_0 : i32, i32, i32, i32
  }
}

</mosaic_0001>

<bundles_post_ra>
// kernel: tpu_custom_call.1
= control target key start
LH: loop header
LB: loop body
LE: loop exit
PB: predicated region body
PF: predicated region fallthrough
CT: control target
= control target key end

     0   :  { %9 = vsyncpa [#allocation3], 0  ;;  %s4192_s0 = inlined_call_operand.hbm [shape: bf16[2,2,128,128], index: 0, kind: input, shape index: {}]   ;;  %s4193_s1 = inlined_call_operand.hbm [shape: bf16[2,128,128], index: 1, kind: input, shape index: {}]   ;;  %s4194_s2 = inlined_call_operand.hbm [shape: bf16[2,128,128], index: 2, kind: input, shape index: {}]   ;;  %s4195_s3 = inlined_call_operand.hbm [shape: bf16[2,128,128], index: 3, kind: input, shape index: {}]   ;;  %s4196_s4 = inlined_call_operand.hbm [shape: bf16[2,2,128,128], index: 4, kind: output, shape index: {}]  }
   0x1   :  { %11 = vsyncpa [#allocation3 + $0x1], 0 }
   0x2   :  { %12 = vsyncpa [#allocation6], 0 }
   0x3   :  { %13 = vsyncpa [#allocation9], 0 }
   0x4   :  { %14 = vsyncpa [#allocation4], 0 }
   0x5   :  { %16 = vsyncpa [#allocation4 + $0x1], 0  ;;  %s3083_s15 = smov 0   ;;  %s3085_s16 = smov 0  }
   0x6   :  { %s3087_s17 = smov 0   ;;  %s3089_s18 = smov 0  }
   0x7   :  { %s3091_s19 = smov 0   ;;  %s3093_s20 = smov 0  }
   0x8 LB: > { %s2046_s21 = sadd.s32 4294967295, %s3047_s20   ;;  %s2047_s22 = sadd.s32 4294967294, %s3047_s20   ;;  %s3047_s20 = sphi %s3093_s20, %s22_s20   ;;  %s3043_s19 = sphi %s3091_s19, %s4257_s19   ;;  %s3039_s18 = sphi %s3089_s18, %s4256_s18   ;;  %s3035_s17 = sphi %s3087_s17, %s4255_s17   ;;  %s3031_s16 = sphi %s3085_s16, %s4254_s16   ;;  %s3027_s15 = sphi %s3083_s15, %s4253_s15  }
   0x9   : > { %p54_p0 = scmp.ne.s32.totalorder %s3031_s16, %s3027_s15  ;;  %p3117_p1 = scmp.eq.s32.totalorder %s2046_s21, 0 }
   0xa   : > { %p3121_p2 = scmp.eq.s32.totalorder %s2046_s21, 1  ;;  %p159_p3 = scmp.eq.s32.totalorder %s2047_s22, 1 }
   0xb   : > { %s4202_s23 = scalar_select %p3117_p1, 1, 0 }
   0xc   : > { %s4203_s24 = scalar_select %p3121_p2, 1, 0 }
   0xd   : > { %p3127_p4 = por %p3117_p1, %p54_p0  ;;  %p2048_p5 = scmp.ge.s32.totalorder %s3047_s20, 1 }
   0xe   : > { %p3132_p6 = por %p159_p3, %p54_p0  ;;  %p166_p7 = scmp.lt.s32.totalorder %s3047_s20, 3 }
   0xf   : > { %s4204_s25 = scalar_select %p3127_p4, 1, 0 }
  0x10   : > { %s4205_s26 = scalar_select %p3132_p6, 1, 0 }
  0x11   : > { %p3137_p8 = pnand %p2048_p5, %p166_p7  ;;  %s3049_s28 = smov [#allocation5]  }
  0x12   : > { %4206 = sst [smem:[#allocation15_spill]] %s4205_s26  ;;  %s181_s29 = sshll.u32 %s3049_s28, 4  ;;  %s3141_s29 = int_to_ptr.vmem [resolvable:$true] %s181_s29 }
  0x13   : > { %s4207_s27 = scalar_select %p3137_p8, 1, 0 }
  0x14   : > { %p2714_p9 = pneg %p3137_p8  ;;  %s3050_s5 = smov [#allocation7]  }
  0x15   : > { %s194_s6 = sshll.u32 %s3050_s5, 4  ;;  %s3051_s7 = smov [#allocation8]   ;;  %s3152_s6 = int_to_ptr.vmem [resolvable:$true] %s194_s6 }
  0x16   : > { %p3148_p11 = pnand %p2714_p9, %p3117_p1  ;;  %s3154_s8 = sshll.u32 %s3051_s7, 4  ;;  %s211_s8 = int_to_ptr.vmem [resolvable:$true] %s3154_s8 }
  0x17   : > { %s2843_s11 = scalar_lea.hbm %s4193_s1, 2048 }
  0x18   : > { %p2844_p12 = scmp.ne.s32.totalorder %s4193_s1, %s2843_s11  ;;  %p3164_p13 = pneg %p3148_p11 }
  0x19   : > { %p2850_p5 = scmp.lt.u32.totalorder %s2843_s11, %s4193_s1 }
  0x1a   : > { %p2846_p0 = pnand %p3164_p13, %p2844_p12 }
  0x1c   : > { %p2847_p3 = pneg %p2846_p0 }
  0x1e   : > { %p2852_p7 = pnand %p2850_p5, %p2847_p3 }
  0x20   : > { %2855 = shalt.err (!%p2852_p7)
}
  0x21   : > { %s2856_s28 = scalar_lea.vmem %s3141_s29, 2048  ;;  %p2864_p1 = scmp.lt.s32.totalorder %s3141_s29, %s3141_s29 }
  0x22   : > { %p2857_p9 = scmp.ne.s32.totalorder %s3141_s29, %s2856_s28  ;;  %p2865_p4 = scmp.lt.s32.totalorder %s2856_s28, %s2856_s28 }
  0x24   : > { %p2859_p10 = pnand %p2857_p9, %p3164_p13  ;;  %p2866_p12 = por %p2865_p4, %p2864_p1 }
  0x26   : > { %p2860_p6 = pneg %p2859_p10 }
  0x28   : > { %p2867_p0 = pnand %p2866_p12, %p2860_p6 }
  0x2a   : > { %2870 = shalt.err (!%p2867_p0)
}
  0x2b   : > { %s3052_s5 = smov 64   ;;  %s3053_s7 = smov 4  }
  0x2c   : > { %2717 = dma.hbm_to_vmem [thread:$0]  (!%p3148_p11), %s4193_s1, 2048, %s3141_s29, [#allocation6], %s3052_s5, %s3052_s5, %s3053_s7  }
  0x2d   : > { %s2871_s13 = scalar_lea.hbm %s4194_s2, 2048 }
  0x2e   : > { %p2872_p1 = scmp.ne.s32.totalorder %s4194_s2, %s2871_s13  ;;  %p2878_p10 = scmp.lt.u32.totalorder %s2871_s13, %s4194_s2 }
  0x30   : > { %p2874_p4 = pnand %p2872_p1, %p3164_p13 }
  0x32   : > { %p2875_p6 = pneg %p2874_p4 }
  0x34   : > { %p2880_p3 = pnand %p2878_p10, %p2875_p6 }
  0x36   : > { %2883 = shalt.err (!%p2880_p3)
}
  0x37   : > { %s2884_s29 = scalar_lea.vmem %s3152_s6, 2048  ;;  %p2892_p12 = scmp.lt.s32.totalorder %s3152_s6, %s3152_s6 }
  0x38   : > { %p2885_p5 = scmp.ne.s32.totalorder %s3152_s6, %s2884_s29  ;;  %p2893_p0 = scmp.lt.s32.totalorder %s2884_s29, %s2884_s29 }
  0x3a   : > { %p2887_p7 = pnand %p2885_p5, %p3164_p13  ;;  %p2894_p1 = por %p2893_p0, %p2892_p12 }
  0x3c   : > { %p2888_p9 = pneg %p2887_p7 }
  0x3e   : > { %p2895_p4 = pnand %p2894_p1, %p2888_p9 }
  0x40   : > { %2898 = shalt.err (!%p2895_p4)
}
  0x41   : > { %2720 = dma.hbm_to_vmem [thread:$0]  (!%p3148_p11), %s4194_s2, 2048, %s3152_s6, [#allocation6], %s3052_s5, %s3052_s5, %s3053_s7  }
  0x42   : > { %s2899_s12 = scalar_lea.hbm %s4195_s3, 2048 }
  0x43   : > { %p2900_p6 = scmp.ne.s32.totalorder %s4195_s3, %s2899_s12  ;;  %p2906_p5 = scmp.lt.u32.totalorder %s2899_s12, %s4195_s3 }
  0x45   : > { %p2902_p10 = pnand %p2900_p6, %p3164_p13 }
  0x47   : > { %p2903_p3 = pneg %p2902_p10 }
  0x49   : > { %p2908_p7 = pnand %p2906_p5, %p2903_p3 }
  0x4b   : > { %2911 = shalt.err (!%p2908_p7)
}
  0x4c   : > { %s2912_s29 = scalar_lea.vmem %s211_s8, 2048  ;;  %p2920_p1 = scmp.lt.s32.totalorder %s211_s8, %s211_s8 }
  0x4d   : > { %p2913_p9 = scmp.ne.s32.totalorder %s211_s8, %s2912_s29  ;;  %p2921_p4 = scmp.lt.s32.totalorder %s2912_s29, %s2912_s29 }
  0x4f   : > { %p2915_p12 = pnand %p2913_p9, %p3164_p13  ;;  %p2922_p8 = por %p2921_p4, %p2920_p1 }
  0x51   : > { %p2916_p0 = pneg %p2915_p12 }
  0x53   : > { %p2923_p2 = pnand %p2922_p8, %p2916_p0 }
  0x55   : > { %2926 = shalt.err (!%p2923_p2)
}
  0x56   : > { %2723 = dma.hbm_to_vmem [thread:$0]  (!%p3148_p11), %s4195_s3, 2048, %s211_s8, [#allocation9], %s3052_s5, %s3052_s5, %s3053_s7  }
  0x57   : > { %s41_s14 = sadd.s32 1, %s3035_s17  ;;  %s34_s30 = sadd.s32 1, %s3043_s19 }
  0x58   : > { %p48_p2 = scmp.ne.s32.totalorder %s3035_s17, %s3031_s16  ;;  %p36_p8 = scmp.ge.s32.totalorder %s34_s30, 2 }
  0x59   : > { %p49_p13 = scmp.eq.s32.totalorder %s3047_s20, 0  ;;  %p4210_p6 = scmp.ne.s32.totalorder %s4203_s24, 0 }
  0x5a   : > { %p2735_p3 = scmp.lt.s32.totalorder %s3047_s20, 2  ;;  %s4259_s30 = smov (%p36_p8, %s34_s30), 0 }
  0x5b   : > { %p3243_p10 = por %p4210_p6, %p48_p2  ;;  %p50_p5 = por %p49_p13, %p48_p2 }
  0x5c   : > { %s224_s10 = sand.u32 1, %s3035_s17   ;;  %s38_s11 = ssub.s32 %s3043_s19, %s4259_s30 }
  0x5d   : > { %p39_p7 = scmp.eq.s32.totalorder %s38_s11, 0  ;;  %s2053_s8 = sshll.u32 %s224_s10, 7 }
  0x5e   : > { %s2203_s12 = sshll.u32 %s3043_s19, 11  ;;  %s228_s28 = scalar_lea.vmem [#allocation2], %s2053_s8 }
  0x5f   : > { %s3255_s13 = scalar_select %p39_p7, %s3035_s17, %s41_s14  }
  0x60   : > { %s3260_s24 = scalar_lea.hbm %s4192_s0, %s2203_s12  ;;  %s235_s29 = sshll.u32 %s228_s28, 4  ;;  %s3262_s29 = int_to_ptr.vmem [resolvable:$true] %s235_s29 }
  0x61   : > { %p3266_p11 = pnand %p2735_p3, %p50_p5  ;;  %s3270_s26 = scalar_lea.sflag [#allocation3], %s224_s10 }
  0x62   : > { %s2927_s14 = scalar_lea.hbm %s3260_s24, 2048  ;;  %s2932_s12 = scalar_lea.hbm %s4192_s0, 4096 }
  0x63   : > { %p2928_p9 = scmp.ne.s32.totalorder %s3260_s24, %s2927_s14  ;;  %p2929_p12 = pneg %p3266_p11 }
  0x64   : > { %p2933_p4 = scmp.lt.u32.totalorder %s3260_s24, %s4192_s0  ;;  %p2934_p2 = scmp.lt.u32.totalorder %s2932_s12, %s2927_s14 }
  0x65   : > { %p2930_p0 = pnand %p2929_p12, %p2928_p9  ;;  %p2936_p13 = scmp.lt.u32.totalorder %s2927_s14, %s3260_s24 }
  0x66   : > { %p2935_p8 = por %p2934_p2, %p2933_p4 }
  0x67   : > { %p2931_p1 = pneg %p2930_p0 }
  0x68   : > { %p2937_p6 = por %p2936_p13, %p2935_p8 }
  0x6a   : > { %p2938_p3 = pnand %p2937_p6, %p2931_p1 }
  0x6c   : > { %2941 = shalt.err (!%p2938_p3)
}
  0x6d   : > { %s2942_s10 = scalar_lea.vmem %s3262_s29, 2048  ;;  %s3054_s28 = smov [#allocation2]  }
  0x6e   : > { %p2943_p5 = scmp.ne.s32.totalorder %s3262_s29, %s2942_s10  ;;  %s2947_s11 = sshll.u32 %s3054_s28, 4  ;;  %s2948_s11 = int_to_ptr.vmem [resolvable:$false] %s2947_s11 }
  0x6f   : > { %s2949_s8 = scalar_lea.vmem %s2948_s11, 4096  ;;  %p2950_p0 = scmp.lt.s32.totalorder %s3262_s29, %s2948_s11 }
  0x70   : > { %p2945_p7 = pnand %p2943_p5, %p2929_p12  ;;  %p2951_p4 = scmp.lt.s32.totalorder %s2949_s8, %s2942_s10 }
  0x72   : > { %p2946_p9 = pneg %p2945_p7  ;;  %p2952_p2 = por %p2951_p4, %p2950_p0 }
  0x74   : > { %p2953_p8 = pnand %p2952_p2, %p2946_p9 }
  0x76   : > { %2956 = shalt.err (!%p2953_p8)
}
  0x77   : > { %2727 = dma.hbm_to_vmem [thread:$0]  (!%p3266_p11), %s3260_s24, 2048, %s3262_s29, %s3270_s26, %s3052_s5, %s3052_s5, %s3053_s7  }
  0x78   : > { %p4213_p12 = scmp.ne.s32.totalorder %s4207_s27, 0 }
  0x79   : > { %s3304_s14 = sand.u32 (!%p4213_p12), 1, %s3031_s16   ;;  %p4214_p1 = scmp.ne.s32.totalorder (!%p4213_p12), %s4204_s25, 0 }
  0x7a   : > { %247 = sbr.rel (%p4213_p12) target bundleno = 707 (0x2c3), region = 36  ;;  %s2057_s12 = sshll.u32 (!%p4213_p12), %s3304_s14, 7 }
  0x7b   : > { %s250_s21 = scalar_lea.sflag (!%p4213_p12), [#allocation3], %s3304_s14  ;;  %s3310_s6 = scalar_lea.vmem (!%p4213_p12), [#allocation2], %s2057_s12 }
  0x81   : > { %3010 = dma.done.wait (%p4214_p1), %s250_s21, 2048  }
  0x82   : > { %3012 = vsyncadd (%p4214_p1), %s250_s21, 4294965248  ;;  %p4215_p11 = scmp.ne.s32.totalorder %s4202_s23, 0 }
  0x84   : > { %3014 = dma.done.wait (%p4215_p11), [#allocation6], 4096  }
  0x85   : > { %3016 = vsyncadd (%p4215_p11), [#allocation6], 4294963200 }
  0x86   : > { %3018 = dma.done.wait (%p4215_p11), [#allocation9], 2048  }
  0x87   : > { %3020 = vsyncadd (%p4215_p11), [#allocation9], 4294965248  ;;  %v3325_v0 = vld [vmem:[%s3310_s6] sm:$0xf]  ;;  %v3328_v1 = vld [vmem:[%s3310_s6 + $0x4] sm:$0xf] }
  0x88   : > { %v3331_v2 = vld [vmem:[%s3310_s6 + $0x40] sm:$0xf]  ;;  %v2086_v3 = vcombine.low %v3325_v0, %v3328_v1  ;;  %v3336_v4 = vld [vmem:[%s3310_s6 + $0x44] sm:$0xf]  ;;  %v3339_v5 = vld [vmem:[%s3310_s6 + $0x8] sm:$0xf] }
  0x89   : > { %v3342_v6 = vld [vmem:[%s3310_s6 + $0xc] sm:$0xf]  ;;  %v2102_v7 = vcombine.low %v3331_v2, %v3336_v4  ;;  %v3349_v9 = vld [vmem:[%s3310_s6 + $0x48] sm:$0xf]  ;;  %v3355_v11 = vld [vmem:[%s3310_s6 + $0x10] sm:$0xf]  ;;  %v327_v52 = vadd.bf16 %v3331_v2, %v3325_v0  ;;  %v328_v53 = vadd.bf16 %v3336_v4, %v3328_v1 }
  0x8a   : > { %v2087_v8 = vcombine.low %v3339_v5, %v3342_v6  ;;  %v3352_v10 = vld [vmem:[%s3310_s6 + $0x4c] sm:$0xf]  ;;  %2506 = vmatprep.subr.bf16.mxu0 %v2086_v3  ;;  %v3360_v13 = vld [vmem:[%s3310_s6 + $0x14] sm:$0xf]  ;;  %v3363_v14 = vld [vmem:[%s3310_s6 + $0x50] sm:$0xf]  ;;  %v329_v60 = vadd.bf16 %v3349_v9, %v3339_v5 }
  0x8b   : > { %v2103_v12 = vcombine.low %v3349_v9, %v3352_v10  ;;  %v3366_v15 = vld [vmem:[%s3310_s6 + $0x54] sm:$0xf]  ;;  %2538 = vmatprep.subr.bf16.mxu1 %v2102_v7  ;;  %2507 = vmatpush3.bf16.msra.mxu0 %v2086_v3  ;;  %v2088_v16 = vcombine.low %v3355_v11, %v3360_v13  ;;  %v3373_v18 = vld [vmem:[%s3310_s6 + $0x18] sm:$0xf]  ;;  %v3376_v19 = vld [vmem:[%s3310_s6 + $0x1c] sm:$0xf]  ;;  %v330_v61 = vadd.bf16 %v3352_v10, %v3342_v6 }
  0x8c   : > { %2539 = vmatpush3.bf16.msra.mxu1 %v2102_v7  ;;  %2508 = vmatprep.subr.bf16.mxu0 %v2087_v8  ;;  %v2104_v17 = vcombine.low %v3363_v14, %v3366_v15  ;;  %v3379_v20 = vld [vmem:[%s3310_s6 + $0x58] sm:$0xf]  ;;  %v3382_v21 = vld [vmem:[%s3310_s6 + $0x5c] sm:$0xf]  ;;  %v2089_v22 = vcombine.low %v3373_v18, %v3376_v19  ;;  %v3387_v23 = vld [vmem:[%s3310_s6 + $0x20] sm:$0xf]  ;;  %v2118_v0 = vcombine.low %v327_v52, %v328_v53 }
  0x8d   : > { %2540 = vmatprep.subr.bf16.mxu1 %v2103_v12  ;;  %v3390_v24 = vld [vmem:[%s3310_s6 + $0x24] sm:$0xf]  ;;  %v2105_v25 = vcombine.low %v3379_v20, %v3382_v21  ;;  %v3395_v26 = vld [vmem:[%s3310_s6 + $0x60] sm:$0xf]  ;;  %v3417_v36 = vld [vmem:[%s3310_s6 + $0x28] sm:$0xf] }
  0x8e   : > { %v3398_v27 = vld [vmem:[%s3310_s6 + $0x64] sm:$0xf]  ;;  %v3400_v28 = vld [vmem:[#allocation5] sm:$0xf]  ;;  %v2090_v34 = vcombine.low %v3387_v23, %v3390_v24  ;;  %v3420_v37 = vld [vmem:[%s3310_s6 + $0x2c] sm:$0xf] }
  0x8f   : > { %2509 = vmatpush3.bf16.msra.mxu0 %v2087_v8  ;;  %v3402_v29 = vld [vmem:[#allocation5 + $0x4] sm:$0xf]  ;;  %v3404_v30 = vld [vmem:[#allocation5 + $0x40] sm:$0xf]  ;;  %v2106_v35 = vcombine.low %v3395_v26, %v3398_v27  ;;  %v3423_v38 = vld [vmem:[%s3310_s6 + $0x68] sm:$0xf]  ;;  %v2091_v40 = vcombine.low %v3417_v36, %v3420_v37  ;;  %v2119_v8 = vcombine.low %v329_v60, %v330_v61  ;;  %v335_v60 = vadd.bf16 %v3395_v26, %v3387_v23 }
  0x90   : > { %2541 = vmatpush3.bf16.msra.mxu1 %v2103_v12  ;;  %2510 = vmatprep.subr.bf16.mxu0 %v2088_v16  ;;  %v3406_v31 = vld [vmem:[#allocation5 + $0x44] sm:$0xf]  ;;  %v2078_v32 = vcombine.low %v3400_v28, %v3402_v29  ;;  %v3426_v39 = vld [vmem:[%s3310_s6 + $0x6c] sm:$0xf]  ;;  %v3433_v42 = vld [vmem:[%s3310_s6 + $0x30] sm:$0xf]  ;;  %v336_v61 = vadd.bf16 %v3398_v27, %v3390_v24 }
  0x91   : > { %2542 = vmatprep.subr.bf16.mxu1 %v2104_v17  ;;  %v2094_v33 = vcombine.low %v3404_v30, %v3406_v31  ;;  %v2107_v41 = vcombine.low %v3423_v38, %v3426_v39  ;;  %v3436_v43 = vld [vmem:[%s3310_s6 + $0x34] sm:$0xf]  ;;  %v3439_v44 = vld [vmem:[%s3310_s6 + $0x70] sm:$0xf]  ;;  %v3449_v48 = vld [vmem:[%s3310_s6 + $0x38] sm:$0xf] }
  0x92   : > { %2522 = vmatprep.mubr.bf16.mxu0 %v2078_v32  ;;  %v3442_v45 = vld [vmem:[%s3310_s6 + $0x74] sm:$0xf]  ;;  %v2092_v46 = vcombine.low %v3433_v42, %v3436_v43  ;;  %v3452_v49 = vld [vmem:[%s3310_s6 + $0x3c] sm:$0xf]  ;;  %v3455_v50 = vld [vmem:[%s3310_s6 + $0x78] sm:$0xf]  ;;  %v2122_v27 = vcombine.low %v335_v60, %v336_v61 }
  0x93   : > { %2511 = vmatpush3.bf16.msra.mxu0 %v2088_v16  ;;  %2554 = vmatprep.mubr.bf16.mxu1 %v2094_v33  ;;  %v2108_v47 = vcombine.low %v3439_v44, %v3442_v45  ;;  %v3458_v51 = vld [vmem:[%s3310_s6 + $0x7c] sm:$0xf]  ;;  %v2093_v54 = vcombine.low %v3449_v48, %v3452_v49  ;;  %v3468_v56 = vld [vmem:[#allocation7] sm:$0xf]  ;;  %v3470_v57 = vld [vmem:[#allocation7 + $0x4] sm:$0xf]  ;;  %v331_v16 = vadd.bf16 %v3363_v14, %v3355_v11 }
  0x94   : > { %2543 = vmatpush3.bf16.msra.mxu1 %v2104_v17  ;;  %2512 = vmatprep.subr.bf16.mxu0 %v2089_v22  ;;  %v2109_v55 = vcombine.low %v3455_v50, %v3458_v51  ;;  %v3472_v58 = vld [vmem:[#allocation5 + $0x8] sm:$0xf]  ;;  %v3474_v59 = vld [vmem:[#allocation5 + $0xc] sm:$0xf]  ;;  %v3484_v1 = vld [vmem:[#allocation5 + $0x10] sm:$0xf]  ;;  %v2126_v3 = vcombine.low %v3468_v56, %v3470_v57  ;;  %v332_v17 = vadd.bf16 %v3366_v15, %v3360_v13 }
  0x95   : > { %2544 = vmatprep.subr.bf16.mxu1 %v2105_v25  ;;  %v3480_v62 = vld [vmem:[#allocation5 + $0x48] sm:$0xf]  ;;  %v3482_v63 = vld [vmem:[#allocation5 + $0x4c] sm:$0xf]  ;;  %v3486_v2 = vld [vmem:[#allocation5 + $0x14] sm:$0xf]  ;;  %v2079_v4 = vcombine.low %v3472_v58, %v3474_v59 }
  0x96   : > { %v3492_v5 = vld [vmem:[#allocation5 + $0x50] sm:$0xf]  ;;  %v3494_v6 = vld [vmem:[#allocation5 + $0x54] sm:$0xf]  ;;  %v2095_v7 = vcombine.low %v3480_v62, %v3482_v63  ;;  %v3498_v9 = vld [vmem:[#allocation7 + $0x8] sm:$0xf]  ;;  %v2080_v12 = vcombine.low %v3484_v1, %v3486_v2  ;;  %v2120_v15 = vcombine.low %v331_v16, %v332_v17  ;;  %v338_v16 = vadd.bf16 %v3426_v39, %v3420_v37 }
  0x97   : > { %2513 = vmatpush3.bf16.msra.mxu0 %v2089_v22  ;;  %v3500_v10 = vld [vmem:[#allocation7 + $0xc] sm:$0xf]  ;;  %v2096_v22 = vcombine.low %v3492_v5, %v3494_v6  ;;  %v3514_v33 = vld [vmem:[#allocation5 + $0x1c] sm:$0xf]  ;;  %v3518_v11 = vld [vmem:[#allocation7 + $0x14] sm:$0xf] }
  0x98   : > { %2545 = vmatpush3.bf16.msra.mxu1 %v2105_v25  ;;  %2514 = vmatprep.subr.bf16.mxu0 %v2090_v34  ;;  %v3510_v25 = vld [vmem:[#allocation5 + $0x18] sm:$0xf]  ;;  %v2127_v32 = vcombine.low %v3498_v9, %v3500_v10  ;;  %v3522_v14 = vld [vmem:[#allocation5 + $0x5c] sm:$0xf]  ;;  %v3534_v52 = vld [vmem:[#allocation5 + $0x60] sm:$0xf] }
  0x99   : > { %2546 = vmatprep.subr.bf16.mxu1 %v2106_v35  ;;  %v3520_v13 = vld [vmem:[#allocation5 + $0x58] sm:$0xf]  ;;  %v3536_v53 = vld [vmem:[#allocation5 + $0x64] sm:$0xf]  ;;  %v3564_v24 = vld [vmem:[#allocation5 + $0x68] sm:$0xf] }
  0x9a   : > { %v3562_v23 = vld [vmem:[#allocation7 + $0x24] sm:$0xf]  ;;  %v3566_v26 = vld [vmem:[#allocation5 + $0x6c] sm:$0xf]  ;;  %v3572_v17 = vld [vmem:[#allocation5 + $0x30] sm:$0xf] }
  0x9b   : > { %2515 = vmatpush3.bf16.msra.mxu0 %v2090_v34  ;;  %v3516_v34 = vld [vmem:[#allocation7 + $0x10] sm:$0xf]  ;;  %v2099_v37 = vcombine.low %v3564_v24, %v3566_v26  ;;  %v3588_v39 = vld [vmem:[#allocation7 + $0x2c] sm:$0xf]  ;;  %v357_v60 = vld [vmem:[#allocation5 + $0x38] sm:$0xf] }
  0x9c   : > { %2547 = vmatpush3.bf16.msra.mxu1 %v2106_v35  ;;  %2516 = vmatprep.subr.bf16.mxu0 %v2091_v40  ;;  %v333_v35 = vadd.bf16 %v3379_v20, %v3373_v18  ;;  %v2128_v18 = vcombine.low %v3516_v34, %v3518_v11  ;;  %v3542_v20 = vld [vmem:[#allocation7 + $0x18] sm:$0xf]  ;;  %v358_v61 = vld [vmem:[#allocation5 + $0x3c] sm:$0xf]  ;;  %s4005_s23 = scalar_lea.vmem [#allocation10], %s2057_s12  ;;  %s2236_s25 = sshll.u32 %s3039_s18, 11 }
  0x9d   : > { %2548 = vmatprep.subr.bf16.mxu1 %v2107_v41  ;;  %s1929_s27 = sshll.u32 %s4005_s23, 4  ;;  %s4137_s24 = scalar_lea.hbm %s4196_s4, %s2236_s25  ;;  %s4139_s27 = int_to_ptr.vmem [resolvable:$true] %s1929_s27 }
  0x9e   : > { %s1914_s18 = scalar_lea.sflag [#allocation4], %s3304_s14  ;;  %s2957_s29 = scalar_lea.vmem %s4139_s27, 2048 }
  0x9f   : > { %2517 = vmatpush3.bf16.msra.mxu0 %v2091_v40  ;;  %v334_v40 = vadd.bf16 %v3382_v21, %v3376_v19  ;;  %v2097_v19 = vcombine.low %v3520_v13, %v3522_v14  ;;  %v3544_v21 = vld [vmem:[#allocation7 + $0x1c] sm:$0xf]  ;;  %p2958_p13 = scmp.ne.s32.totalorder %s4139_s27, %s2957_s29  ;;  %s3055_s26 = smov [#allocation10]  }
  0xa0   : > { %2549 = vmatpush3.bf16.msra.mxu1 %v2107_v41  ;;  %2518 = vmatprep.subr.bf16.mxu0 %v2092_v46  ;;  %v3528_v41 = vld [vmem:[#allocation5 + $0x20] sm:$0xf]  ;;  %s2961_s22 = sshll.u32 %s3055_s26, 4  ;;  %s2962_s22 = int_to_ptr.vmem [resolvable:$false] %s2961_s22 }
  0xa1   : > { %2550 = vmatprep.subr.bf16.mxu1 %v2108_v47  ;;  %p2959_p6 = pnand %p2958_p13, %p3243_p10  ;;  %s2963_s10 = scalar_lea.vmem %s2962_s22, 4096 }
  0xa2   : > { %p2964_p5 = scmp.lt.s32.totalorder %s4139_s27, %s2962_s22  ;;  %p2965_p7 = scmp.lt.s32.totalorder %s2963_s10, %s2957_s29 }
  0xa3   : > { %2519 = vmatpush3.bf16.msra.mxu0 %v2092_v46  ;;  %v3530_v46 = vld [vmem:[#allocation5 + $0x24] sm:$0xf]  ;;  %p2960_p3 = pneg %p2959_p6 }
  0xa4   : > { %2551 = vmatpush3.bf16.msra.mxu1 %v2108_v47  ;;  %2520 = vmatprep.subr.bf16.mxu0 %v2093_v54  ;;  %v2081_v47 = vcombine.low %v3510_v25, %v3514_v33  ;;  %p2966_p9 = por %p2965_p7, %p2964_p5 }
  0xa5   : > { %2552 = vmatprep.subr.bf16.mxu1 %v2109_v55 }
  0xa6   : > { %p2967_p0 = pnand %p2966_p9, %p2960_p3 }
  0xa7   : > { %2521 = vmatpush3.bf16.msra.mxu0 %v2093_v54  ;;  %v2121_v54 = vcombine.low %v333_v35, %v334_v40  ;;  %v3580_v35 = vld [vmem:[#allocation5 + $0x74] sm:$0xf] }
  0xa8   : > { %2553 = vmatpush3.bf16.msra.mxu1 %v2109_v55  ;;  %2570 = vmatprep.subr.bf16.mxu0 %v2118_v0  ;;  %v2082_v55 = vcombine.low %v3528_v41, %v3530_v46 }
  0xa9   : > { %2602 = vmatprep.subr.bf16.mxu1 %v2126_v3 }
  0xaa   : > { %2523 = vmatmul.mubr.bf16.vlgmr.msra.gmra.mrb[0].mxu0 %v2079_v4  ;;  %v2129_v4 = vcombine.low %v3542_v20, %v3544_v21 }
  0xab   : > { %2555 = vmatmul.mubr.bf16.vlgmr.msra.gmra.mrb[0].mxu1 %v2095_v7  ;;  %2571 = vmatpush3.bf16.msra.mxu0 %v2118_v0  ;;  %v2098_v0 = vcombine.low %v3534_v52, %v3536_v53  ;;  %v3558_v7 = vld [vmem:[#allocation5 + $0x2c] sm:$0xf] }
  0xac   : > { %2572 = vmatprep.subr.bf16.mxu0 %v2119_v8  ;;  %2526 = vmatprep.mubr.bf16.mxu0 %v2080_v12  ;;  %v337_v12 = vadd.bf16 %v3423_v38, %v3417_v36  ;;  %v3586_v38 = vld [vmem:[#allocation7 + $0x28] sm:$0xf] }
  0xad   : > { %2558 = vmatprep.mubr.bf16.mxu1 %v2096_v22  ;;  %2603 = vmatpush3.bf16.msra.mxu1 %v2126_v3  ;;  %v3554_v3 = vld [vmem:[#allocation5 + $0x28] sm:$0xf]  ;;  %v3574_v22 = vld [vmem:[#allocation5 + $0x34] sm:$0xf] }
  0xae   : > { %2604 = vmatprep.subr.bf16.mxu1 %v2127_v32  ;;  %v2123_v40 = vcombine.low %v337_v12, %v338_v16 }
  0xaf   : > { %2573 = vmatpush3.bf16.msra.mxu0 %v2119_v8  ;;  %v3560_v8 = vld [vmem:[#allocation7 + $0x20] sm:$0xf] }
  0xb0   : > { %2574 = vmatprep.subr.bf16.mxu0 %v2120_v15  ;;  %v2130_v36 = vcombine.low %v3560_v8, %v3562_v23 }
  0xb1   : > { %2605 = vmatpush3.bf16.msra.mxu1 %v2127_v32  ;;  %v2083_v32 = vcombine.low %v3554_v3, %v3558_v7 }
  0xb2   : > { %2527 = vmatmul.mubr.bf16.gmra.mrb[4].mxu0 %v2081_v47  ;;  %2606 = vmatprep.subr.bf16.mxu1 %v2128_v18  ;;  %v2084_v47 = vcombine.low %v3572_v17, %v3574_v22 }
  0xb3   : > { %2559 = vmatmul.mubr.bf16.gmra.mrb[4].mxu1 %v2097_v19  ;;  %2575 = vmatpush3.bf16.msra.mxu0 %v2120_v15  ;;  %v3578_v15 = vld [vmem:[#allocation5 + $0x70] sm:$0xf]  ;;  %v340_v19 = vadd.bf16 %v3442_v45, %v3436_v43  ;;  %v376_v43 = vadd.bf16 %v3404_v30, %v3400_v28  ;;  %v374_v45 = vld [vmem:[#allocation5 + $0x78] sm:$0xf]  ;;  %v378_v28 = vadd.bf16 %v3480_v62, %v3472_v58 }
  0xb4   : > { %2576 = vmatprep.subr.bf16.mxu0 %v2121_v54  ;;  %2530 = vmatprep.mubr.bf16.mxu0 %v2082_v55  ;;  %v2131_v55 = vcombine.low %v3586_v38, %v3588_v39  ;;  %v380_v30 = vadd.bf16 %v3492_v5, %v3484_v1  ;;  %v382_v58 = vadd.bf16 %v3520_v13, %v3510_v25 }
  0xb5   : > { %2562 = vmatprep.mubr.bf16.mxu1 %v2098_v0  ;;  %2607 = vmatpush3.bf16.msra.mxu1 %v2128_v18  ;;  %v339_v18 = vadd.bf16 %v3439_v44, %v3433_v42  ;;  %v341_v0 = vadd.bf16 %v3455_v50, %v3449_v48  ;;  %v342_v42 = vadd.bf16 %v3458_v51, %v3452_v49 }
  0xb6   : > { %2608 = vmatprep.subr.bf16.mxu1 %v2129_v4  ;;  %v377_v44 = vadd.bf16 %v3406_v31, %v3402_v29  ;;  %v379_v29 = vadd.bf16 %v3482_v63, %v3474_v59  ;;  %v381_v31 = vadd.bf16 %v3494_v6, %v3486_v2  ;;  %v383_v59 = vadd.bf16 %v3522_v14, %v3514_v33 }
  0xb7   : > { %2577 = vmatpush3.bf16.msra.mxu0 %v2121_v54  ;;  %v2100_v54 = vcombine.low %v3578_v15, %v3580_v35  ;;  %v2124_v12 = vcombine.low %v339_v18, %v340_v19  ;;  %v2125_v50 = vcombine.low %v341_v0, %v342_v42  ;;  %v384_v62 = vadd.bf16 %v3534_v52, %v3528_v41 }
  0xb8   : > { %2578 = vmatprep.subr.bf16.mxu0 %v2122_v27  ;;  %v2110_v49 = vcombine.low %v376_v43, %v377_v44  ;;  %v2111_v51 = vcombine.low %v378_v28, %v379_v29  ;;  %v2112_v16 = vcombine.low %v380_v30, %v381_v31  ;;  %v385_v63 = vadd.bf16 %v3536_v53, %v3530_v46  ;;  %v3632_v53 = vld [vmem:[#allocation7 + $0x30] sm:$0xf]  ;;  %v1042_v43 = vld [vmem:[#allocation7 + $0x58] sm:$0xf]  ;;  %v1043_v44 = vld [vmem:[#allocation7 + $0x5c] sm:$0xf] }
  0xb9   : > { %2609 = vmatpush3.bf16.msra.mxu1 %v2129_v4  ;;  %v375_v4 = vld [vmem:[#allocation5 + $0x7c] sm:$0xf]  ;;  %v2113_v1 = vcombine.low %v382_v58, %v383_v59  ;;  %v386_v5 = vadd.bf16 %v3564_v24, %v3554_v3  ;;  %v387_v6 = vadd.bf16 %v3566_v26, %v3558_v7  ;;  %v388_v25 = vadd.bf16 %v3578_v15, %v3572_v17  ;;  %v3634_v3 = vld [vmem:[#allocation7 + $0x34] sm:$0xf]  ;;  %v3638_v24 = vld [vmem:[#allocation7 + $0x38] sm:$0xf] }
  0xba   : > { %2531 = vmatmul.mubr.bf16.gmra.mrb[8].mxu0 %v2083_v32  ;;  %2610 = vmatprep.subr.bf16.mxu1 %v2130_v36  ;;  %v2101_v48 = vcombine.low %v374_v45, %v375_v4  ;;  %v2114_v2 = vcombine.low %v384_v62, %v385_v63  ;;  %v389_v33 = vadd.bf16 %v3580_v35, %v3574_v22  ;;  %v3640_v26 = vld [vmem:[#allocation7 + $0x3c] sm:$0xf]  ;;  %v1036_v22 = vld [vmem:[#allocation7 + $0x40] sm:$0xf]  ;;  %v1037_v32 = vld [vmem:[#allocation7 + $0x44] sm:$0xf] }
  0xbb   : > { %2563 = vmatmul.mubr.bf16.gmra.mrb[8].mxu1 %v2099_v37  ;;  %2579 = vmatpush3.bf16.msra.mxu0 %v2122_v27  ;;  %v2085_v27 = vcombine.low %v357_v60, %v358_v61  ;;  %v2115_v13 = vcombine.low %v386_v5, %v387_v6  ;;  %v390_v41 = vadd.bf16 %v374_v45, %v357_v60  ;;  %v1041_v60 = vld [vmem:[#allocation7 + $0x54] sm:$0xf]  ;;  %v1047_v28 = vld [vmem:[#allocation7 + $0x6c] sm:$0xf]  ;;  %v1048_v31 = vld [vmem:[#allocation7 + $0x70] sm:$0xf] }
  0xbc   : > { %2580 = vmatprep.subr.bf16.mxu0 %v2123_v40  ;;  %2534 = vmatprep.mubr.bf16.mxu0 %v2084_v47  ;;  %v2116_v14 = vcombine.low %v388_v25, %v389_v33  ;;  %v391_v46 = vadd.bf16 %v375_v4, %v358_v61  ;;  %v2132_v7 = vcombine.low %v3632_v53, %v3634_v3  ;;  %v1039_v47 = vld [vmem:[#allocation7 + $0x4c] sm:$0xf]  ;;  %v1050_v59 = vld [vmem:[#allocation7 + $0x78] sm:$0xf]  ;;  %v1051_v62 = vld [vmem:[#allocation7 + $0x7c] sm:$0xf] }
  0xbd   : > { %2566 = vmatprep.mubr.bf16.mxu1 %v2100_v54  ;;  %2611 = vmatpush3.bf16.msra.mxu1 %v2130_v36  ;;  %v2133_v17 = vcombine.low %v3638_v24, %v3640_v26  ;;  %v2134_v15 = vcombine.low %v1036_v22, %v1037_v32  ;;  %v1052_v35 = vadd.bf16 %v1036_v22, %v3468_v56  ;;  %v1040_v56 = vld [vmem:[#allocation7 + $0x50] sm:$0xf] }
  0xbe   : > { %2612 = vmatprep.subr.bf16.mxu1 %v2131_v55  ;;  %v2117_v52 = vcombine.low %v390_v41, %v391_v46  ;;  %v1053_v36 = vadd.bf16 %v1037_v32, %v3470_v57  ;;  %v1055_v54 = vadd.bf16 %v1039_v47, %v3500_v10  ;;  %v2136_v57 = vcombine.low %v1040_v56, %v1041_v60 }
  0xbf   : > { %2581 = vmatpush3.bf16.msra.mxu0 %v2123_v40  ;;  %v1038_v40 = vld [vmem:[#allocation7 + $0x48] sm:$0xf]  ;;  %v1056_v61 = vadd.bf16 %v1040_v56, %v3516_v34  ;;  %v1057_v0 = vadd.bf16 %v1041_v60, %v3518_v11  ;;  %v1058_v10 = vadd.bf16 %v1042_v43, %v3542_v20  ;;  %v1059_v45 = vadd.bf16 %v1043_v44, %v3544_v21 }
  0xc0   : > { %2582 = vmatprep.subr.bf16.mxu0 %v2124_v12  ;;  %v3646_v37 = vcombine.low %v1052_v35, %v1053_v36  ;;  %v2135_v18 = vcombine.low %v1038_v40, %v1039_v47  ;;  %v1054_v19 = vadd.bf16 %v1038_v40, %v3498_v9  ;;  %v2137_v9 = vcombine.low %v1042_v43, %v1043_v44 }
  0xc1   : > { %2613 = vmatpush3.bf16.msra.mxu1 %v2131_v55  ;;  %v3655_v42 = vcombine.low %v1056_v61, %v1057_v0  ;;  %v3659_v4 = vcombine.low %v1058_v10, %v1059_v45  ;;  %v1063_v29 = vadd.bf16 %v1047_v28, %v3588_v39  ;;  %v1066_v39 = vadd.bf16 %v1050_v59, %v3638_v24 }
  0xc2   : > { %2535 = vmatmul.mubr.bf16.gmra.mrb[12].mxu0 %v2085_v27  ;;  %2614 = vmatprep.subr.bf16.mxu1 %v2132_v7  ;;  %v3651_v55 = vcombine.low %v1054_v19, %v1055_v54  ;;  %v1045_v27 = vld [vmem:[#allocation7 + $0x64] sm:$0xf]  ;;  %v1067_v63 = vadd.bf16 %v1051_v62, %v3640_v26 }
  0xc3   : > { %2567 = vmatmul.mubr.bf16.gmra.mrb[12].mxu1 %v2101_v48  ;;  %2583 = vmatpush3.bf16.msra.mxu0 %v2124_v12  ;;  %v1044_v12 = vld [vmem:[#allocation7 + $0x60] sm:$0xf]  ;;  %v1061_v48 = vadd.bf16 %v1045_v27, %v3562_v23  ;;  %v1064_v23 = vadd.bf16 %v1048_v31, %v3632_v53 }
  0xc4   : > { %2584 = vmatprep.subr.bf16.mxu0 %v2125_v50  ;;  %2586 = vmatprep.mubr.bf16.mxu0 %v2110_v49  ;;  %v2138_v34 = vcombine.low %v1044_v12, %v1045_v27  ;;  %v1060_v11 = vadd.bf16 %v1044_v12, %v3560_v8  ;;  %v1046_v49 = vld [vmem:[#allocation7 + $0x68] sm:$0xf] }
  0xc5   : > { %2615 = vmatpush3.bf16.msra.mxu1 %v2132_v7  ;;  %v2139_v20 = vcombine.low %v1046_v49, %v1047_v28  ;;  %v1062_v21 = vadd.bf16 %v1046_v49, %v3586_v38  ;;  %v2141_v38 = vcombine.low %v1050_v59, %v1051_v62 }
  0xc6   : > { %2616 = vmatprep.subr.bf16.mxu1 %v2133_v17 }
  0xc7   : > { %2585 = vmatpush3.bf16.msra.mxu0 %v2125_v50  ;;  %v3663_v50 = vcombine.low %v1060_v11, %v1061_v48  ;;  %v3667_v30 = vcombine.low %v1062_v21, %v1063_v29 }
  0xc8   : > { %2634 = vmatprep.subr.bf16.mxu0 %v2134_v15 }
  0xc9   : > { %2617 = vmatpush3.bf16.msra.mxu1 %v2133_v17 }
  0xca   : > { %2587 = vmatmul.mubr.bf16.vlgmr.msra.gmra.mrb[16].mxu0 %v2111_v51  ;;  %2666 = vmatprep.subr.bf16.mxu1 %v3646_v37  ;;  %v1049_v51 = vld [vmem:[#allocation7 + $0x74] sm:$0xf] }
  0xcb   : > { %2590 = vmatprep.mubr.bf16.mxu0 %v2112_v16  ;;  %2635 = vmatpush3.bf16.msra.mxu0 %v2134_v15  ;;  %v2140_v8 = vcombine.low %v1048_v31, %v1049_v51  ;;  %v1065_v16 = vadd.bf16 %v1049_v51, %v3634_v3 }
  0xcc   : > { %2636 = vmatprep.subr.bf16.mxu0 %v2135_v18 }
  0xcd   : > { %v3671_v58 = vcombine.low %v1064_v23, %v1065_v16 }
  0xcf   : > { %2637 = vmatpush3.bf16.msra.mxu0 %v2135_v18 }
  0xd0   : > { %2638 = vmatprep.subr.bf16.mxu0 %v2136_v57 }
  0xd2   : > { %2591 = vmatmul.mubr.bf16.gmra.mrb[20].mxu0 %v2113_v1  ;;  %v3675_v1 = vcombine.low %v1066_v39, %v1067_v63 }
  0xd3   : > { %2594 = vmatprep.mubr.bf16.mxu0 %v2114_v2  ;;  %2639 = vmatpush3.bf16.msra.mxu0 %v2136_v57 }
  0xd4   : > { %2640 = vmatprep.subr.bf16.mxu0 %v2137_v9 }
  0xd7   : > { %2641 = vmatpush3.bf16.msra.mxu0 %v2137_v9 }
  0xd8   : > { %2642 = vmatprep.subr.bf16.mxu0 %v2138_v34 }
  0xda   : > { %2595 = vmatmul.mubr.bf16.gmra.mrb[24].mxu0 %v2115_v13 }
  0xdb   : > { %2598 = vmatprep.mubr.bf16.mxu0 %v2116_v14  ;;  %2643 = vmatpush3.bf16.msra.mxu0 %v2138_v34 }
  0xdc   : > { %2644 = vmatprep.subr.bf16.mxu0 %v2139_v20 }
  0xdf   : > { %2645 = vmatpush3.bf16.msra.mxu0 %v2139_v20 }
  0xe0   : > { %2646 = vmatprep.subr.bf16.mxu0 %v2140_v8 }
  0xe2   : > { %2599 = vmatmul.mubr.bf16.gmra.mrb[28].mxu0 %v2117_v52 }
  0xe3   : > { %2647 = vmatpush3.bf16.msra.mxu0 %v2140_v8 }
  0xe4   : > { %2648 = vmatprep.subr.bf16.mxu0 %v2141_v38 }
  0xe7   : > { %2649 = vmatpush3.bf16.msra.mxu0 %v2141_v38 }
 0x17d   : > { %v3677_v2 = vpop.f32.mrb[0].mxu0 }
 0x17e   : > { %v3679_v5 = vpop.f32.mrb[0].mxu1  ;;  %v3681_v6 = vpop.f32.mrb[1].mxu0 }
 0x17f   : > { %v3685_v25 = vsub.f32 %v3677_v2, %v3679_v5  ;;  %v3687_v33 = vpop.f32.mrb[1].mxu1  ;;  %v3689_v13 = vpop.f32.mrb[2].mxu0 }
 0x180   : > { %v3693_v14 = vsub.f32 %v3681_v6, %v3687_v33  ;;  %v3695_v41 = vpop.f32.mrb[2].mxu1  ;;  %v3697_v46 = vpop.f32.mrb[3].mxu0 }
 0x181   : > { %v3701_v52 = vsub.f32 %v3689_v13, %v3695_v41  ;;  %v3703_v53 = vpop.f32.mrb[3].mxu1 }
 0x182   : > { %v3707_v3 = vsub.f32 %v3697_v46, %v3703_v53 }
 0x183   : > { %v1069_v7 = vpack.c.bf16 %v3701_v52, %v3685_v25 }
 0x184   : > { %v1068_v24 = vpack.c.bf16 %v3707_v3, %v3693_v14 }
 0x185   : > { %v3713_v26 = vpop.f32.mrb[4].mxu0 }
 0x186   : > { %v3715_v17 = vpop.f32.mrb[4].mxu1  ;;  %2618 = vmatprep.mubr.bf16.mxu1 %v1068_v24  ;;  %v3717_v22 = vpop.f32.mrb[5].mxu0 }
 0x187   : > { %v3721_v32 = vsub.f32 %v3713_v26, %v3715_v17  ;;  %v3723_v15 = vpop.f32.mrb[5].mxu1  ;;  %2619 = vmatmul.mubr.bf16.vlgmr.msra.gmra.mrb[16].mxu1 %v1069_v7  ;;  %v3725_v35 = vpop.f32.mrb[6].mxu0 }
 0x188   : > { %v3729_v36 = vsub.f32 %v3717_v22, %v3723_v15  ;;  %v3731_v40 = vpop.f32.mrb[6].mxu1  ;;  %v3733_v47 = vpop.f32.mrb[7].mxu0  ;;  %2667 = vmatpush3.bf16.msra.mxu1 %v3646_v37 }
 0x189   : > { %v3738_v18 = vsub.f32 %v3725_v35, %v3731_v40  ;;  %v3740_v19 = vpop.f32.mrb[7].mxu1  ;;  %2668 = vmatprep.subr.bf16.mxu1 %v3651_v55 }
 0x18a   : > { %v3745_v54 = vsub.f32 %v3733_v47, %v3740_v19 }
 0x18b   : > { %v1071_v56 = vpack.c.bf16 %v3738_v18, %v3721_v32 }
 0x18c   : > { %v1070_v60 = vpack.c.bf16 %v3745_v54, %v3729_v36  ;;  %2669 = vmatpush3.bf16.msra.mxu1 %v3651_v55 }
 0x18d   : > { %v3752_v37 = vpop.f32.mrb[8].mxu0  ;;  %2670 = vmatprep.subr.bf16.mxu1 %v3655_v42 }
 0x18e   : > { %v3755_v57 = vpop.f32.mrb[8].mxu1  ;;  %2622 = vmatprep.mubr.bf16.mxu1 %v1070_v60  ;;  %v3757_v61 = vpop.f32.mrb[9].mxu0 }
 0x18f   : > { %v3761_v0 = vsub.f32 %v3752_v37, %v3755_v57  ;;  %v3763_v43 = vpop.f32.mrb[9].mxu1  ;;  %2623 = vmatmul.mubr.bf16.gmra.mrb[20].mxu1 %v1071_v56  ;;  %v3765_v44 = vpop.f32.mrb[10].mxu0 }
 0x190   : > { %v3769_v55 = vsub.f32 %v3757_v61, %v3763_v43  ;;  %v3771_v9 = vpop.f32.mrb[10].mxu1  ;;  %v3773_v10 = vpop.f32.mrb[11].mxu0  ;;  %2671 = vmatpush3.bf16.msra.mxu1 %v3655_v42 }
 0x191   : > { %v3778_v45 = vsub.f32 %v3765_v44, %v3771_v9  ;;  %v3780_v12 = vpop.f32.mrb[11].mxu1  ;;  %2672 = vmatprep.subr.bf16.mxu1 %v3659_v4 }
 0x192   : > { %v3785_v27 = vsub.f32 %v3773_v10, %v3780_v12 }
 0x193   : > { %v1073_v34 = vpack.c.bf16 %v3778_v45, %v3761_v0 }
 0x194   : > { %v1072_v11 = vpack.c.bf16 %v3785_v27, %v3769_v55  ;;  %2673 = vmatpush3.bf16.msra.mxu1 %v3659_v4 }
 0x195   : > { %v3792_v42 = vpop.f32.mrb[12].mxu0  ;;  %2674 = vmatprep.subr.bf16.mxu1 %v3663_v50 }
 0x196   : > { %v3795_v48 = vpop.f32.mrb[12].mxu1  ;;  %2626 = vmatprep.mubr.bf16.mxu1 %v1072_v11  ;;  %v3797_v49 = vpop.f32.mrb[13].mxu0 }
 0x197   : > { %v3801_v28 = vsub.f32 %v3792_v42, %v3795_v48  ;;  %v3803_v20 = vpop.f32.mrb[13].mxu1  ;;  %2627 = vmatmul.mubr.bf16.gmra.mrb[24].mxu1 %v1073_v34  ;;  %v3805_v21 = vpop.f32.mrb[14].mxu0 }
 0x198   : > { %v3809_v4 = vsub.f32 %v3797_v49, %v3803_v20  ;;  %v3811_v29 = vpop.f32.mrb[14].mxu1  ;;  %v3813_v31 = vpop.f32.mrb[15].mxu0  ;;  %2675 = vmatpush3.bf16.msra.mxu1 %v3663_v50 }
 0x199   : > { %v3818_v51 = vsub.f32 %v3805_v21, %v3811_v29  ;;  %v3820_v8 = vpop.f32.mrb[15].mxu1  ;;  %2676 = vmatprep.subr.bf16.mxu1 %v3667_v30 }
 0x19a   : > { %v3825_v23 = vsub.f32 %v3813_v31, %v3820_v8 }
 0x19b   : > { %v1075_v16 = vpack.c.bf16 %v3818_v51, %v3801_v28 }
 0x19c   : > { %v1074_v59 = vpack.c.bf16 %v3825_v23, %v3809_v4  ;;  %2677 = vmatpush3.bf16.msra.mxu1 %v3667_v30 }
 0x19d   : > { %v2588_v50 = vpop.f32.mrb[16].mxu0  ;;  %2678 = vmatprep.subr.bf16.mxu1 %v3671_v58 }
 0x19e   : > { %v989_v62 = vsub.f32 %v2588_v50, %v3677_v2  ;;  %2630 = vmatprep.mubr.bf16.mxu1 %v1074_v59  ;;  %v908_v38 = vpop.f32.mrb[17].mxu0 }
 0x19f   : > { %v987_v39 = vsub.f32 %v908_v38, %v3681_v6  ;;  %2631 = vmatmul.mubr.bf16.gmra.mrb[28].mxu1 %v1075_v16  ;;  %v2589_v63 = vpop.f32.mrb[18].mxu0 }
 0x1a0   : > { %v1005_v7 = vsub.f32 %v989_v62, %v3679_v5  ;;  %v990_v24 = vsub.f32 %v2589_v63, %v3689_v13  ;;  %v911_v56 = vpop.f32.mrb[19].mxu0  ;;  %2679 = vmatpush3.bf16.msra.mxu1 %v3671_v58 }
 0x1a1   : > { %v1003_v30 = vsub.f32 %v987_v39, %v3687_v33  ;;  %v988_v60 = vsub.f32 %v911_v56, %v3697_v46  ;;  %2680 = vmatprep.subr.bf16.mxu1 %v3675_v1 }
 0x1a2   : > { %v1086_v2 = vadd.f32 %v1005_v7, %v3685_v25  ;;  %v1006_v34 = vsub.f32 %v990_v24, %v3695_v41 }
 0x1a3   : > { %v1084_v6 = vadd.f32 %v1003_v30, %v3693_v14  ;;  %v1004_v11 = vsub.f32 %v988_v60, %v3703_v53 }
 0x1a4   : > { %v1077_v5 = vpack.c.bf16 %v1006_v34, %v1005_v7  ;;  %v1087_v13 = vadd.f32 %v1006_v34, %v3701_v52  ;;  %2681 = vmatpush3.bf16.msra.mxu1 %v3675_v1 }
 0x1a5   : > { %v1085_v58 = vadd.f32 %v1004_v11, %v3707_v3  ;;  %v2592_v33 = vpop.f32.mrb[20].mxu0  ;;  %v1076_v16 = vpack.c.bf16 %v1004_v11, %v1003_v30 }
 0x1a6   : > { %v1101_v46 = vpack.c.bf16 %v1087_v13, %v1086_v2  ;;  %v993_v59 = vsub.f32 %v2592_v33, %v3713_v26  ;;  %v924_v50 = vpop.f32.mrb[21].mxu0 }
 0x1a7   : > { %v991_v25 = vsub.f32 %v924_v50, %v3717_v22  ;;  %v2593_v41 = vpop.f32.mrb[22].mxu0  ;;  %2650 = vmatprep.mubr.bf16.mxu0 %v1076_v16  ;;  %v1100_v14 = vpack.c.bf16 %v1085_v58, %v1084_v6 }
 0x1a8   : > { %v1009_v53 = vsub.f32 %v993_v59, %v3715_v17  ;;  %v994_v62 = vsub.f32 %v2593_v41, %v3725_v35  ;;  %v927_v52 = vpop.f32.mrb[23].mxu0  ;;  %2651 = vmatmul.mubr.bf16.vlgmr.msra.gmra.mrb[32].mxu0 %v1077_v5 }
 0x1a9   : > { %v1007_v1 = vsub.f32 %v991_v25, %v3723_v15  ;;  %v992_v3 = vsub.f32 %v927_v52, %v3733_v47  ;;  %2682 = vmatprep.mubr.bf16.mxu1 %v1100_v14 }
 0x1aa   : > { %v1090_v38 = vadd.f32 %v1009_v53, %v3721_v32  ;;  %v1010_v26 = vsub.f32 %v994_v62, %v3731_v40  ;;  %2683 = vmatmul.mubr.bf16.vlgmr.msra.gmra.mrb[32].mxu1 %v1101_v46 }
 0x1ab   : > { %v1088_v22 = vadd.f32 %v1007_v1, %v3729_v36  ;;  %v1008_v39 = vsub.f32 %v992_v3, %v3740_v19 }
 0x1ac   : > { %v1091_v17 = vadd.f32 %v1010_v26, %v3738_v18  ;;  %v1079_v63 = vpack.c.bf16 %v1010_v26, %v1009_v53  ;;  %v3914_v26 = vld [vmem:[#allocation8 + $0x8] sm:$0xff]  }
 0x1ad   : > { %v1089_v35 = vadd.f32 %v1008_v39, %v3745_v54  ;;  %v2596_v7 = vpop.f32.mrb[24].mxu0  ;;  %v1078_v24 = vpack.c.bf16 %v1008_v39, %v1007_v1 }
 0x1ae   : > { %v997_v15 = vsub.f32 %v2596_v7, %v3752_v37  ;;  %v940_v47 = vpop.f32.mrb[25].mxu0  ;;  %v1103_v56 = vpack.c.bf16 %v1091_v17, %v1090_v38  ;;  %v3920_v17 = vld [vmem:[#allocation8] sm:$0xff]   ;;  %v3926_v7 = vld [vmem:[#allocation8 + $0x58] sm:$0xff]  }
 0x1af   : > { %v995_v32 = vsub.f32 %v940_v47, %v3757_v61  ;;  %v2597_v30 = vpop.f32.mrb[26].mxu0  ;;  %2654 = vmatprep.mubr.bf16.mxu0 %v1078_v24  ;;  %v1102_v40 = vpack.c.bf16 %v1089_v35, %v1088_v22  ;;  %v3916_v22 = vld [vmem:[#allocation8 + $0x48] sm:$0xff]   ;;  %v3924_v35 = vld [vmem:[#allocation8 + $0x18] sm:$0xff]   ;;  %v2243_v24 = vunpack.c.l.bf16 %v3914_v26  ;;  %v3930_v47 = vld [vmem:[#allocation8 + $0x10] sm:$0xff]  }
 0x1b0   : > { %v1013_v36 = vsub.f32 %v997_v15, %v3755_v57  ;;  %v998_v19 = vsub.f32 %v2597_v30, %v3765_v44  ;;  %v943_v60 = vpop.f32.mrb[27].mxu0  ;;  %2655 = vmatmul.mubr.bf16.gmra.mrb[36].mxu0 %v1079_v63  ;;  %v3922_v63 = vld [vmem:[#allocation8 + $0x40] sm:$0xff]   ;;  %v2275_v15 = vunpack.c.l.bf16 %v3916_v22 }
 0x1b1   : > { %v1011_v18 = vsub.f32 %v995_v32, %v3763_v43  ;;  %v996_v54 = vsub.f32 %v943_v60, %v3773_v10  ;;  %2686 = vmatprep.mubr.bf16.mxu1 %v1102_v40  ;;  %v2239_v32 = vunpack.c.l.bf16 %v3920_v17  ;;  %v2271_v30 = vunpack.c.l.bf16 %v3922_v63  ;;  %v3940_v60 = vld [vmem:[#allocation8 + $0x68] sm:$0xff]  }
 0x1b2   : > { %v1094_v37 = vadd.f32 %v1013_v36, %v3761_v0  ;;  %v1014_v2 = vsub.f32 %v998_v19, %v3771_v9  ;;  %2687 = vmatmul.mubr.bf16.gmra.mrb[36].mxu1 %v1103_v56  ;;  %v3932_v56 = vld [vmem:[#allocation8 + $0x50] sm:$0xff]   ;;  %v2244_v40 = vunpack.c.h.bf16 %v3914_v26  ;;  %v3938_v19 = vld [vmem:[#allocation8 + $0x28] sm:$0xff]  }
 0x1b3   : > { %v1092_v61 = vadd.f32 %v1011_v18, %v3769_v55  ;;  %v1012_v34 = vsub.f32 %v996_v54, %v3780_v12  ;;  %v2272_v54 = vunpack.c.h.bf16 %v3922_v63 }
 0x1b4   : > { %v1095_v57 = vadd.f32 %v1014_v2, %v3778_v45  ;;  %v1081_v6 = vpack.c.bf16 %v1014_v2, %v1013_v36  ;;  %v2276_v36 = vunpack.c.h.bf16 %v3916_v22 }
 0x1b5   : > { %v1093_v44 = vadd.f32 %v1012_v34, %v3785_v27  ;;  %v2600_v11 = vpop.f32.mrb[28].mxu0  ;;  %v1080_v5 = vpack.c.bf16 %v1012_v34, %v1011_v18  ;;  %v2240_v18 = vunpack.c.h.bf16 %v3920_v17  ;;  %v3948_v34 = vld [vmem:[#allocation8 + $0x60] sm:$0xff]  }
 0x1b6   : > { %v1001_v43 = vsub.f32 %v2600_v11, %v3792_v42  ;;  %v956_v10 = vpop.f32.mrb[29].mxu0  ;;  %v1105_v13 = vpack.c.bf16 %v1095_v57, %v1094_v37  ;;  %v2251_v37 = vunpack.c.l.bf16 %v3924_v35 }
 0x1b7   : > { %v999_v0 = vsub.f32 %v956_v10, %v3797_v49  ;;  %v2601_v58 = vpop.f32.mrb[30].mxu0  ;;  %2658 = vmatprep.mubr.bf16.mxu0 %v1080_v5  ;;  %v1104_v9 = vpack.c.bf16 %v1093_v44, %v1092_v61  ;;  %v3946_v61 = vld [vmem:[#allocation8 + $0x20] sm:$0xff]  }
 0x1b8   : > { %v1017_v55 = vsub.f32 %v1001_v43, %v3795_v48  ;;  %v1002_v12 = vsub.f32 %v2601_v58, %v3805_v21  ;;  %v959_v33 = vpop.f32.mrb[31].mxu0  ;;  %2659 = vmatmul.mubr.bf16.gmra.mrb[40].mxu0 %v1081_v6  ;;  %v3958_v58 = vld [vmem:[#allocation8 + $0x38] sm:$0xff]  }
 0x1b9   : > { %v1015_v45 = vsub.f32 %v999_v0, %v3803_v20  ;;  %v1000_v27 = vsub.f32 %v959_v33, %v3813_v31  ;;  %2690 = vmatprep.mubr.bf16.mxu1 %v1104_v9  ;;  %v3960_v9 = vld [vmem:[#allocation8 + $0x78] sm:$0xff]  }
 0x1ba   : > { %v1098_v42 = vadd.f32 %v1017_v55, %v3801_v28  ;;  %v1018_v16 = vsub.f32 %v1002_v12, %v3811_v29  ;;  %2691 = vmatmul.mubr.bf16.gmra.mrb[40].mxu1 %v1105_v13 }
 0x1bb   : > { %v1096_v49 = vadd.f32 %v1015_v45, %v3809_v4  ;;  %v1016_v46 = vsub.f32 %v1000_v27, %v3820_v8 }
 0x1bc   : > { %v1099_v48 = vadd.f32 %v1018_v16, %v3818_v51  ;;  %v1083_v59 = vpack.c.bf16 %v1018_v16, %v1017_v55 }
 0x1bd   : > { %v1097_v21 = vadd.f32 %v1016_v46, %v3825_v23  ;;  %v1082_v50 = vpack.c.bf16 %v1016_v46, %v1015_v45 }
 0x1be   : > { %v1107_v25 = vpack.c.bf16 %v1099_v48, %v1098_v42 }
 0x1bf   : > { %2662 = vmatprep.mubr.bf16.mxu0 %v1082_v50  ;;  %v1106_v20 = vpack.c.bf16 %v1097_v21, %v1096_v49 }
 0x1c0   : > { %2663 = vmatmul.mubr.bf16.gmra.mrb[44].mxu0 %v1083_v59 }
 0x1c1   : > { %2694 = vmatprep.mubr.bf16.mxu1 %v1106_v20 }
 0x1c2   : > { %2695 = vmatmul.mubr.bf16.gmra.mrb[44].mxu1 %v1107_v25 }
 0x25a   : > { %v3884_v28 = vpop.f32.mrb[16].mxu1 }
 0x25b   : > { %v3886_v29 = vpop.f32.mrb[17].mxu1 }
 0x25c   : > { %v3888_v31 = vpop.f32.mrb[18].mxu1 }
 0x25d   : > { %v3890_v4 = vpop.f32.mrb[19].mxu1 }
 0x262   : > { %v3892_v8 = vpop.f32.mrb[20].mxu1 }
 0x263   : > { %v3894_v51 = vpop.f32.mrb[21].mxu1 }
 0x264   : > { %v3896_v23 = vpop.f32.mrb[22].mxu1 }
 0x265   : > { %v3898_v41 = vpop.f32.mrb[23].mxu1 }
 0x26a   : > { %v3900_v14 = vpop.f32.mrb[24].mxu1 }
 0x26b   : > { %v3902_v53 = vpop.f32.mrb[25].mxu1 }
 0x26c   : > { %v3904_v62 = vpop.f32.mrb[26].mxu1 }
 0x26d   : > { %v3906_v52 = vpop.f32.mrb[27].mxu1 }
 0x272   : > { %v3908_v1 = vpop.f32.mrb[28].mxu1 }
 0x273   : > { %v3910_v3 = vpop.f32.mrb[29].mxu1 }
 0x274   : > { %v3912_v38 = vpop.f32.mrb[30].mxu1 }
 0x275   : > { %v3918_v39 = vpop.f32.mrb[31].mxu1 }
 0x27b   : > { %v2652_v5 = vpop.f32.mrb[32].mxu0 }
 0x27c   : > { %v1545_v55 = vsub.f32 %v3884_v28, %v2652_v5  ;;  %v1335_v12 = vpop.f32.mrb[33].mxu0 }
 0x27d   : > { %v1543_v42 = vsub.f32 %v3886_v29, %v1335_v12  ;;  %v2653_v16 = vpop.f32.mrb[34].mxu0  ;;  %v2684_v49 = vpop.f32.mrb[32].mxu1 }
 0x27e   : > { %v1546_v21 = vsub.f32 %v3888_v31, %v2653_v16  ;;  %v1561_v50 = vsub.f32 %v2684_v49, %v3884_v28  ;;  %v1338_v25 = vpop.f32.mrb[35].mxu0  ;;  %v1480_v20 = vpop.f32.mrb[33].mxu1  ;;  %v1658_v45 = vmul.f32 %v2243_v24, %v1545_v55  ;;  %v1802_v33 = vmul.f32 %v2275_v15, %v1545_v55 }
 0x27f   : > { %v1544_v0 = vsub.f32 %v3890_v4, %v1338_v25  ;;  %v1559_v46 = vsub.f32 %v1480_v20, %v3886_v29  ;;  %v2685_v13 = vpop.f32.mrb[34].mxu1  ;;  %v1656_v48 = vmul.f32 %v2239_v32, %v1543_v42  ;;  %v1800_v10 = vmul.f32 %v2271_v30, %v1543_v42 }
 0x280   : > { %v1577_v59 = vsub.f32 %v1561_v50, %v2652_v5  ;;  %v1562_v43 = vsub.f32 %v2685_v13, %v3888_v31  ;;  %v1483_v11 = vpop.f32.mrb[35].mxu1  ;;  %v1659_v28 = vmul.f32 %v2244_v40, %v1546_v21  ;;  %v1803_v49 = vmul.f32 %v2276_v36, %v1546_v21 }
 0x281   : > { %v1575_v22 = vsub.f32 %v1559_v46, %v1335_v12  ;;  %v1560_v27 = vsub.f32 %v1483_v11, %v3890_v4  ;;  %v1657_v6 = vmul.f32 %v2240_v18, %v1544_v0  ;;  %v1801_v42 = vmul.f32 %v2272_v54, %v1544_v0 }
 0x282   : > { %v1674_v44 = vmul.f32 %v2275_v15, %v1577_v59  ;;  %v1786_v55 = vmul.f32 %v2243_v24, %v1577_v59  ;;  %v1578_v29 = vsub.f32 %v1562_v43, %v2653_v16 }
 0x283   : > { %v1672_v5 = vmul.f32 %v2271_v30, %v1575_v22  ;;  %v1784_v50 = vmul.f32 %v2239_v32, %v1575_v22  ;;  %v1576_v31 = vsub.f32 %v1560_v27, %v1338_v25  ;;  %v2656_v13 = vpop.f32.mrb[36].mxu0  ;;  %v3990_v32 = vld [vmem:[#allocation8 + $0x30] sm:$0xff]  }
 0x284   : > { %v1690_v20 = vsub.f32 %v1658_v45, %v1674_v44  ;;  %v1818_v57 = vadd.f32 %v1802_v33, %v1786_v55  ;;  %v1675_v2 = vmul.f32 %v2276_v36, %v1578_v29  ;;  %v1787_v12 = vmul.f32 %v2244_v40, %v1578_v29  ;;  %v1351_v4 = vpop.f32.mrb[37].mxu0  ;;  %v3992_v27 = vld [vmem:[#allocation8 + $0x70] sm:$0xff]  }
 0x285   : > { %v1688_v15 = vsub.f32 %v1656_v48, %v1672_v5  ;;  %v1816_v24 = vadd.f32 %v1800_v10, %v1784_v50  ;;  %v1673_v11 = vmul.f32 %v2272_v54, %v1576_v31  ;;  %v1785_v43 = vmul.f32 %v2240_v18, %v1576_v31  ;;  %v2657_v0 = vpop.f32.mrb[38].mxu0  ;;  %v2688_v30 = vpop.f32.mrb[36].mxu1 }
 0x286   : > { %v1691_v44 = vsub.f32 %v1659_v28, %v1675_v2  ;;  %v1819_v36 = vadd.f32 %v1803_v49, %v1787_v12  ;;  %v1549_v26 = vsub.f32 %v3892_v8, %v2656_v13  ;;  %v1547_v40 = vsub.f32 %v3894_v51, %v1351_v4  ;;  %v1354_v33 = vpop.f32.mrb[39].mxu0  ;;  %v1496_v10 = vpop.f32.mrb[37].mxu1 }
 0x287   : > { %v1689_v63 = vsub.f32 %v1657_v6, %v1673_v11  ;;  %v1817_v54 = vadd.f32 %v1801_v42, %v1785_v43  ;;  %v1550_v17 = vsub.f32 %v3896_v23, %v2657_v0  ;;  %v1565_v18 = vsub.f32 %v2688_v30, %v3892_v8  ;;  %v2689_v45 = vpop.f32.mrb[38].mxu1 }
 0x288   : > { %v2309_v16 = vpack.c.bf16 %v1691_v44, %v1690_v20  ;;  %v2349_v46 = vpack.c.bf16 %v1819_v36, %v1818_v57  ;;  %v1499_v48 = vpop.f32.mrb[39].mxu1  ;;  %v2263_v2 = vunpack.c.l.bf16 %v3990_v32  ;;  %v2295_v59 = vunpack.c.l.bf16 %v3992_v27 }
 0x289   : > { %v2304_v21 = vpack.c.bf16 %v1689_v63, %v1688_v15  ;;  %v2344_v25 = vpack.c.bf16 %v1817_v54, %v1816_v24  ;;  %v1662_v22 = vmul.f32 %v2251_v37, %v1549_v26  ;;  %v2268_v6 = vunpack.c.h.bf16 %v3958_v58 }
 0x28a   : > { %2395 = vst [vmem:[%s4005_s23 + $0x8] sm:$0xff] %v2309_v16   ;;  %2403 = vst [vmem:[%s4005_s23 + $0x48] sm:$0xff] %v2349_v46   ;;  %v4216_v8 = vunpack.c.l.bf16 %v3926_v7  ;;  %v4217_v28 = vunpack.c.l.bf16 %v3930_v47  ;;  %v1581_v55 = vsub.f32 %v1565_v18, %v2656_v13  ;;  %v1548_v29 = vsub.f32 %v3898_v41, %v1354_v33 }
 0x28b   : > { %2305 = vst [vmem:[%s4005_s23] sm:$0xff] %v2304_v21   ;;  %2402 = vst [vmem:[%s4005_s23 + $0x40] sm:$0xff] %v2344_v25   ;;  %v4218_v42 = vunpack.c.l.bf16 %v3932_v56  ;;  %v1563_v50 = vsub.f32 %v1496_v10, %v3894_v51  ;;  %v1566_v31 = vsub.f32 %v2689_v45, %v3896_v23  ;;  %v1564_v20 = vsub.f32 %v1499_v48, %v3898_v41  ;;  %v2660_v12 = vpop.f32.mrb[40].mxu0 }
 0x28c   : > { %v1806_v57 = vmul.f32 %v4216_v8, %v1549_v26  ;;  %v1660_v49 = vmul.f32 %v4217_v28, %v1547_v40  ;;  %v4219_v15 = vunpack.c.h.bf16 %v3924_v35  ;;  %v4220_v11 = vunpack.c.h.bf16 %v3926_v7  ;;  %v1367_v36 = vpop.f32.mrb[41].mxu0 }
 0x28d   : > { %v1804_v5 = vmul.f32 %v4218_v42, %v1547_v40  ;;  %v4221_v43 = vmov %v4216_v8  ;;  %v1790_v44 = vmul.f32 %v2251_v37, %v1581_v55  ;;  %v1579_v26 = vsub.f32 %v1563_v50, %v1351_v4  ;;  %v2661_v41 = vpop.f32.mrb[42].mxu0  ;;  %v2692_v10 = vpop.f32.mrb[40].mxu1 }
 0x28e   : > { %v1663_v24 = vmul.f32 %v4219_v15, %v1550_v17  ;;  %v1807_v13 = vmul.f32 %v4220_v11, %v1550_v17  ;;  %v1678_v30 = vmul.f32 %v4221_v43, %v1581_v55  ;;  %v1582_v51 = vsub.f32 %v1566_v31, %v2657_v0  ;;  %v1370_v45 = vpop.f32.mrb[43].mxu0  ;;  %v1512_v16 = vpop.f32.mrb[41].mxu1 }
 0x28f   : > { %v1580_v40 = vsub.f32 %v1564_v20, %v1354_v33  ;;  %v1553_v23 = vsub.f32 %v3900_v14, %v2660_v12  ;;  %v1822_v54 = vadd.f32 %v1806_v57, %v1790_v44  ;;  %v1551_v18 = vsub.f32 %v3902_v53, %v1367_v36 }
 0x290   : > { %v1694_v63 = vsub.f32 %v1662_v22, %v1678_v30  ;;  %v1554_v17 = vsub.f32 %v3904_v62, %v2661_v41  ;;  %v4222_v46 = vmov %v4218_v42  ;;  %v4223_v37 = vmov %v4217_v28  ;;  %v2693_v22 = vpop.f32.mrb[42].mxu1 }
 0x291   : > { %v1676_v48 = vmul.f32 %v4222_v46, %v1579_v26  ;;  %v1788_v4 = vmul.f32 %v4223_v37, %v1579_v26  ;;  %v4224_v0 = vmov %v4220_v11  ;;  %v4225_v21 = vmov %v4219_v15  ;;  %v1515_v15 = vpop.f32.mrb[43].mxu1 }
 0x292   : > { %v1679_v33 = vmul.f32 %v4224_v0, %v1582_v51  ;;  %v1791_v25 = vmul.f32 %v4225_v21, %v1582_v51  ;;  %v4226_v8 = vunpack.c.h.bf16 %v3930_v47  ;;  %v4227_v28 = vunpack.c.h.bf16 %v3932_v56 }
 0x293   : > { %v1692_v11 = vsub.f32 %v1660_v49, %v1676_v48  ;;  %v1820_v7 = vadd.f32 %v1804_v5, %v1788_v4  ;;  %v4230_v26 = vunpack.c.l.bf16 %v3938_v19  ;;  %v4231_v37 = vunpack.c.l.bf16 %v3940_v60  ;;  %v2664_v5 = vpop.f32.mrb[44].mxu0 }
 0x294   : > { %v1661_v57 = vmul.f32 %v4226_v8, %v1548_v29  ;;  %v1805_v55 = vmul.f32 %v4227_v28, %v1548_v29  ;;  %v4228_v42 = vmov %v4227_v28  ;;  %v4229_v31 = vmov %v4226_v8  ;;  %v4057_v0 = vpop.f32.mrb[45].mxu0 }
 0x295   : > { %v1677_v50 = vmul.f32 %v4228_v42, %v1580_v40  ;;  %v1789_v20 = vmul.f32 %v4229_v31, %v1580_v40  ;;  %v1695_v43 = vsub.f32 %v1663_v24, %v1679_v33  ;;  %v1823_v35 = vadd.f32 %v1807_v13, %v1791_v25  ;;  %v2665_v21 = vpop.f32.mrb[46].mxu0  ;;  %v2696_v25 = vpop.f32.mrb[44].mxu1 }
 0x296   : > { %v1666_v51 = vmul.f32 %v4230_v26, %v1553_v23  ;;  %v2300_v29 = vunpack.c.h.bf16 %v3960_v9  ;;  %v1810_v47 = vmul.f32 %v4231_v37, %v1553_v23  ;;  %v4232_v40 = vunpack.c.l.bf16 %v3946_v61 }
 0x297   : > { %v1693_v30 = vsub.f32 %v1661_v57, %v1677_v50  ;;  %v1821_v44 = vadd.f32 %v1805_v55, %v1789_v20  ;;  %v2319_v46 = vpack.c.bf16 %v1695_v43, %v1694_v63  ;;  %v2359_v56 = vpack.c.bf16 %v1823_v35, %v1822_v54 }
 0x298   : > { %v1664_v49 = vmul.f32 %v4232_v40, %v1551_v18  ;;  %v1569_v48 = vsub.f32 %v2692_v10, %v3900_v14  ;;  %v1552_v4 = vsub.f32 %v3906_v52, %v1370_v45  ;;  %v1567_v63 = vsub.f32 %v1512_v16, %v3902_v53  ;;  %v1386_v16 = vpop.f32.mrb[47].mxu0 }
 0x299   : > { %v2314_v24 = vpack.c.bf16 %v1693_v30, %v1692_v11  ;;  %v2354_v13 = vpack.c.bf16 %v1821_v44, %v1820_v7  ;;  %2397 = vst [vmem:[%s4005_s23 + $0x18] sm:$0xff] %v2319_v46   ;;  %2405 = vst [vmem:[%s4005_s23 + $0x58] sm:$0xff] %v2359_v56   ;;  %v1570_v23 = vsub.f32 %v2693_v22, %v3904_v62  ;;  %v4233_v14 = vunpack.c.l.bf16 %v3948_v34  ;;  %v1528_v62 = vpop.f32.mrb[45].mxu1 }
 0x29a   : > { %v1568_v54 = vsub.f32 %v1515_v15, %v3906_v52  ;;  %v1557_v33 = vsub.f32 %v3908_v1, %v2664_v5  ;;  %v4234_v8 = vunpack.c.h.bf16 %v3938_v19  ;;  %v1585_v28 = vsub.f32 %v1569_v48, %v2660_v12  ;;  %v2697_v31 = vpop.f32.mrb[46].mxu1 }
 0x29b   : > { %2396 = vst [vmem:[%s4005_s23 + $0x10] sm:$0xff] %v2314_v24   ;;  %2404 = vst [vmem:[%s4005_s23 + $0x50] sm:$0xff] %v2354_v13   ;;  %v1808_v10 = vmul.f32 %v4233_v14, %v1551_v18  ;;  %v1555_v53 = vsub.f32 %v3910_v3, %v4057_v0  ;;  %v4235_v52 = vunpack.c.h.bf16 %v3940_v60  ;;  %v1583_v55 = vsub.f32 %v1567_v63, %v1367_v36  ;;  %v1531_v30 = vpop.f32.mrb[47].mxu1 }
 0x29c   : > { %v1667_v57 = vmul.f32 %v4234_v8, %v1554_v17  ;;  %v1586_v42 = vsub.f32 %v1570_v23, %v2661_v41  ;;  %v1584_v50 = vsub.f32 %v1568_v54, %v1370_v45  ;;  %v4236_v20 = vmov %v4231_v37 }
 0x29d   : > { %v1811_v22 = vmul.f32 %v4235_v52, %v1554_v17  ;;  %v1682_v15 = vmul.f32 %v4236_v20, %v1585_v28  ;;  %v4237_v18 = vmov %v4230_v26  ;;  %v4238_v12 = vunpack.c.h.bf16 %v3946_v61 }
 0x29e   : > { %v1794_v11 = vmul.f32 %v4237_v18, %v1585_v28  ;;  %v4239_v43 = vunpack.c.h.bf16 %v3948_v34  ;;  %v4240_v44 = vmov %v4233_v14  ;;  %v4241_v36 = vmov %v4232_v40 }
 0x29f   : > { %v1665_v7 = vmul.f32 %v4238_v12, %v1552_v4  ;;  %v1680_v17 = vmul.f32 %v4240_v44, %v1583_v55  ;;  %v1792_v41 = vmul.f32 %v4241_v36, %v1583_v55  ;;  %v4242_v45 = vmov %v4235_v52 }
 0x2a0   : > { %v1809_v35 = vmul.f32 %v4239_v43, %v1552_v4  ;;  %v1683_v26 = vmul.f32 %v4242_v45, %v1586_v42  ;;  %v4243_v46 = vmov %v4234_v8  ;;  %v1698_v37 = vsub.f32 %v1666_v51, %v1682_v15 }
 0x2a1   : > { %v1795_v56 = vmul.f32 %v4243_v46, %v1586_v42  ;;  %v1826_v40 = vadd.f32 %v1810_v47, %v1794_v11  ;;  %v4244_v24 = vmov %v4239_v43  ;;  %v4245_v48 = vmov %v4238_v12 }
 0x2a2   : > { %v1681_v13 = vmul.f32 %v4244_v24, %v1584_v50  ;;  %v1793_v4 = vmul.f32 %v4245_v48, %v1584_v50  ;;  %v1696_v63 = vsub.f32 %v1664_v49, %v1680_v17  ;;  %v1824_v23 = vadd.f32 %v1808_v10, %v1792_v41 }
 0x2a3   : > { %v1699_v54 = vsub.f32 %v1667_v57, %v1683_v26  ;;  %v1827_v14 = vadd.f32 %v1811_v22, %v1795_v56  ;;  %v1558_v28 = vsub.f32 %v3912_v38, %v2665_v21  ;;  %v2264_v19 = vunpack.c.h.bf16 %v3990_v32 }
 0x2a4   : > { %v1697_v8 = vsub.f32 %v1665_v7, %v1681_v13  ;;  %v1825_v60 = vadd.f32 %v1809_v35, %v1793_v4  ;;  %v1573_v47 = vsub.f32 %v2696_v25, %v3908_v1  ;;  %v1556_v61 = vsub.f32 %v3918_v39, %v1386_v16 }
 0x2a5   : > { %v2329_v51 = vpack.c.bf16 %v1699_v54, %v1698_v37  ;;  %v2369_v34 = vpack.c.bf16 %v1827_v14, %v1826_v40  ;;  %v4246_v10 = vunpack.c.l.bf16 %v3958_v58  ;;  %v2296_v22 = vunpack.c.h.bf16 %v3992_v27 }
 0x2a6   : > { %v2324_v49 = vpack.c.bf16 %v1697_v8, %v1696_v63  ;;  %v2364_v52 = vpack.c.bf16 %v1825_v60, %v1824_v23  ;;  %v4247_v55 = vunpack.c.l.bf16 %v3960_v9  ;;  %v1668_v50 = vmul.f32 %v2263_v2, %v1555_v53 }
 0x2a7   : > { %v1670_v57 = vmul.f32 %v4246_v10, %v1557_v33  ;;  %2399 = vst [vmem:[%s4005_s23 + $0x28] sm:$0xff] %v2329_v51   ;;  %2407 = vst [vmem:[%s4005_s23 + $0x68] sm:$0xff] %v2369_v34   ;;  %v1589_v20 = vsub.f32 %v1573_v47, %v2664_v5  ;;  %v1571_v1 = vsub.f32 %v1528_v62, %v3910_v3  ;;  %v4249_v3 = vmov %v4246_v10 }
 0x2a8   : > { %v1814_v42 = vmul.f32 %v4247_v55, %v1557_v33  ;;  %2398 = vst [vmem:[%s4005_s23 + $0x20] sm:$0xff] %v2324_v49   ;;  %2406 = vst [vmem:[%s4005_s23 + $0x60] sm:$0xff] %v2364_v52   ;;  %v1812_v25 = vmul.f32 %v2295_v59, %v1555_v53  ;;  %v1671_v15 = vmul.f32 %v2268_v6, %v1558_v28  ;;  %v4248_v12 = vmov %v4247_v55 }
 0x2a9   : > { %v1574_v18 = vsub.f32 %v2697_v31, %v3912_v38  ;;  %v1572_v11 = vsub.f32 %v1531_v30, %v3918_v39  ;;  %v1815_v33 = vmul.f32 %v2300_v29, %v1558_v28  ;;  %v1686_v5 = vmul.f32 %v4248_v12, %v1589_v20 }
 0x2aa   : > { %v1798_v62 = vmul.f32 %v4249_v3, %v1589_v20  ;;  %v1587_v53 = vsub.f32 %v1571_v1, %v4057_v0  ;;  %v1669_v7 = vmul.f32 %v2264_v19, %v1556_v61  ;;  %v1813_v43 = vmul.f32 %v2296_v22, %v1556_v61 }
 0x2ab   : > { %v1590_v35 = vsub.f32 %v1574_v18, %v2665_v21  ;;  %v1588_v44 = vsub.f32 %v1572_v11, %v1386_v16  ;;  %v1702_v38 = vsub.f32 %v1670_v57, %v1686_v5 }
 0x2ac   : > { %v1830_v31 = vadd.f32 %v1814_v42, %v1798_v62  ;;  %v1684_v39 = vmul.f32 %v2295_v59, %v1587_v53  ;;  %v1796_v30 = vmul.f32 %v2263_v2, %v1587_v53 }
 0x2ad   : > { %v1687_v17 = vmul.f32 %v2300_v29, %v1590_v35  ;;  %v1799_v36 = vmul.f32 %v2268_v6, %v1590_v35  ;;  %v1685_v41 = vmul.f32 %v2296_v22, %v1588_v44  ;;  %v1797_v0 = vmul.f32 %v2264_v19, %v1588_v44 }
 0x2ae   : > { %v1700_v21 = vsub.f32 %v1668_v50, %v1684_v39  ;;  %v1828_v27 = vadd.f32 %v1812_v25, %v1796_v30 }
 0x2af   : > { %v1703_v59 = vsub.f32 %v1671_v15, %v1687_v17  ;;  %v1831_v32 = vadd.f32 %v1815_v33, %v1799_v36  ;;  %v1701_v2 = vsub.f32 %v1669_v7, %v1685_v41  ;;  %v1829_v9 = vadd.f32 %v1813_v43, %v1797_v0 }
 0x2b1   : > { %v2339_v58 = vpack.c.bf16 %v1703_v59, %v1702_v38  ;;  %v2379_v6 = vpack.c.bf16 %v1831_v32, %v1830_v31  ;;  %v2334_v29 = vpack.c.bf16 %v1701_v2, %v1700_v21  ;;  %v2374_v16 = vpack.c.bf16 %v1829_v9, %v1828_v27 }
 0x2b3   : > { %2401 = vst [vmem:[%s4005_s23 + $0x38] sm:$0xff] %v2339_v58   ;;  %2409 = vst [vmem:[%s4005_s23 + $0x78] sm:$0xff] %v2379_v6  }
 0x2b4   : > { %2400 = vst [vmem:[%s4005_s23 + $0x30] sm:$0xff] %v2334_v29   ;;  %2408 = vst [vmem:[%s4005_s23 + $0x70] sm:$0xff] %v2374_v16  }
 0x2b5   : > { %2970 = shalt.err (!%p2967_p0)
}
 0x2b6   : > { %s2971_s28 = scalar_lea.hbm %s4137_s24, 2048  ;;  %s2975_s12 = scalar_lea.hbm %s4196_s4, 4096 }
 0x2b7   : > { %p2972_p4 = scmp.ne.s32.totalorder %s4137_s24, %s2971_s28  ;;  %p2976_p12 = scmp.lt.u32.totalorder %s4137_s24, %s4196_s4 }
 0x2b8   : > { %p2977_p1 = scmp.lt.u32.totalorder %s2975_s12, %s2971_s28  ;;  %p2979_p13 = scmp.lt.u32.totalorder %s2971_s28, %s4137_s24 }
 0x2b9   : > { %p2973_p2 = pnand %p2972_p4, %p3243_p10 }
 0x2ba   : > { %p2978_p11 = por %p2977_p1, %p2976_p12 }
 0x2bb   : > { %p2974_p8 = pneg %p2973_p2 }
 0x2bc   : > { %p2980_p6 = por %p2979_p13, %p2978_p11 }
 0x2be   : > { %p2981_p3 = pnand %p2980_p6, %p2974_p8 }
 0x2c0   : > { %2984 = shalt.err (!%p2981_p3)
}
 0x2c1   : > { %s3056_s23 = smov 64   ;;  %s3057_s25 = smov 4  }
 0x2c2   : > { %2712 = dma.vmem_to_hbm [thread:$0]  (%p3243_p10), %s4139_s27, 2048, %s4137_s24, %s1914_s18, %s3056_s23, %s3056_s23, %s3057_s25  }
 0x2c3 PF: > { %s4250_s5 = sld [smem:[#allocation15_spill]]  ;;  %s1944_s7 = sand.u32 1, %s3027_s15  }
 0x2c4   : > { %p4252_p7 = scmp.ge.s32.totalorder %s3047_s20, 2  ;;  %s1945_s29 = scalar_lea.sflag [#allocation4], %s1944_s7 }
 0x2c9   : > { %p4251_p5 = scmp.ne.s32.totalorder %s4250_s5, 0 }
 0x2cb   : > { %p2729_p9 = pnand %p4252_p7, %p4251_p5 }
 0x2cd   : > { %3022 = dma.done.wait (!%p2729_p9), %s1945_s29, 2048  }
 0x2ce   : > { %3024 = vsyncadd (!%p2729_p9), %s1945_s29, 4294965248  ;;  %s22_s20 = sadd.s32 1, %s3047_s20   ;;  %s4253_s15 = smov %s3031_s16 }
 0x2cf   : > { %p19_p0 = scmp.ge.s32.totalorder %s22_s20, 4   ;;  %s4254_s16 = smov %s3035_s17 }
 0x2d0   : > { %s4255_s17 = smov %s3255_s13  ;;  %s4256_s18 = smov %s3043_s19 }
 0x2d1   : > { %s4257_s19 = smov %s4259_s30  ;;  %21 = sbr.rel (!%p19_p0) target bundleno = 8 (0x8), region = 100 }
 0x2d8   :  { %1950 = vsyncpa [#allocation3], 1 }
 0x2d9   :  { %1952 = vsyncpa [#allocation3 + $0x1], 1 }
 0x2da   :  { %1953 = vsyncpa [#allocation6], 1 }
 0x2db   :  { %1954 = vsyncpa [#allocation9], 1 }
 0x2dc   :  { %1955 = vsyncpa [#allocation4], 1 }
 0x2dd   :  { %1957 = vsyncpa [#allocation4 + $0x1], 1 }

// kernel: tpu_custom_call.1
= control target key start
LH: loop header
LB: loop body
LE: loop exit
PB: predicated region body
PF: predicated region fallthrough
CT: control target
= control target key end

     0   :  { %9 = vsyncpa [#allocation3], 0  ;;  %s4192_s0 = inlined_call_operand.hbm [shape: bf16[2,2,128,128], index: 0, kind: input, shape index: {}]   ;;  %s4193_s1 = inlined_call_operand.hbm [shape: bf16[2,128,128], index: 1, kind: input, shape index: {}]   ;;  %s4194_s2 = inlined_call_operand.hbm [shape: bf16[2,128,128], index: 2, kind: input, shape index: {}]   ;;  %s4195_s3 = inlined_call_operand.hbm [shape: bf16[2,128,128], index: 3, kind: input, shape index: {}]   ;;  %s4196_s4 = inlined_call_operand.hbm [shape: bf16[2,2,128,128], index: 4, kind: output, shape index: {}]  }
   0x1   :  { %11 = vsyncpa [#allocation3 + $0x1], 0 }
   0x2   :  { %12 = vsyncpa [#allocation6], 0 }
   0x3   :  { %13 = vsyncpa [#allocation9], 0 }
   0x4   :  { %14 = vsyncpa [#allocation4], 0 }
   0x5   :  { %16 = vsyncpa [#allocation4 + $0x1], 0  ;;  %s3083_s15 = smov 0   ;;  %s3085_s16 = smov 0  }
   0x6   :  { %s3087_s17 = smov 0   ;;  %s3089_s18 = smov 0  }
   0x7   :  { %s3091_s19 = smov 0   ;;  %s3093_s20 = smov 0  }
   0x8 LB: > { %s2046_s21 = sadd.s32 4294967295, %s3047_s20   ;;  %s2047_s22 = sadd.s32 4294967294, %s3047_s20   ;;  %s3047_s20 = sphi %s3093_s20, %s22_s20   ;;  %s3043_s19 = sphi %s3091_s19, %s4257_s19   ;;  %s3039_s18 = sphi %s3089_s18, %s4256_s18   ;;  %s3035_s17 = sphi %s3087_s17, %s4255_s17   ;;  %s3031_s16 = sphi %s3085_s16, %s4254_s16   ;;  %s3027_s15 = sphi %s3083_s15, %s4253_s15  }
   0x9   : > { %p54_p0 = scmp.ne.s32.totalorder %s3031_s16, %s3027_s15  ;;  %p3117_p1 = scmp.eq.s32.totalorder %s2046_s21, 0 }
   0xa   : > { %p3121_p2 = scmp.eq.s32.totalorder %s2046_s21, 1  ;;  %p159_p3 = scmp.eq.s32.totalorder %s2047_s22, 1 }
   0xb   : > { %s4202_s23 = scalar_select %p3117_p1, 1, 0 }
   0xc   : > { %s4203_s24 = scalar_select %p3121_p2, 1, 0 }
   0xd   : > { %p3127_p4 = por %p3117_p1, %p54_p0  ;;  %p2048_p5 = scmp.ge.s32.totalorder %s3047_s20, 1 }
   0xe   : > { %p3132_p6 = por %p159_p3, %p54_p0  ;;  %p166_p7 = scmp.lt.s32.totalorder %s3047_s20, 3 }
   0xf   : > { %s4204_s25 = scalar_select %p3127_p4, 1, 0 }
  0x10   : > { %s4205_s26 = scalar_select %p3132_p6, 1, 0 }
  0x11   : > { %p3137_p8 = pnand %p2048_p5, %p166_p7  ;;  %s3049_s28 = smov [#allocation5]  }
  0x12   : > { %4206 = sst [smem:[#allocation15_spill]] %s4205_s26  ;;  %s181_s29 = sshll.u32 %s3049_s28, 4  ;;  %s3141_s29 = int_to_ptr.vmem [resolvable:$true] %s181_s29 }
  0x13   : > { %s4207_s27 = scalar_select %p3137_p8, 1, 0 }
  0x14   : > { %p2714_p9 = pneg %p3137_p8  ;;  %s3050_s5 = smov [#allocation7]  }
  0x15   : > { %s194_s6 = sshll.u32 %s3050_s5, 4  ;;  %s3051_s7 = smov [#allocation8]   ;;  %s3152_s6 = int_to_ptr.vmem [resolvable:$true] %s194_s6 }
  0x16   : > { %p3148_p11 = pnand %p2714_p9, %p3117_p1  ;;  %s3154_s8 = sshll.u32 %s3051_s7, 4  ;;  %s211_s8 = int_to_ptr.vmem [resolvable:$true] %s3154_s8 }
  0x17   : > { %s2843_s11 = scalar_lea.hbm %s4193_s1, 2048 }
  0x18   : > { %p2844_p12 = scmp.ne.s32.totalorder %s4193_s1, %s2843_s11  ;;  %p3164_p13 = pneg %p3148_p11 }
  0x19   : > { %p2850_p5 = scmp.lt.u32.totalorder %s2843_s11, %s4193_s1 }
  0x1a   : > { %p2846_p0 = pnand %p3164_p13, %p2844_p12 }
  0x1c   : > { %p2847_p3 = pneg %p2846_p0 }
  0x1e   : > { %p2852_p7 = pnand %p2850_p5, %p2847_p3 }
  0x20   : > { %2855 = shalt.err (!%p2852_p7)
}
  0x21   : > { %s2856_s28 = scalar_lea.vmem %s3141_s29, 2048  ;;  %p2864_p1 = scmp.lt.s32.totalorder %s3141_s29, %s3141_s29 }
  0x22   : > { %p2857_p9 = scmp.ne.s32.totalorder %s3141_s29, %s2856_s28  ;;  %p2865_p4 = scmp.lt.s32.totalorder %s2856_s28, %s2856_s28 }
  0x24   : > { %p2859_p10 = pnand %p2857_p9, %p3164_p13  ;;  %p2866_p12 = por %p2865_p4, %p2864_p1 }
  0x26   : > { %p2860_p6 = pneg %p2859_p10 }
  0x28   : > { %p2867_p0 = pnand %p2866_p12, %p2860_p6 }
  0x2a   : > { %2870 = shalt.err (!%p2867_p0)
}
  0x2b   : > { %s3052_s5 = smov 64   ;;  %s3053_s7 = smov 4  }
  0x2c   : > { %2717 = dma.hbm_to_vmem [thread:$0]  (!%p3148_p11), %s4193_s1, 2048, %s3141_s29, [#allocation6], %s3052_s5, %s3052_s5, %s3053_s7  }
  0x2d   : > { %s2871_s13 = scalar_lea.hbm %s4194_s2, 2048 }
  0x2e   : > { %p2872_p1 = scmp.ne.s32.totalorder %s4194_s2, %s2871_s13  ;;  %p2878_p10 = scmp.lt.u32.totalorder %s2871_s13, %s4194_s2 }
  0x30   : > { %p2874_p4 = pnand %p2872_p1, %p3164_p13 }
  0x32   : > { %p2875_p6 = pneg %p2874_p4 }
  0x34   : > { %p2880_p3 = pnand %p2878_p10, %p2875_p6 }
  0x36   : > { %2883 = shalt.err (!%p2880_p3)
}
  0x37   : > { %s2884_s29 = scalar_lea.vmem %s3152_s6, 2048  ;;  %p2892_p12 = scmp.lt.s32.totalorder %s3152_s6, %s3152_s6 }
  0x38   : > { %p2885_p5 = scmp.ne.s32.totalorder %s3152_s6, %s2884_s29  ;;  %p2893_p0 = scmp.lt.s32.totalorder %s2884_s29, %s2884_s29 }
  0x3a   : > { %p2887_p7 = pnand %p2885_p5, %p3164_p13  ;;  %p2894_p1 = por %p2893_p0, %p2892_p12 }
  0x3c   : > { %p2888_p9 = pneg %p2887_p7 }
  0x3e   : > { %p2895_p4 = pnand %p2894_p1, %p2888_p9 }
  0x40   : > { %2898 = shalt.err (!%p2895_p4)
}
  0x41   : > { %2720 = dma.hbm_to_vmem [thread:$0]  (!%p3148_p11), %s4194_s2, 2048, %s3152_s6, [#allocation6], %s3052_s5, %s3052_s5, %s3053_s7  }
  0x42   : > { %s2899_s12 = scalar_lea.hbm %s4195_s3, 2048 }
  0x43   : > { %p2900_p6 = scmp.ne.s32.totalorder %s4195_s3, %s2899_s12  ;;  %p2906_p5 = scmp.lt.u32.totalorder %s2899_s12, %s4195_s3 }
  0x45   : > { %p2902_p10 = pnand %p2900_p6, %p3164_p13 }
  0x47   : > { %p2903_p3 = pneg %p2902_p10 }
  0x49   : > { %p2908_p7 = pnand %p2906_p5, %p2903_p3 }
  0x4b   : > { %2911 = shalt.err (!%p2908_p7)
}
  0x4c   : > { %s2912_s29 = scalar_lea.vmem %s211_s8, 2048  ;;  %p2920_p1 = scmp.lt.s32.totalorder %s211_s8, %s211_s8 }
  0x4d   : > { %p2913_p9 = scmp.ne.s32.totalorder %s211_s8, %s2912_s29  ;;  %p2921_p4 = scmp.lt.s32.totalorder %s2912_s29, %s2912_s29 }
  0x4f   : > { %p2915_p12 = pnand %p2913_p9, %p3164_p13  ;;  %p2922_p8 = por %p2921_p4, %p2920_p1 }
  0x51   : > { %p2916_p0 = pneg %p2915_p12 }
  0x53   : > { %p2923_p2 = pnand %p2922_p8, %p2916_p0 }
  0x55   : > { %2926 = shalt.err (!%p2923_p2)
}
  0x56   : > { %2723 = dma.hbm_to_vmem [thread:$0]  (!%p3148_p11), %s4195_s3, 2048, %s211_s8, [#allocation9], %s3052_s5, %s3052_s5, %s3053_s7  }
  0x57   : > { %s41_s14 = sadd.s32 1, %s3035_s17  ;;  %s34_s30 = sadd.s32 1, %s3043_s19 }
  0x58   : > { %p48_p2 = scmp.ne.s32.totalorder %s3035_s17, %s3031_s16  ;;  %p36_p8 = scmp.ge.s32.totalorder %s34_s30, 2 }
  0x59   : > { %p49_p13 = scmp.eq.s32.totalorder %s3047_s20, 0  ;;  %p4210_p6 = scmp.ne.s32.totalorder %s4203_s24, 0 }
  0x5a   : > { %p2735_p3 = scmp.lt.s32.totalorder %s3047_s20, 2  ;;  %s4259_s30 = smov (%p36_p8, %s34_s30), 0 }
  0x5b   : > { %p3243_p10 = por %p4210_p6, %p48_p2  ;;  %p50_p5 = por %p49_p13, %p48_p2 }
  0x5c   : > { %s224_s10 = sand.u32 1, %s3035_s17   ;;  %s38_s11 = ssub.s32 %s3043_s19, %s4259_s30 }
  0x5d   : > { %p39_p7 = scmp.eq.s32.totalorder %s38_s11, 0  ;;  %s2053_s8 = sshll.u32 %s224_s10, 7 }
  0x5e   : > { %s2203_s12 = sshll.u32 %s3043_s19, 11  ;;  %s228_s28 = scalar_lea.vmem [#allocation2], %s2053_s8 }
  0x5f   : > { %s3255_s13 = scalar_select %p39_p7, %s3035_s17, %s41_s14  }
  0x60   : > { %s3260_s24 = scalar_lea.hbm %s4192_s0, %s2203_s12  ;;  %s235_s29 = sshll.u32 %s228_s28, 4  ;;  %s3262_s29 = int_to_ptr.vmem [resolvable:$true] %s235_s29 }
  0x61   : > { %p3266_p11 = pnand %p2735_p3, %p50_p5  ;;  %s3270_s26 = scalar_lea.sflag [#allocation3], %s224_s10 }
  0x62   : > { %s2927_s14 = scalar_lea.hbm %s3260_s24, 2048  ;;  %s2932_s12 = scalar_lea.hbm %s4192_s0, 4096 }
  0x63   : > { %p2928_p9 = scmp.ne.s32.totalorder %s3260_s24, %s2927_s14  ;;  %p2929_p12 = pneg %p3266_p11 }
  0x64   : > { %p2933_p4 = scmp.lt.u32.totalorder %s3260_s24, %s4192_s0  ;;  %p2934_p2 = scmp.lt.u32.totalorder %s2932_s12, %s2927_s14 }
  0x65   : > { %p2930_p0 = pnand %p2929_p12, %p2928_p9  ;;  %p2936_p13 = scmp.lt.u32.totalorder %s2927_s14, %s3260_s24 }
  0x66   : > { %p2935_p8 = por %p2934_p2, %p2933_p4 }
  0x67   : > { %p2931_p1 = pneg %p2930_p0 }
  0x68   : > { %p2937_p6 = por %p2936_p13, %p2935_p8 }
  0x6a   : > { %p2938_p3 = pnand %p2937_p6, %p2931_p1 }
  0x6c   : > { %2941 = shalt.err (!%p2938_p3)
}
  0x6d   : > { %s2942_s10 = scalar_lea.vmem %s3262_s29, 2048  ;;  %s3054_s28 = smov [#allocation2]  }
  0x6e   : > { %p2943_p5 = scmp.ne.s32.totalorder %s3262_s29, %s2942_s10  ;;  %s2947_s11 = sshll.u32 %s3054_s28, 4  ;;  %s2948_s11 = int_to_ptr.vmem [resolvable:$false] %s2947_s11 }
  0x6f   : > { %s2949_s8 = scalar_lea.vmem %s2948_s11, 4096  ;;  %p2950_p0 = scmp.lt.s32.totalorder %s3262_s29, %s2948_s11 }
  0x70   : > { %p2945_p7 = pnand %p2943_p5, %p2929_p12  ;;  %p2951_p4 = scmp.lt.s32.totalorder %s2949_s8, %s2942_s10 }
  0x72   : > { %p2946_p9 = pneg %p2945_p7  ;;  %p2952_p2 = por %p2951_p4, %p2950_p0 }
  0x74   : > { %p2953_p8 = pnand %p2952_p2, %p2946_p9 }
  0x76   : > { %2956 = shalt.err (!%p2953_p8)
}
  0x77   : > { %2727 = dma.hbm_to_vmem [thread:$0]  (!%p3266_p11), %s3260_s24, 2048, %s3262_s29, %s3270_s26, %s3052_s5, %s3052_s5, %s3053_s7  }
  0x78   : > { %p4213_p12 = scmp.ne.s32.totalorder %s4207_s27, 0 }
  0x79   : > { %s3304_s14 = sand.u32 (!%p4213_p12), 1, %s3031_s16   ;;  %p4214_p1 = scmp.ne.s32.totalorder (!%p4213_p12), %s4204_s25, 0 }
  0x7a   : > { %247 = sbr.rel (%p4213_p12) target bundleno = 707 (0x2c3), region = 36  ;;  %s2057_s12 = sshll.u32 (!%p4213_p12), %s3304_s14, 7 }
  0x7b   : > { %s250_s21 = scalar_lea.sflag (!%p4213_p12), [#allocation3], %s3304_s14  ;;  %s3310_s6 = scalar_lea.vmem (!%p4213_p12), [#allocation2], %s2057_s12 }
  0x81   : > { %3010 = dma.done.wait (%p4214_p1), %s250_s21, 2048  }
  0x82   : > { %3012 = vsyncadd (%p4214_p1), %s250_s21, 4294965248  ;;  %p4215_p11 = scmp.ne.s32.totalorder %s4202_s23, 0 }
  0x84   : > { %3014 = dma.done.wait (%p4215_p11), [#allocation6], 4096  }
  0x85   : > { %3016 = vsyncadd (%p4215_p11), [#allocation6], 4294963200 }
  0x86   : > { %3018 = dma.done.wait (%p4215_p11), [#allocation9], 2048  }
  0x87   : > { %3020 = vsyncadd (%p4215_p11), [#allocation9], 4294965248  ;;  %v3325_v0 = vld [vmem:[%s3310_s6] sm:$0xf]  ;;  %v3328_v1 = vld [vmem:[%s3310_s6 + $0x4] sm:$0xf] }
  0x88   : > { %v3331_v2 = vld [vmem:[%s3310_s6 + $0x40] sm:$0xf]  ;;  %v2086_v3 = vcombine.low %v3325_v0, %v3328_v1  ;;  %v3336_v4 = vld [vmem:[%s3310_s6 + $0x44] sm:$0xf]  ;;  %v3339_v5 = vld [vmem:[%s3310_s6 + $0x8] sm:$0xf] }
  0x89   : > { %v3342_v6 = vld [vmem:[%s3310_s6 + $0xc] sm:$0xf]  ;;  %v2102_v7 = vcombine.low %v3331_v2, %v3336_v4  ;;  %v3349_v9 = vld [vmem:[%s3310_s6 + $0x48] sm:$0xf]  ;;  %v3355_v11 = vld [vmem:[%s3310_s6 + $0x10] sm:$0xf]  ;;  %v327_v52 = vadd.bf16 %v3331_v2, %v3325_v0  ;;  %v328_v53 = vadd.bf16 %v3336_v4, %v3328_v1 }
  0x8a   : > { %v2087_v8 = vcombine.low %v3339_v5, %v3342_v6  ;;  %v3352_v10 = vld [vmem:[%s3310_s6 + $0x4c] sm:$0xf]  ;;  %2506 = vmatprep.subr.bf16.mxu0 %v2086_v3  ;;  %v3360_v13 = vld [vmem:[%s3310_s6 + $0x14] sm:$0xf]  ;;  %v3363_v14 = vld [vmem:[%s3310_s6 + $0x50] sm:$0xf]  ;;  %v329_v60 = vadd.bf16 %v3349_v9, %v3339_v5 }
  0x8b   : > { %v2103_v12 = vcombine.low %v3349_v9, %v3352_v10  ;;  %v3366_v15 = vld [vmem:[%s3310_s6 + $0x54] sm:$0xf]  ;;  %2538 = vmatprep.subr.bf16.mxu1 %v2102_v7  ;;  %2507 = vmatpush3.bf16.msra.mxu0 %v2086_v3  ;;  %v2088_v16 = vcombine.low %v3355_v11, %v3360_v13  ;;  %v3373_v18 = vld [vmem:[%s3310_s6 + $0x18] sm:$0xf]  ;;  %v3376_v19 = vld [vmem:[%s3310_s6 + $0x1c] sm:$0xf]  ;;  %v330_v61 = vadd.bf16 %v3352_v10, %v3342_v6 }
  0x8c   : > { %2539 = vmatpush3.bf16.msra.mxu1 %v2102_v7  ;;  %2508 = vmatprep.subr.bf16.mxu0 %v2087_v8  ;;  %v2104_v17 = vcombine.low %v3363_v14, %v3366_v15  ;;  %v3379_v20 = vld [vmem:[%s3310_s6 + $0x58] sm:$0xf]  ;;  %v3382_v21 = vld [vmem:[%s3310_s6 + $0x5c] sm:$0xf]  ;;  %v2089_v22 = vcombine.low %v3373_v18, %v3376_v19  ;;  %v3387_v23 = vld [vmem:[%s3310_s6 + $0x20] sm:$0xf]  ;;  %v2118_v0 = vcombine.low %v327_v52, %v328_v53 }
  0x8d   : > { %2540 = vmatprep.subr.bf16.mxu1 %v2103_v12  ;;  %v3390_v24 = vld [vmem:[%s3310_s6 + $0x24] sm:$0xf]  ;;  %v2105_v25 = vcombine.low %v3379_v20, %v3382_v21  ;;  %v3395_v26 = vld [vmem:[%s3310_s6 + $0x60] sm:$0xf]  ;;  %v3417_v36 = vld [vmem:[%s3310_s6 + $0x28] sm:$0xf] }
  0x8e   : > { %v3398_v27 = vld [vmem:[%s3310_s6 + $0x64] sm:$0xf]  ;;  %v3400_v28 = vld [vmem:[#allocation5] sm:$0xf]  ;;  %v2090_v34 = vcombine.low %v3387_v23, %v3390_v24  ;;  %v3420_v37 = vld [vmem:[%s3310_s6 + $0x2c] sm:$0xf] }
  0x8f   : > { %2509 = vmatpush3.bf16.msra.mxu0 %v2087_v8  ;;  %v3402_v29 = vld [vmem:[#allocation5 + $0x4] sm:$0xf]  ;;  %v3404_v30 = vld [vmem:[#allocation5 + $0x40] sm:$0xf]  ;;  %v2106_v35 = vcombine.low %v3395_v26, %v3398_v27  ;;  %v3423_v38 = vld [vmem:[%s3310_s6 + $0x68] sm:$0xf]  ;;  %v2091_v40 = vcombine.low %v3417_v36, %v3420_v37  ;;  %v2119_v8 = vcombine.low %v329_v60, %v330_v61  ;;  %v335_v60 = vadd.bf16 %v3395_v26, %v3387_v23 }
  0x90   : > { %2541 = vmatpush3.bf16.msra.mxu1 %v2103_v12  ;;  %2510 = vmatprep.subr.bf16.mxu0 %v2088_v16  ;;  %v3406_v31 = vld [vmem:[#allocation5 + $0x44] sm:$0xf]  ;;  %v2078_v32 = vcombine.low %v3400_v28, %v3402_v29  ;;  %v3426_v39 = vld [vmem:[%s3310_s6 + $0x6c] sm:$0xf]  ;;  %v3433_v42 = vld [vmem:[%s3310_s6 + $0x30] sm:$0xf]  ;;  %v336_v61 = vadd.bf16 %v3398_v27, %v3390_v24 }
  0x91   : > { %2542 = vmatprep.subr.bf16.mxu1 %v2104_v17  ;;  %v2094_v33 = vcombine.low %v3404_v30, %v3406_v31  ;;  %v2107_v41 = vcombine.low %v3423_v38, %v3426_v39  ;;  %v3436_v43 = vld [vmem:[%s3310_s6 + $0x34] sm:$0xf]  ;;  %v3439_v44 = vld [vmem:[%s3310_s6 + $0x70] sm:$0xf]  ;;  %v3449_v48 = vld [vmem:[%s3310_s6 + $0x38] sm:$0xf] }
  0x92   : > { %2522 = vmatprep.mubr.bf16.mxu0 %v2078_v32  ;;  %v3442_v45 = vld [vmem:[%s3310_s6 + $0x74] sm:$0xf]  ;;  %v2092_v46 = vcombine.low %v3433_v42, %v3436_v43  ;;  %v3452_v49 = vld [vmem:[%s3310_s6 + $0x3c] sm:$0xf]  ;;  %v3455_v50 = vld [vmem:[%s3310_s6 + $0x78] sm:$0xf]  ;;  %v2122_v27 = vcombine.low %v335_v60, %v336_v61 }
  0x93   : > { %2511 = vmatpush3.bf16.msra.mxu0 %v2088_v16  ;;  %2554 = vmatprep.mubr.bf16.mxu1 %v2094_v33  ;;  %v2108_v47 = vcombine.low %v3439_v44, %v3442_v45  ;;  %v3458_v51 = vld [vmem:[%s3310_s6 + $0x7c] sm:$0xf]  ;;  %v2093_v54 = vcombine.low %v3449_v48, %v3452_v49  ;;  %v3468_v56 = vld [vmem:[#allocation7] sm:$0xf]  ;;  %v3470_v57 = vld [vmem:[#allocation7 + $0x4] sm:$0xf]  ;;  %v331_v16 = vadd.bf16 %v3363_v14, %v3355_v11 }
  0x94   : > { %2543 = vmatpush3.bf16.msra.mxu1 %v2104_v17  ;;  %2512 = vmatprep.subr.bf16.mxu0 %v2089_v22  ;;  %v2109_v55 = vcombine.low %v3455_v50, %v3458_v51  ;;  %v3472_v58 = vld [vmem:[#allocation5 + $0x8] sm:$0xf]  ;;  %v3474_v59 = vld [vmem:[#allocation5 + $0xc] sm:$0xf]  ;;  %v3484_v1 = vld [vmem:[#allocation5 + $0x10] sm:$0xf]  ;;  %v2126_v3 = vcombine.low %v3468_v56, %v3470_v57  ;;  %v332_v17 = vadd.bf16 %v3366_v15, %v3360_v13 }
  0x95   : > { %2544 = vmatprep.subr.bf16.mxu1 %v2105_v25  ;;  %v3480_v62 = vld [vmem:[#allocation5 + $0x48] sm:$0xf]  ;;  %v3482_v63 = vld [vmem:[#allocation5 + $0x4c] sm:$0xf]  ;;  %v3486_v2 = vld [vmem:[#allocation5 + $0x14] sm:$0xf]  ;;  %v2079_v4 = vcombine.low %v3472_v58, %v3474_v59 }
  0x96   : > { %v3492_v5 = vld [vmem:[#allocation5 + $0x50] sm:$0xf]  ;;  %v3494_v6 = vld [vmem:[#allocation5 + $0x54] sm:$0xf]  ;;  %v2095_v7 = vcombine.low %v3480_v62, %v3482_v63  ;;  %v3498_v9 = vld [vmem:[#allocation7 + $0x8] sm:$0xf]  ;;  %v2080_v12 = vcombine.low %v3484_v1, %v3486_v2  ;;  %v2120_v15 = vcombine.low %v331_v16, %v332_v17  ;;  %v338_v16 = vadd.bf16 %v3426_v39, %v3420_v37 }
  0x97   : > { %2513 = vmatpush3.bf16.msra.mxu0 %v2089_v22  ;;  %v3500_v10 = vld [vmem:[#allocation7 + $0xc] sm:$0xf]  ;;  %v2096_v22 = vcombine.low %v3492_v5, %v3494_v6  ;;  %v3514_v33 = vld [vmem:[#allocation5 + $0x1c] sm:$0xf]  ;;  %v3518_v11 = vld [vmem:[#allocation7 + $0x14] sm:$0xf] }
  0x98   : > { %2545 = vmatpush3.bf16.msra.mxu1 %v2105_v25  ;;  %2514 = vmatprep.subr.bf16.mxu0 %v2090_v34  ;;  %v3510_v25 = vld [vmem:[#allocation5 + $0x18] sm:$0xf]  ;;  %v2127_v32 = vcombine.low %v3498_v9, %v3500_v10  ;;  %v3522_v14 = vld [vmem:[#allocation5 + $0x5c] sm:$0xf]  ;;  %v3534_v52 = vld [vmem:[#allocation5 + $0x60] sm:$0xf] }
  0x99   : > { %2546 = vmatprep.subr.bf16.mxu1 %v2106_v35  ;;  %v3520_v13 = vld [vmem:[#allocation5 + $0x58] sm:$0xf]  ;;  %v3536_v53 = vld [vmem:[#allocation5 + $0x64] sm:$0xf]  ;;  %v3564_v24 = vld [vmem:[#allocation5 + $0x68] sm:$0xf] }
  0x9a   : > { %v3562_v23 = vld [vmem:[#allocation7 + $0x24] sm:$0xf]  ;;  %v3566_v26 = vld [vmem:[#allocation5 + $0x6c] sm:$0xf]  ;;  %v3572_v17 = vld [vmem:[#allocation5 + $0x30] sm:$0xf] }
  0x9b   : > { %2515 = vmatpush3.bf16.msra.mxu0 %v2090_v34  ;;  %v3516_v34 = vld [vmem:[#allocation7 + $0x10] sm:$0xf]  ;;  %v2099_v37 = vcombine.low %v3564_v24, %v3566_v26  ;;  %v3588_v39 = vld [vmem:[#allocation7 + $0x2c] sm:$0xf]  ;;  %v357_v60 = vld [vmem:[#allocation5 + $0x38] sm:$0xf] }
  0x9c   : > { %2547 = vmatpush3.bf16.msra.mxu1 %v2106_v35  ;;  %2516 = vmatprep.subr.bf16.mxu0 %v2091_v40  ;;  %v333_v35 = vadd.bf16 %v3379_v20, %v3373_v18  ;;  %v2128_v18 = vcombine.low %v3516_v34, %v3518_v11  ;;  %v3542_v20 = vld [vmem:[#allocation7 + $0x18] sm:$0xf]  ;;  %v358_v61 = vld [vmem:[#allocation5 + $0x3c] sm:$0xf]  ;;  %s4005_s23 = scalar_lea.vmem [#allocation10], %s2057_s12  ;;  %s2236_s25 = sshll.u32 %s3039_s18, 11 }
  0x9d   : > { %2548 = vmatprep.subr.bf16.mxu1 %v2107_v41  ;;  %s1929_s27 = sshll.u32 %s4005_s23, 4  ;;  %s4137_s24 = scalar_lea.hbm %s4196_s4, %s2236_s25  ;;  %s4139_s27 = int_to_ptr.vmem [resolvable:$true] %s1929_s27 }
  0x9e   : > { %s1914_s18 = scalar_lea.sflag [#allocation4], %s3304_s14  ;;  %s2957_s29 = scalar_lea.vmem %s4139_s27, 2048 }
  0x9f   : > { %2517 = vmatpush3.bf16.msra.mxu0 %v2091_v40  ;;  %v334_v40 = vadd.bf16 %v3382_v21, %v3376_v19  ;;  %v2097_v19 = vcombine.low %v3520_v13, %v3522_v14  ;;  %v3544_v21 = vld [vmem:[#allocation7 + $0x1c] sm:$0xf]  ;;  %p2958_p13 = scmp.ne.s32.totalorder %s4139_s27, %s2957_s29  ;;  %s3055_s26 = smov [#allocation10]  }
  0xa0   : > { %2549 = vmatpush3.bf16.msra.mxu1 %v2107_v41  ;;  %2518 = vmatprep.subr.bf16.mxu0 %v2092_v46  ;;  %v3528_v41 = vld [vmem:[#allocation5 + $0x20] sm:$0xf]  ;;  %s2961_s22 = sshll.u32 %s3055_s26, 4  ;;  %s2962_s22 = int_to_ptr.vmem [resolvable:$false] %s2961_s22 }
  0xa1   : > { %2550 = vmatprep.subr.bf16.mxu1 %v2108_v47  ;;  %p2959_p6 = pnand %p2958_p13, %p3243_p10  ;;  %s2963_s10 = scalar_lea.vmem %s2962_s22, 4096 }
  0xa2   : > { %p2964_p5 = scmp.lt.s32.totalorder %s4139_s27, %s2962_s22  ;;  %p2965_p7 = scmp.lt.s32.totalorder %s2963_s10, %s2957_s29 }
  0xa3   : > { %2519 = vmatpush3.bf16.msra.mxu0 %v2092_v46  ;;  %v3530_v46 = vld [vmem:[#allocation5 + $0x24] sm:$0xf]  ;;  %p2960_p3 = pneg %p2959_p6 }
  0xa4   : > { %2551 = vmatpush3.bf16.msra.mxu1 %v2108_v47  ;;  %2520 = vmatprep.subr.bf16.mxu0 %v2093_v54  ;;  %v2081_v47 = vcombine.low %v3510_v25, %v3514_v33  ;;  %p2966_p9 = por %p2965_p7, %p2964_p5 }
  0xa5   : > { %2552 = vmatprep.subr.bf16.mxu1 %v2109_v55 }
  0xa6   : > { %p2967_p0 = pnand %p2966_p9, %p2960_p3 }
  0xa7   : > { %2521 = vmatpush3.bf16.msra.mxu0 %v2093_v54  ;;  %v2121_v54 = vcombine.low %v333_v35, %v334_v40  ;;  %v3580_v35 = vld [vmem:[#allocation5 + $0x74] sm:$0xf] }
  0xa8   : > { %2553 = vmatpush3.bf16.msra.mxu1 %v2109_v55  ;;  %2570 = vmatprep.subr.bf16.mxu0 %v2118_v0  ;;  %v2082_v55 = vcombine.low %v3528_v41, %v3530_v46 }
  0xa9   : > { %2602 = vmatprep.subr.bf16.mxu1 %v2126_v3 }
  0xaa   : > { %2523 = vmatmul.mubr.bf16.vlgmr.msra.gmra.mrb[0].mxu0 %v2079_v4  ;;  %v2129_v4 = vcombine.low %v3542_v20, %v3544_v21 }
  0xab   : > { %2555 = vmatmul.mubr.bf16.vlgmr.msra.gmra.mrb[0].mxu1 %v2095_v7  ;;  %2571 = vmatpush3.bf16.msra.mxu0 %v2118_v0  ;;  %v2098_v0 = vcombine.low %v3534_v52, %v3536_v53  ;;  %v3558_v7 = vld [vmem:[#allocation5 + $0x2c] sm:$0xf] }
  0xac   : > { %2572 = vmatprep.subr.bf16.mxu0 %v2119_v8  ;;  %2526 = vmatprep.mubr.bf16.mxu0 %v2080_v12  ;;  %v337_v12 = vadd.bf16 %v3423_v38, %v3417_v36  ;;  %v3586_v38 = vld [vmem:[#allocation7 + $0x28] sm:$0xf] }
  0xad   : > { %2558 = vmatprep.mubr.bf16.mxu1 %v2096_v22  ;;  %2603 = vmatpush3.bf16.msra.mxu1 %v2126_v3  ;;  %v3554_v3 = vld [vmem:[#allocation5 + $0x28] sm:$0xf]  ;;  %v3574_v22 = vld [vmem:[#allocation5 + $0x34] sm:$0xf] }
  0xae   : > { %2604 = vmatprep.subr.bf16.mxu1 %v2127_v32  ;;  %v2123_v40 = vcombine.low %v337_v12, %v338_v16 }
  0xaf   : > { %2573 = vmatpush3.bf16.msra.mxu0 %v2119_v8  ;;  %v3560_v8 = vld [vmem:[#allocation7 + $0x20] sm:$0xf] }
  0xb0   : > { %2574 = vmatprep.subr.bf16.mxu0 %v2120_v15  ;;  %v2130_v36 = vcombine.low %v3560_v8, %v3562_v23 }
  0xb1   : > { %2605 = vmatpush3.bf16.msra.mxu1 %v2127_v32  ;;  %v2083_v32 = vcombine.low %v3554_v3, %v3558_v7 }
  0xb2   : > { %2527 = vmatmul.mubr.bf16.gmra.mrb[4].mxu0 %v2081_v47  ;;  %2606 = vmatprep.subr.bf16.mxu1 %v2128_v18  ;;  %v2084_v47 = vcombine.low %v3572_v17, %v3574_v22 }
  0xb3   : > { %2559 = vmatmul.mubr.bf16.gmra.mrb[4].mxu1 %v2097_v19  ;;  %2575 = vmatpush3.bf16.msra.mxu0 %v2120_v15  ;;  %v3578_v15 = vld [vmem:[#allocation5 + $0x70] sm:$0xf]  ;;  %v340_v19 = vadd.bf16 %v3442_v45, %v3436_v43  ;;  %v376_v43 = vadd.bf16 %v3404_v30, %v3400_v28  ;;  %v374_v45 = vld [vmem:[#allocation5 + $0x78] sm:$0xf]  ;;  %v378_v28 = vadd.bf16 %v3480_v62, %v3472_v58 }
  0xb4   : > { %2576 = vmatprep.subr.bf16.mxu0 %v2121_v54  ;;  %2530 = vmatprep.mubr.bf16.mxu0 %v2082_v55  ;;  %v2131_v55 = vcombine.low %v3586_v38, %v3588_v39  ;;  %v380_v30 = vadd.bf16 %v3492_v5, %v3484_v1  ;;  %v382_v58 = vadd.bf16 %v3520_v13, %v3510_v25 }
  0xb5   : > { %2562 = vmatprep.mubr.bf16.mxu1 %v2098_v0  ;;  %2607 = vmatpush3.bf16.msra.mxu1 %v2128_v18  ;;  %v339_v18 = vadd.bf16 %v3439_v44, %v3433_v42  ;;  %v341_v0 = vadd.bf16 %v3455_v50, %v3449_v48  ;;  %v342_v42 = vadd.bf16 %v3458_v51, %v3452_v49 }
  0xb6   : > { %2608 = vmatprep.subr.bf16.mxu1 %v2129_v4  ;;  %v377_v44 = vadd.bf16 %v3406_v31, %v3402_v29  ;;  %v379_v29 = vadd.bf16 %v3482_v63, %v3474_v59  ;;  %v381_v31 = vadd.bf16 %v3494_v6, %v3486_v2  ;;  %v383_v59 = vadd.bf16 %v3522_v14, %v3514_v33 }
  0xb7   : > { %2577 = vmatpush3.bf16.msra.mxu0 %v2121_v54  ;;  %v2100_v54 = vcombine.low %v3578_v15, %v3580_v35  ;;  %v2124_v12 = vcombine.low %v339_v18, %v340_v19  ;;  %v2125_v50 = vcombine.low %v341_v0, %v342_v42  ;;  %v384_v62 = vadd.bf16 %v3534_v52, %v3528_v41 }
  0xb8   : > { %2578 = vmatprep.subr.bf16.mxu0 %v2122_v27  ;;  %v2110_v49 = vcombine.low %v376_v43, %v377_v44  ;;  %v2111_v51 = vcombine.low %v378_v28, %v379_v29  ;;  %v2112_v16 = vcombine.low %v380_v30, %v381_v31  ;;  %v385_v63 = vadd.bf16 %v3536_v53, %v3530_v46  ;;  %v3632_v53 = vld [vmem:[#allocation7 + $0x30] sm:$0xf]  ;;  %v1042_v43 = vld [vmem:[#allocation7 + $0x58] sm:$0xf]  ;;  %v1043_v44 = vld [vmem:[#allocation7 + $0x5c] sm:$0xf] }
  0xb9   : > { %2609 = vmatpush3.bf16.msra.mxu1 %v2129_v4  ;;  %v375_v4 = vld [vmem:[#allocation5 + $0x7c] sm:$0xf]  ;;  %v2113_v1 = vcombine.low %v382_v58, %v383_v59  ;;  %v386_v5 = vadd.bf16 %v3564_v24, %v3554_v3  ;;  %v387_v6 = vadd.bf16 %v3566_v26, %v3558_v7  ;;  %v388_v25 = vadd.bf16 %v3578_v15, %v3572_v17  ;;  %v3634_v3 = vld [vmem:[#allocation7 + $0x34] sm:$0xf]  ;;  %v3638_v24 = vld [vmem:[#allocation7 + $0x38] sm:$0xf] }
  0xba   : > { %2531 = vmatmul.mubr.bf16.gmra.mrb[8].mxu0 %v2083_v32  ;;  %2610 = vmatprep.subr.bf16.mxu1 %v2130_v36  ;;  %v2101_v48 = vcombine.low %v374_v45, %v375_v4  ;;  %v2114_v2 = vcombine.low %v384_v62, %v385_v63  ;;  %v389_v33 = vadd.bf16 %v3580_v35, %v3574_v22  ;;  %v3640_v26 = vld [vmem:[#allocation7 + $0x3c] sm:$0xf]  ;;  %v1036_v22 = vld [vmem:[#allocation7 + $0x40] sm:$0xf]  ;;  %v1037_v32 = vld [vmem:[#allocation7 + $0x44] sm:$0xf] }
  0xbb   : > { %2563 = vmatmul.mubr.bf16.gmra.mrb[8].mxu1 %v2099_v37  ;;  %2579 = vmatpush3.bf16.msra.mxu0 %v2122_v27  ;;  %v2085_v27 = vcombine.low %v357_v60, %v358_v61  ;;  %v2115_v13 = vcombine.low %v386_v5, %v387_v6  ;;  %v390_v41 = vadd.bf16 %v374_v45, %v357_v60  ;;  %v1041_v60 = vld [vmem:[#allocation7 + $0x54] sm:$0xf]  ;;  %v1047_v28 = vld [vmem:[#allocation7 + $0x6c] sm:$0xf]  ;;  %v1048_v31 = vld [vmem:[#allocation7 + $0x70] sm:$0xf] }
  0xbc   : > { %2580 = vmatprep.subr.bf16.mxu0 %v2123_v40  ;;  %2534 = vmatprep.mubr.bf16.mxu0 %v2084_v47  ;;  %v2116_v14 = vcombine.low %v388_v25, %v389_v33  ;;  %v391_v46 = vadd.bf16 %v375_v4, %v358_v61  ;;  %v2132_v7 = vcombine.low %v3632_v53, %v3634_v3  ;;  %v1039_v47 = vld [vmem:[#allocation7 + $0x4c] sm:$0xf]  ;;  %v1050_v59 = vld [vmem:[#allocation7 + $0x78] sm:$0xf]  ;;  %v1051_v62 = vld [vmem:[#allocation7 + $0x7c] sm:$0xf] }
  0xbd   : > { %2566 = vmatprep.mubr.bf16.mxu1 %v2100_v54  ;;  %2611 = vmatpush3.bf16.msra.mxu1 %v2130_v36  ;;  %v2133_v17 = vcombine.low %v3638_v24, %v3640_v26  ;;  %v2134_v15 = vcombine.low %v1036_v22, %v1037_v32  ;;  %v1052_v35 = vadd.bf16 %v1036_v22, %v3468_v56  ;;  %v1040_v56 = vld [vmem:[#allocation7 + $0x50] sm:$0xf] }
  0xbe   : > { %2612 = vmatprep.subr.bf16.mxu1 %v2131_v55  ;;  %v2117_v52 = vcombine.low %v390_v41, %v391_v46  ;;  %v1053_v36 = vadd.bf16 %v1037_v32, %v3470_v57  ;;  %v1055_v54 = vadd.bf16 %v1039_v47, %v3500_v10  ;;  %v2136_v57 = vcombine.low %v1040_v56, %v1041_v60 }
  0xbf   : > { %2581 = vmatpush3.bf16.msra.mxu0 %v2123_v40  ;;  %v1038_v40 = vld [vmem:[#allocation7 + $0x48] sm:$0xf]  ;;  %v1056_v61 = vadd.bf16 %v1040_v56, %v3516_v34  ;;  %v1057_v0 = vadd.bf16 %v1041_v60, %v3518_v11  ;;  %v1058_v10 = vadd.bf16 %v1042_v43, %v3542_v20  ;;  %v1059_v45 = vadd.bf16 %v1043_v44, %v3544_v21 }
  0xc0   : > { %2582 = vmatprep.subr.bf16.mxu0 %v2124_v12  ;;  %v3646_v37 = vcombine.low %v1052_v35, %v1053_v36  ;;  %v2135_v18 = vcombine.low %v1038_v40, %v1039_v47  ;;  %v1054_v19 = vadd.bf16 %v1038_v40, %v3498_v9  ;;  %v2137_v9 = vcombine.low %v1042_v43, %v1043_v44 }
  0xc1   : > { %2613 = vmatpush3.bf16.msra.mxu1 %v2131_v55  ;;  %v3655_v42 = vcombine.low %v1056_v61, %v1057_v0  ;;  %v3659_v4 = vcombine.low %v1058_v10, %v1059_v45  ;;  %v1063_v29 = vadd.bf16 %v1047_v28, %v3588_v39  ;;  %v1066_v39 = vadd.bf16 %v1050_v59, %v3638_v24 }
  0xc2   : > { %2535 = vmatmul.mubr.bf16.gmra.mrb[12].mxu0 %v2085_v27  ;;  %2614 = vmatprep.subr.bf16.mxu1 %v2132_v7  ;;  %v3651_v55 = vcombine.low %v1054_v19, %v1055_v54  ;;  %v1045_v27 = vld [vmem:[#allocation7 + $0x64] sm:$0xf]  ;;  %v1067_v63 = vadd.bf16 %v1051_v62, %v3640_v26 }
  0xc3   : > { %2567 = vmatmul.mubr.bf16.gmra.mrb[12].mxu1 %v2101_v48  ;;  %2583 = vmatpush3.bf16.msra.mxu0 %v2124_v12  ;;  %v1044_v12 = vld [vmem:[#allocation7 + $0x60] sm:$0xf]  ;;  %v1061_v48 = vadd.bf16 %v1045_v27, %v3562_v23  ;;  %v1064_v23 = vadd.bf16 %v1048_v31, %v3632_v53 }
  0xc4   : > { %2584 = vmatprep.subr.bf16.mxu0 %v2125_v50  ;;  %2586 = vmatprep.mubr.bf16.mxu0 %v2110_v49  ;;  %v2138_v34 = vcombine.low %v1044_v12, %v1045_v27  ;;  %v1060_v11 = vadd.bf16 %v1044_v12, %v3560_v8  ;;  %v1046_v49 = vld [vmem:[#allocation7 + $0x68] sm:$0xf] }
  0xc5   : > { %2615 = vmatpush3.bf16.msra.mxu1 %v2132_v7  ;;  %v2139_v20 = vcombine.low %v1046_v49, %v1047_v28  ;;  %v1062_v21 = vadd.bf16 %v1046_v49, %v3586_v38  ;;  %v2141_v38 = vcombine.low %v1050_v59, %v1051_v62 }
  0xc6   : > { %2616 = vmatprep.subr.bf16.mxu1 %v2133_v17 }
  0xc7   : > { %2585 = vmatpush3.bf16.msra.mxu0 %v2125_v50  ;;  %v3663_v50 = vcombine.low %v1060_v11, %v1061_v48  ;;  %v3667_v30 = vcombine.low %v1062_v21, %v1063_v29 }
  0xc8   : > { %2634 = vmatprep.subr.bf16.mxu0 %v2134_v15 }
  0xc9   : > { %2617 = vmatpush3.bf16.msra.mxu1 %v2133_v17 }
  0xca   : > { %2587 = vmatmul.mubr.bf16.vlgmr.msra.gmra.mrb[16].mxu0 %v2111_v51  ;;  %2666 = vmatprep.subr.bf16.mxu1 %v3646_v37  ;;  %v1049_v51 = vld [vmem:[#allocation7 + $0x74] sm:$0xf] }
  0xcb   : > { %2590 = vmatprep.mubr.bf16.mxu0 %v2112_v16  ;;  %2635 = vmatpush3.bf16.msra.mxu0 %v2134_v15  ;;  %v2140_v8 = vcombine.low %v1048_v31, %v1049_v51  ;;  %v1065_v16 = vadd.bf16 %v1049_v51, %v3634_v3 }
  0xcc   : > { %2636 = vmatprep.subr.bf16.mxu0 %v2135_v18 }
  0xcd   : > { %v3671_v58 = vcombine.low %v1064_v23, %v1065_v16 }
  0xcf   : > { %2637 = vmatpush3.bf16.msra.mxu0 %v2135_v18 }
  0xd0   : > { %2638 = vmatprep.subr.bf16.mxu0 %v2136_v57 }
  0xd2   : > { %2591 = vmatmul.mubr.bf16.gmra.mrb[20].mxu0 %v2113_v1  ;;  %v3675_v1 = vcombine.low %v1066_v39, %v1067_v63 }
  0xd3   : > { %2594 = vmatprep.mubr.bf16.mxu0 %v2114_v2  ;;  %2639 = vmatpush3.bf16.msra.mxu0 %v2136_v57 }
  0xd4   : > { %2640 = vmatprep.subr.bf16.mxu0 %v2137_v9 }
  0xd7   : > { %2641 = vmatpush3.bf16.msra.mxu0 %v2137_v9 }
  0xd8   : > { %2642 = vmatprep.subr.bf16.mxu0 %v2138_v34 }
  0xda   : > { %2595 = vmatmul.mubr.bf16.gmra.mrb[24].mxu0 %v2115_v13 }
  0xdb   : > { %2598 = vmatprep.mubr.bf16.mxu0 %v2116_v14  ;;  %2643 = vmatpush3.bf16.msra.mxu0 %v2138_v34 }
  0xdc   : > { %2644 = vmatprep.subr.bf16.mxu0 %v2139_v20 }
  0xdf   : > { %2645 = vmatpush3.bf16.msra.mxu0 %v2139_v20 }
  0xe0   : > { %2646 = vmatprep.subr.bf16.mxu0 %v2140_v8 }
  0xe2   : > { %2599 = vmatmul.mubr.bf16.gmra.mrb[28].mxu0 %v2117_v52 }
  0xe3   : > { %2647 = vmatpush3.bf16.msra.mxu0 %v2140_v8 }
  0xe4   : > { %2648 = vmatprep.subr.bf16.mxu0 %v2141_v38 }
  0xe7   : > { %2649 = vmatpush3.bf16.msra.mxu0 %v2141_v38 }
 0x17d   : > { %v3677_v2 = vpop.f32.mrb[0].mxu0 }
 0x17e   : > { %v3679_v5 = vpop.f32.mrb[0].mxu1  ;;  %v3681_v6 = vpop.f32.mrb[1].mxu0 }
 0x17f   : > { %v3685_v25 = vsub.f32 %v3677_v2, %v3679_v5  ;;  %v3687_v33 = vpop.f32.mrb[1].mxu1  ;;  %v3689_v13 = vpop.f32.mrb[2].mxu0 }
 0x180   : > { %v3693_v14 = vsub.f32 %v3681_v6, %v3687_v33  ;;  %v3695_v41 = vpop.f32.mrb[2].mxu1  ;;  %v3697_v46 = vpop.f32.mrb[3].mxu0 }
 0x181   : > { %v3701_v52 = vsub.f32 %v3689_v13, %v3695_v41  ;;  %v3703_v53 = vpop.f32.mrb[3].mxu1 }
 0x182   : > { %v3707_v3 = vsub.f32 %v3697_v46, %v3703_v53 }
 0x183   : > { %v1069_v7 = vpack.c.bf16 %v3701_v52, %v3685_v25 }
 0x184   : > { %v1068_v24 = vpack.c.bf16 %v3707_v3, %v3693_v14 }
 0x185   : > { %v3713_v26 = vpop.f32.mrb[4].mxu0 }
 0x186   : > { %v3715_v17 = vpop.f32.mrb[4].mxu1  ;;  %2618 = vmatprep.mubr.bf16.mxu1 %v1068_v24  ;;  %v3717_v22 = vpop.f32.mrb[5].mxu0 }
 0x187   : > { %v3721_v32 = vsub.f32 %v3713_v26, %v3715_v17  ;;  %v3723_v15 = vpop.f32.mrb[5].mxu1  ;;  %2619 = vmatmul.mubr.bf16.vlgmr.msra.gmra.mrb[16].mxu1 %v1069_v7  ;;  %v3725_v35 = vpop.f32.mrb[6].mxu0 }
 0x188   : > { %v3729_v36 = vsub.f32 %v3717_v22, %v3723_v15  ;;  %v3731_v40 = vpop.f32.mrb[6].mxu1  ;;  %v3733_v47 = vpop.f32.mrb[7].mxu0  ;;  %2667 = vmatpush3.bf16.msra.mxu1 %v3646_v37 }
 0x189   : > { %v3738_v18 = vsub.f32 %v3725_v35, %v3731_v40  ;;  %v3740_v19 = vpop.f32.mrb[7].mxu1  ;;  %2668 = vmatprep.subr.bf16.mxu1 %v3651_v55 }
 0x18a   : > { %v3745_v54 = vsub.f32 %v3733_v47, %v3740_v19 }
 0x18b   : > { %v1071_v56 = vpack.c.bf16 %v3738_v18, %v3721_v32 }
 0x18c   : > { %v1070_v60 = vpack.c.bf16 %v3745_v54, %v3729_v36  ;;  %2669 = vmatpush3.bf16.msra.mxu1 %v3651_v55 }
 0x18d   : > { %v3752_v37 = vpop.f32.mrb[8].mxu0  ;;  %2670 = vmatprep.subr.bf16.mxu1 %v3655_v42 }
 0x18e   : > { %v3755_v57 = vpop.f32.mrb[8].mxu1  ;;  %2622 = vmatprep.mubr.bf16.mxu1 %v1070_v60  ;;  %v3757_v61 = vpop.f32.mrb[9].mxu0 }
 0x18f   : > { %v3761_v0 = vsub.f32 %v3752_v37, %v3755_v57  ;;  %v3763_v43 = vpop.f32.mrb[9].mxu1  ;;  %2623 = vmatmul.mubr.bf16.gmra.mrb[20].mxu1 %v1071_v56  ;;  %v3765_v44 = vpop.f32.mrb[10].mxu0 }
 0x190   : > { %v3769_v55 = vsub.f32 %v3757_v61, %v3763_v43  ;;  %v3771_v9 = vpop.f32.mrb[10].mxu1  ;;  %v3773_v10 = vpop.f32.mrb[11].mxu0  ;;  %2671 = vmatpush3.bf16.msra.mxu1 %v3655_v42 }
 0x191   : > { %v3778_v45 = vsub.f32 %v3765_v44, %v3771_v9  ;;  %v3780_v12 = vpop.f32.mrb[11].mxu1  ;;  %2672 = vmatprep.subr.bf16.mxu1 %v3659_v4 }
 0x192   : > { %v3785_v27 = vsub.f32 %v3773_v10, %v3780_v12 }
 0x193   : > { %v1073_v34 = vpack.c.bf16 %v3778_v45, %v3761_v0 }
 0x194   : > { %v1072_v11 = vpack.c.bf16 %v3785_v27, %v3769_v55  ;;  %2673 = vmatpush3.bf16.msra.mxu1 %v3659_v4 }
 0x195   : > { %v3792_v42 = vpop.f32.mrb[12].mxu0  ;;  %2674 = vmatprep.subr.bf16.mxu1 %v3663_v50 }
 0x196   : > { %v3795_v48 = vpop.f32.mrb[12].mxu1  ;;  %2626 = vmatprep.mubr.bf16.mxu1 %v1072_v11  ;;  %v3797_v49 = vpop.f32.mrb[13].mxu0 }
 0x197   : > { %v3801_v28 = vsub.f32 %v3792_v42, %v3795_v48  ;;  %v3803_v20 = vpop.f32.mrb[13].mxu1  ;;  %2627 = vmatmul.mubr.bf16.gmra.mrb[24].mxu1 %v1073_v34  ;;  %v3805_v21 = vpop.f32.mrb[14].mxu0 }
 0x198   : > { %v3809_v4 = vsub.f32 %v3797_v49, %v3803_v20  ;;  %v3811_v29 = vpop.f32.mrb[14].mxu1  ;;  %v3813_v31 = vpop.f32.mrb[15].mxu0  ;;  %2675 = vmatpush3.bf16.msra.mxu1 %v3663_v50 }
 0x199   : > { %v3818_v51 = vsub.f32 %v3805_v21, %v3811_v29  ;;  %v3820_v8 = vpop.f32.mrb[15].mxu1  ;;  %2676 = vmatprep.subr.bf16.mxu1 %v3667_v30 }
 0x19a   : > { %v3825_v23 = vsub.f32 %v3813_v31, %v3820_v8 }
 0x19b   : > { %v1075_v16 = vpack.c.bf16 %v3818_v51, %v3801_v28 }
 0x19c   : > { %v1074_v59 = vpack.c.bf16 %v3825_v23, %v3809_v4  ;;  %2677 = vmatpush3.bf16.msra.mxu1 %v3667_v30 }
 0x19d   : > { %v2588_v50 = vpop.f32.mrb[16].mxu0  ;;  %2678 = vmatprep.subr.bf16.mxu1 %v3671_v58 }
 0x19e   : > { %v989_v62 = vsub.f32 %v2588_v50, %v3677_v2  ;;  %2630 = vmatprep.mubr.bf16.mxu1 %v1074_v59  ;;  %v908_v38 = vpop.f32.mrb[17].mxu0 }
 0x19f   : > { %v987_v39 = vsub.f32 %v908_v38, %v3681_v6  ;;  %2631 = vmatmul.mubr.bf16.gmra.mrb[28].mxu1 %v1075_v16  ;;  %v2589_v63 = vpop.f32.mrb[18].mxu0 }
 0x1a0   : > { %v1005_v7 = vsub.f32 %v989_v62, %v3679_v5  ;;  %v990_v24 = vsub.f32 %v2589_v63, %v3689_v13  ;;  %v911_v56 = vpop.f32.mrb[19].mxu0  ;;  %2679 = vmatpush3.bf16.msra.mxu1 %v3671_v58 }
 0x1a1   : > { %v1003_v30 = vsub.f32 %v987_v39, %v3687_v33  ;;  %v988_v60 = vsub.f32 %v911_v56, %v3697_v46  ;;  %2680 = vmatprep.subr.bf16.mxu1 %v3675_v1 }
 0x1a2   : > { %v1086_v2 = vadd.f32 %v1005_v7, %v3685_v25  ;;  %v1006_v34 = vsub.f32 %v990_v24, %v3695_v41 }
 0x1a3   : > { %v1084_v6 = vadd.f32 %v1003_v30, %v3693_v14  ;;  %v1004_v11 = vsub.f32 %v988_v60, %v3703_v53 }
 0x1a4   : > { %v1077_v5 = vpack.c.bf16 %v1006_v34, %v1005_v7  ;;  %v1087_v13 = vadd.f32 %v1006_v34, %v3701_v52  ;;  %2681 = vmatpush3.bf16.msra.mxu1 %v3675_v1 }
 0x1a5   : > { %v1085_v58 = vadd.f32 %v1004_v11, %v3707_v3  ;;  %v2592_v33 = vpop.f32.mrb[20].mxu0  ;;  %v1076_v16 = vpack.c.bf16 %v1004_v11, %v1003_v30 }
 0x1a6   : > { %v1101_v46 = vpack.c.bf16 %v1087_v13, %v1086_v2  ;;  %v993_v59 = vsub.f32 %v2592_v33, %v3713_v26  ;;  %v924_v50 = vpop.f32.mrb[21].mxu0 }
 0x1a7   : > { %v991_v25 = vsub.f32 %v924_v50, %v3717_v22  ;;  %v2593_v41 = vpop.f32.mrb[22].mxu0  ;;  %2650 = vmatprep.mubr.bf16.mxu0 %v1076_v16  ;;  %v1100_v14 = vpack.c.bf16 %v1085_v58, %v1084_v6 }
 0x1a8   : > { %v1009_v53 = vsub.f32 %v993_v59, %v3715_v17  ;;  %v994_v62 = vsub.f32 %v2593_v41, %v3725_v35  ;;  %v927_v52 = vpop.f32.mrb[23].mxu0  ;;  %2651 = vmatmul.mubr.bf16.vlgmr.msra.gmra.mrb[32].mxu0 %v1077_v5 }
 0x1a9   : > { %v1007_v1 = vsub.f32 %v991_v25, %v3723_v15  ;;  %v992_v3 = vsub.f32 %v927_v52, %v3733_v47  ;;  %2682 = vmatprep.mubr.bf16.mxu1 %v1100_v14 }
 0x1aa   : > { %v1090_v38 = vadd.f32 %v1009_v53, %v3721_v32  ;;  %v1010_v26 = vsub.f32 %v994_v62, %v3731_v40  ;;  %2683 = vmatmul.mubr.bf16.vlgmr.msra.gmra.mrb[32].mxu1 %v1101_v46 }
 0x1ab   : > { %v1088_v22 = vadd.f32 %v1007_v1, %v3729_v36  ;;  %v1008_v39 = vsub.f32 %v992_v3, %v3740_v19 }
 0x1ac   : > { %v1091_v17 = vadd.f32 %v1010_v26, %v3738_v18  ;;  %v1079_v63 = vpack.c.bf16 %v1010_v26, %v1009_v53  ;;  %v3914_v26 = vld [vmem:[#allocation8 + $0x8] sm:$0xff]  }
 0x1ad   : > { %v1089_v35 = vadd.f32 %v1008_v39, %v3745_v54  ;;  %v2596_v7 = vpop.f32.mrb[24].mxu0  ;;  %v1078_v24 = vpack.c.bf16 %v1008_v39, %v1007_v1 }
 0x1ae   : > { %v997_v15 = vsub.f32 %v2596_v7, %v3752_v37  ;;  %v940_v47 = vpop.f32.mrb[25].mxu0  ;;  %v1103_v56 = vpack.c.bf16 %v1091_v17, %v1090_v38  ;;  %v3920_v17 = vld [vmem:[#allocation8] sm:$0xff]   ;;  %v3926_v7 = vld [vmem:[#allocation8 + $0x58] sm:$0xff]  }
 0x1af   : > { %v995_v32 = vsub.f32 %v940_v47, %v3757_v61  ;;  %v2597_v30 = vpop.f32.mrb[26].mxu0  ;;  %2654 = vmatprep.mubr.bf16.mxu0 %v1078_v24  ;;  %v1102_v40 = vpack.c.bf16 %v1089_v35, %v1088_v22  ;;  %v3916_v22 = vld [vmem:[#allocation8 + $0x48] sm:$0xff]   ;;  %v3924_v35 = vld [vmem:[#allocation8 + $0x18] sm:$0xff]   ;;  %v2243_v24 = vunpack.c.l.bf16 %v3914_v26  ;;  %v3930_v47 = vld [vmem:[#allocation8 + $0x10] sm:$0xff]  }
 0x1b0   : > { %v1013_v36 = vsub.f32 %v997_v15, %v3755_v57  ;;  %v998_v19 = vsub.f32 %v2597_v30, %v3765_v44  ;;  %v943_v60 = vpop.f32.mrb[27].mxu0  ;;  %2655 = vmatmul.mubr.bf16.gmra.mrb[36].mxu0 %v1079_v63  ;;  %v3922_v63 = vld [vmem:[#allocation8 + $0x40] sm:$0xff]   ;;  %v2275_v15 = vunpack.c.l.bf16 %v3916_v22 }
 0x1b1   : > { %v1011_v18 = vsub.f32 %v995_v32, %v3763_v43  ;;  %v996_v54 = vsub.f32 %v943_v60, %v3773_v10  ;;  %2686 = vmatprep.mubr.bf16.mxu1 %v1102_v40  ;;  %v2239_v32 = vunpack.c.l.bf16 %v3920_v17  ;;  %v2271_v30 = vunpack.c.l.bf16 %v3922_v63  ;;  %v3940_v60 = vld [vmem:[#allocation8 + $0x68] sm:$0xff]  }
 0x1b2   : > { %v1094_v37 = vadd.f32 %v1013_v36, %v3761_v0  ;;  %v1014_v2 = vsub.f32 %v998_v19, %v3771_v9  ;;  %2687 = vmatmul.mubr.bf16.gmra.mrb[36].mxu1 %v1103_v56  ;;  %v3932_v56 = vld [vmem:[#allocation8 + $0x50] sm:$0xff]   ;;  %v2244_v40 = vunpack.c.h.bf16 %v3914_v26  ;;  %v3938_v19 = vld [vmem:[#allocation8 + $0x28] sm:$0xff]  }
 0x1b3   : > { %v1092_v61 = vadd.f32 %v1011_v18, %v3769_v55  ;;  %v1012_v34 = vsub.f32 %v996_v54, %v3780_v12  ;;  %v2272_v54 = vunpack.c.h.bf16 %v3922_v63 }
 0x1b4   : > { %v1095_v57 = vadd.f32 %v1014_v2, %v3778_v45  ;;  %v1081_v6 = vpack.c.bf16 %v1014_v2, %v1013_v36  ;;  %v2276_v36 = vunpack.c.h.bf16 %v3916_v22 }
 0x1b5   : > { %v1093_v44 = vadd.f32 %v1012_v34, %v3785_v27  ;;  %v2600_v11 = vpop.f32.mrb[28].mxu0  ;;  %v1080_v5 = vpack.c.bf16 %v1012_v34, %v1011_v18  ;;  %v2240_v18 = vunpack.c.h.bf16 %v3920_v17  ;;  %v3948_v34 = vld [vmem:[#allocation8 + $0x60] sm:$0xff]  }
 0x1b6   : > { %v1001_v43 = vsub.f32 %v2600_v11, %v3792_v42  ;;  %v956_v10 = vpop.f32.mrb[29].mxu0  ;;  %v1105_v13 = vpack.c.bf16 %v1095_v57, %v1094_v37  ;;  %v2251_v37 = vunpack.c.l.bf16 %v3924_v35 }
 0x1b7   : > { %v999_v0 = vsub.f32 %v956_v10, %v3797_v49  ;;  %v2601_v58 = vpop.f32.mrb[30].mxu0  ;;  %2658 = vmatprep.mubr.bf16.mxu0 %v1080_v5  ;;  %v1104_v9 = vpack.c.bf16 %v1093_v44, %v1092_v61  ;;  %v3946_v61 = vld [vmem:[#allocation8 + $0x20] sm:$0xff]  }
 0x1b8   : > { %v1017_v55 = vsub.f32 %v1001_v43, %v3795_v48  ;;  %v1002_v12 = vsub.f32 %v2601_v58, %v3805_v21  ;;  %v959_v33 = vpop.f32.mrb[31].mxu0  ;;  %2659 = vmatmul.mubr.bf16.gmra.mrb[40].mxu0 %v1081_v6  ;;  %v3958_v58 = vld [vmem:[#allocation8 + $0x38] sm:$0xff]  }
 0x1b9   : > { %v1015_v45 = vsub.f32 %v999_v0, %v3803_v20  ;;  %v1000_v27 = vsub.f32 %v959_v33, %v3813_v31  ;;  %2690 = vmatprep.mubr.bf16.mxu1 %v1104_v9  ;;  %v3960_v9 = vld [vmem:[#allocation8 + $0x78] sm:$0xff]  }
 0x1ba   : > { %v1098_v42 = vadd.f32 %v1017_v55, %v3801_v28  ;;  %v1018_v16 = vsub.f32 %v1002_v12, %v3811_v29  ;;  %2691 = vmatmul.mubr.bf16.gmra.mrb[40].mxu1 %v1105_v13 }
 0x1bb   : > { %v1096_v49 = vadd.f32 %v1015_v45, %v3809_v4  ;;  %v1016_v46 = vsub.f32 %v1000_v27, %v3820_v8 }
 0x1bc   : > { %v1099_v48 = vadd.f32 %v1018_v16, %v3818_v51  ;;  %v1083_v59 = vpack.c.bf16 %v1018_v16, %v1017_v55 }
 0x1bd   : > { %v1097_v21 = vadd.f32 %v1016_v46, %v3825_v23  ;;  %v1082_v50 = vpack.c.bf16 %v1016_v46, %v1015_v45 }
 0x1be   : > { %v1107_v25 = vpack.c.bf16 %v1099_v48, %v1098_v42 }
 0x1bf   : > { %2662 = vmatprep.mubr.bf16.mxu0 %v1082_v50  ;;  %v1106_v20 = vpack.c.bf16 %v1097_v21, %v1096_v49 }
 0x1c0   : > { %2663 = vmatmul.mubr.bf16.gmra.mrb[44].mxu0 %v1083_v59 }
 0x1c1   : > { %2694 = vmatprep.mubr.bf16.mxu1 %v1106_v20 }
 0x1c2   : > { %2695 = vmatmul.mubr.bf16.gmra.mrb[44].mxu1 %v1107_v25 }
 0x25a   : > { %v3884_v28 = vpop.f32.mrb[16].mxu1 }
 0x25b   : > { %v3886_v29 = vpop.f32.mrb[17].mxu1 }
 0x25c   : > { %v3888_v31 = vpop.f32.mrb[18].mxu1 }
 0x25d   : > { %v3890_v4 = vpop.f32.mrb[19].mxu1 }
 0x262   : > { %v3892_v8 = vpop.f32.mrb[20].mxu1 }
 0x263   : > { %v3894_v51 = vpop.f32.mrb[21].mxu1 }
 0x264   : > { %v3896_v23 = vpop.f32.mrb[22].mxu1 }
 0x265   : > { %v3898_v41 = vpop.f32.mrb[23].mxu1 }
 0x26a   : > { %v3900_v14 = vpop.f32.mrb[24].mxu1 }
 0x26b   : > { %v3902_v53 = vpop.f32.mrb[25].mxu1 }
 0x26c   : > { %v3904_v62 = vpop.f32.mrb[26].mxu1 }
 0x26d   : > { %v3906_v52 = vpop.f32.mrb[27].mxu1 }
 0x272   : > { %v3908_v1 = vpop.f32.mrb[28].mxu1 }
 0x273   : > { %v3910_v3 = vpop.f32.mrb[29].mxu1 }
 0x274   : > { %v3912_v38 = vpop.f32.mrb[30].mxu1 }
 0x275   : > { %v3918_v39 = vpop.f32.mrb[31].mxu1 }
 0x27b   : > { %v2652_v5 = vpop.f32.mrb[32].mxu0 }
 0x27c   : > { %v1545_v55 = vsub.f32 %v3884_v28, %v2652_v5  ;;  %v1335_v12 = vpop.f32.mrb[33].mxu0 }
 0x27d   : > { %v1543_v42 = vsub.f32 %v3886_v29, %v1335_v12  ;;  %v2653_v16 = vpop.f32.mrb[34].mxu0  ;;  %v2684_v49 = vpop.f32.mrb[32].mxu1 }
 0x27e   : > { %v1546_v21 = vsub.f32 %v3888_v31, %v2653_v16  ;;  %v1561_v50 = vsub.f32 %v2684_v49, %v3884_v28  ;;  %v1338_v25 = vpop.f32.mrb[35].mxu0  ;;  %v1480_v20 = vpop.f32.mrb[33].mxu1  ;;  %v1658_v45 = vmul.f32 %v2243_v24, %v1545_v55  ;;  %v1802_v33 = vmul.f32 %v2275_v15, %v1545_v55 }
 0x27f   : > { %v1544_v0 = vsub.f32 %v3890_v4, %v1338_v25  ;;  %v1559_v46 = vsub.f32 %v1480_v20, %v3886_v29  ;;  %v2685_v13 = vpop.f32.mrb[34].mxu1  ;;  %v1656_v48 = vmul.f32 %v2239_v32, %v1543_v42  ;;  %v1800_v10 = vmul.f32 %v2271_v30, %v1543_v42 }
 0x280   : > { %v1577_v59 = vsub.f32 %v1561_v50, %v2652_v5  ;;  %v1562_v43 = vsub.f32 %v2685_v13, %v3888_v31  ;;  %v1483_v11 = vpop.f32.mrb[35].mxu1  ;;  %v1659_v28 = vmul.f32 %v2244_v40, %v1546_v21  ;;  %v1803_v49 = vmul.f32 %v2276_v36, %v1546_v21 }
 0x281   : > { %v1575_v22 = vsub.f32 %v1559_v46, %v1335_v12  ;;  %v1560_v27 = vsub.f32 %v1483_v11, %v3890_v4  ;;  %v1657_v6 = vmul.f32 %v2240_v18, %v1544_v0  ;;  %v1801_v42 = vmul.f32 %v2272_v54, %v1544_v0 }
 0x282   : > { %v1674_v44 = vmul.f32 %v2275_v15, %v1577_v59  ;;  %v1786_v55 = vmul.f32 %v2243_v24, %v1577_v59  ;;  %v1578_v29 = vsub.f32 %v1562_v43, %v2653_v16 }
 0x283   : > { %v1672_v5 = vmul.f32 %v2271_v30, %v1575_v22  ;;  %v1784_v50 = vmul.f32 %v2239_v32, %v1575_v22  ;;  %v1576_v31 = vsub.f32 %v1560_v27, %v1338_v25  ;;  %v2656_v13 = vpop.f32.mrb[36].mxu0  ;;  %v3990_v32 = vld [vmem:[#allocation8 + $0x30] sm:$0xff]  }
 0x284   : > { %v1690_v20 = vsub.f32 %v1658_v45, %v1674_v44  ;;  %v1818_v57 = vadd.f32 %v1802_v33, %v1786_v55  ;;  %v1675_v2 = vmul.f32 %v2276_v36, %v1578_v29  ;;  %v1787_v12 = vmul.f32 %v2244_v40, %v1578_v29  ;;  %v1351_v4 = vpop.f32.mrb[37].mxu0  ;;  %v3992_v27 = vld [vmem:[#allocation8 + $0x70] sm:$0xff]  }
 0x285   : > { %v1688_v15 = vsub.f32 %v1656_v48, %v1672_v5  ;;  %v1816_v24 = vadd.f32 %v1800_v10, %v1784_v50  ;;  %v1673_v11 = vmul.f32 %v2272_v54, %v1576_v31  ;;  %v1785_v43 = vmul.f32 %v2240_v18, %v1576_v31  ;;  %v2657_v0 = vpop.f32.mrb[38].mxu0  ;;  %v2688_v30 = vpop.f32.mrb[36].mxu1 }
 0x286   : > { %v1691_v44 = vsub.f32 %v1659_v28, %v1675_v2  ;;  %v1819_v36 = vadd.f32 %v1803_v49, %v1787_v12  ;;  %v1549_v26 = vsub.f32 %v3892_v8, %v2656_v13  ;;  %v1547_v40 = vsub.f32 %v3894_v51, %v1351_v4  ;;  %v1354_v33 = vpop.f32.mrb[39].mxu0  ;;  %v1496_v10 = vpop.f32.mrb[37].mxu1 }
 0x287   : > { %v1689_v63 = vsub.f32 %v1657_v6, %v1673_v11  ;;  %v1817_v54 = vadd.f32 %v1801_v42, %v1785_v43  ;;  %v1550_v17 = vsub.f32 %v3896_v23, %v2657_v0  ;;  %v1565_v18 = vsub.f32 %v2688_v30, %v3892_v8  ;;  %v2689_v45 = vpop.f32.mrb[38].mxu1 }
 0x288   : > { %v2309_v16 = vpack.c.bf16 %v1691_v44, %v1690_v20  ;;  %v2349_v46 = vpack.c.bf16 %v1819_v36, %v1818_v57  ;;  %v1499_v48 = vpop.f32.mrb[39].mxu1  ;;  %v2263_v2 = vunpack.c.l.bf16 %v3990_v32  ;;  %v2295_v59 = vunpack.c.l.bf16 %v3992_v27 }
 0x289   : > { %v2304_v21 = vpack.c.bf16 %v1689_v63, %v1688_v15  ;;  %v2344_v25 = vpack.c.bf16 %v1817_v54, %v1816_v24  ;;  %v1662_v22 = vmul.f32 %v2251_v37, %v1549_v26  ;;  %v2268_v6 = vunpack.c.h.bf16 %v3958_v58 }
 0x28a   : > { %2395 = vst [vmem:[%s4005_s23 + $0x8] sm:$0xff] %v2309_v16   ;;  %2403 = vst [vmem:[%s4005_s23 + $0x48] sm:$0xff] %v2349_v46   ;;  %v4216_v8 = vunpack.c.l.bf16 %v3926_v7  ;;  %v4217_v28 = vunpack.c.l.bf16 %v3930_v47  ;;  %v1581_v55 = vsub.f32 %v1565_v18, %v2656_v13  ;;  %v1548_v29 = vsub.f32 %v3898_v41, %v1354_v33 }
 0x28b   : > { %2305 = vst [vmem:[%s4005_s23] sm:$0xff] %v2304_v21   ;;  %2402 = vst [vmem:[%s4005_s23 + $0x40] sm:$0xff] %v2344_v25   ;;  %v4218_v42 = vunpack.c.l.bf16 %v3932_v56  ;;  %v1563_v50 = vsub.f32 %v1496_v10, %v3894_v51  ;;  %v1566_v31 = vsub.f32 %v2689_v45, %v3896_v23  ;;  %v1564_v20 = vsub.f32 %v1499_v48, %v3898_v41  ;;  %v2660_v12 = vpop.f32.mrb[40].mxu0 }
 0x28c   : > { %v1806_v57 = vmul.f32 %v4216_v8, %v1549_v26  ;;  %v1660_v49 = vmul.f32 %v4217_v28, %v1547_v40  ;;  %v4219_v15 = vunpack.c.h.bf16 %v3924_v35  ;;  %v4220_v11 = vunpack.c.h.bf16 %v3926_v7  ;;  %v1367_v36 = vpop.f32.mrb[41].mxu0 }
 0x28d   : > { %v1804_v5 = vmul.f32 %v4218_v42, %v1547_v40  ;;  %v4221_v43 = vmov %v4216_v8  ;;  %v1790_v44 = vmul.f32 %v2251_v37, %v1581_v55  ;;  %v1579_v26 = vsub.f32 %v1563_v50, %v1351_v4  ;;  %v2661_v41 = vpop.f32.mrb[42].mxu0  ;;  %v2692_v10 = vpop.f32.mrb[40].mxu1 }
 0x28e   : > { %v1663_v24 = vmul.f32 %v4219_v15, %v1550_v17  ;;  %v1807_v13 = vmul.f32 %v4220_v11, %v1550_v17  ;;  %v1678_v30 = vmul.f32 %v4221_v43, %v1581_v55  ;;  %v1582_v51 = vsub.f32 %v1566_v31, %v2657_v0  ;;  %v1370_v45 = vpop.f32.mrb[43].mxu0  ;;  %v1512_v16 = vpop.f32.mrb[41].mxu1 }
 0x28f   : > { %v1580_v40 = vsub.f32 %v1564_v20, %v1354_v33  ;;  %v1553_v23 = vsub.f32 %v3900_v14, %v2660_v12  ;;  %v1822_v54 = vadd.f32 %v1806_v57, %v1790_v44  ;;  %v1551_v18 = vsub.f32 %v3902_v53, %v1367_v36 }
 0x290   : > { %v1694_v63 = vsub.f32 %v1662_v22, %v1678_v30  ;;  %v1554_v17 = vsub.f32 %v3904_v62, %v2661_v41  ;;  %v4222_v46 = vmov %v4218_v42  ;;  %v4223_v37 = vmov %v4217_v28  ;;  %v2693_v22 = vpop.f32.mrb[42].mxu1 }
 0x291   : > { %v1676_v48 = vmul.f32 %v4222_v46, %v1579_v26  ;;  %v1788_v4 = vmul.f32 %v4223_v37, %v1579_v26  ;;  %v4224_v0 = vmov %v4220_v11  ;;  %v4225_v21 = vmov %v4219_v15  ;;  %v1515_v15 = vpop.f32.mrb[43].mxu1 }
 0x292   : > { %v1679_v33 = vmul.f32 %v4224_v0, %v1582_v51  ;;  %v1791_v25 = vmul.f32 %v4225_v21, %v1582_v51  ;;  %v4226_v8 = vunpack.c.h.bf16 %v3930_v47  ;;  %v4227_v28 = vunpack.c.h.bf16 %v3932_v56 }
 0x293   : > { %v1692_v11 = vsub.f32 %v1660_v49, %v1676_v48  ;;  %v1820_v7 = vadd.f32 %v1804_v5, %v1788_v4  ;;  %v4230_v26 = vunpack.c.l.bf16 %v3938_v19  ;;  %v4231_v37 = vunpack.c.l.bf16 %v3940_v60  ;;  %v2664_v5 = vpop.f32.mrb[44].mxu0 }
 0x294   : > { %v1661_v57 = vmul.f32 %v4226_v8, %v1548_v29  ;;  %v1805_v55 = vmul.f32 %v4227_v28, %v1548_v29  ;;  %v4228_v42 = vmov %v4227_v28  ;;  %v4229_v31 = vmov %v4226_v8  ;;  %v4057_v0 = vpop.f32.mrb[45].mxu0 }
 0x295   : > { %v1677_v50 = vmul.f32 %v4228_v42, %v1580_v40  ;;  %v1789_v20 = vmul.f32 %v4229_v31, %v1580_v40  ;;  %v1695_v43 = vsub.f32 %v1663_v24, %v1679_v33  ;;  %v1823_v35 = vadd.f32 %v1807_v13, %v1791_v25  ;;  %v2665_v21 = vpop.f32.mrb[46].mxu0  ;;  %v2696_v25 = vpop.f32.mrb[44].mxu1 }
 0x296   : > { %v1666_v51 = vmul.f32 %v4230_v26, %v1553_v23  ;;  %v2300_v29 = vunpack.c.h.bf16 %v3960_v9  ;;  %v1810_v47 = vmul.f32 %v4231_v37, %v1553_v23  ;;  %v4232_v40 = vunpack.c.l.bf16 %v3946_v61 }
 0x297   : > { %v1693_v30 = vsub.f32 %v1661_v57, %v1677_v50  ;;  %v1821_v44 = vadd.f32 %v1805_v55, %v1789_v20  ;;  %v2319_v46 = vpack.c.bf16 %v1695_v43, %v1694_v63  ;;  %v2359_v56 = vpack.c.bf16 %v1823_v35, %v1822_v54 }
 0x298   : > { %v1664_v49 = vmul.f32 %v4232_v40, %v1551_v18  ;;  %v1569_v48 = vsub.f32 %v2692_v10, %v3900_v14  ;;  %v1552_v4 = vsub.f32 %v3906_v52, %v1370_v45  ;;  %v1567_v63 = vsub.f32 %v1512_v16, %v3902_v53  ;;  %v1386_v16 = vpop.f32.mrb[47].mxu0 }
 0x299   : > { %v2314_v24 = vpack.c.bf16 %v1693_v30, %v1692_v11  ;;  %v2354_v13 = vpack.c.bf16 %v1821_v44, %v1820_v7  ;;  %2397 = vst [vmem:[%s4005_s23 + $0x18] sm:$0xff] %v2319_v46   ;;  %2405 = vst [vmem:[%s4005_s23 + $0x58] sm:$0xff] %v2359_v56   ;;  %v1570_v23 = vsub.f32 %v2693_v22, %v3904_v62  ;;  %v4233_v14 = vunpack.c.l.bf16 %v3948_v34  ;;  %v1528_v62 = vpop.f32.mrb[45].mxu1 }
 0x29a   : > { %v1568_v54 = vsub.f32 %v1515_v15, %v3906_v52  ;;  %v1557_v33 = vsub.f32 %v3908_v1, %v2664_v5  ;;  %v4234_v8 = vunpack.c.h.bf16 %v3938_v19  ;;  %v1585_v28 = vsub.f32 %v1569_v48, %v2660_v12  ;;  %v2697_v31 = vpop.f32.mrb[46].mxu1 }
 0x29b   : > { %2396 = vst [vmem:[%s4005_s23 + $0x10] sm:$0xff] %v2314_v24   ;;  %2404 = vst [vmem:[%s4005_s23 + $0x50] sm:$0xff] %v2354_v13   ;;  %v1808_v10 = vmul.f32 %v4233_v14, %v1551_v18  ;;  %v1555_v53 = vsub.f32 %v3910_v3, %v4057_v0  ;;  %v4235_v52 = vunpack.c.h.bf16 %v3940_v60  ;;  %v1583_v55 = vsub.f32 %v1567_v63, %v1367_v36  ;;  %v1531_v30 = vpop.f32.mrb[47].mxu1 }
 0x29c   : > { %v1667_v57 = vmul.f32 %v4234_v8, %v1554_v17  ;;  %v1586_v42 = vsub.f32 %v1570_v23, %v2661_v41  ;;  %v1584_v50 = vsub.f32 %v1568_v54, %v1370_v45  ;;  %v4236_v20 = vmov %v4231_v37 }
 0x29d   : > { %v1811_v22 = vmul.f32 %v4235_v52, %v1554_v17  ;;  %v1682_v15 = vmul.f32 %v4236_v20, %v1585_v28  ;;  %v4237_v18 = vmov %v4230_v26  ;;  %v4238_v12 = vunpack.c.h.bf16 %v3946_v61 }
 0x29e   : > { %v1794_v11 = vmul.f32 %v4237_v18, %v1585_v28  ;;  %v4239_v43 = vunpack.c.h.bf16 %v3948_v34  ;;  %v4240_v44 = vmov %v4233_v14  ;;  %v4241_v36 = vmov %v4232_v40 }
 0x29f   : > { %v1665_v7 = vmul.f32 %v4238_v12, %v1552_v4  ;;  %v1680_v17 = vmul.f32 %v4240_v44, %v1583_v55  ;;  %v1792_v41 = vmul.f32 %v4241_v36, %v1583_v55  ;;  %v4242_v45 = vmov %v4235_v52 }
 0x2a0   : > { %v1809_v35 = vmul.f32 %v4239_v43, %v1552_v4  ;;  %v1683_v26 = vmul.f32 %v4242_v45, %v1586_v42  ;;  %v4243_v46 = vmov %v4234_v8  ;;  %v1698_v37 = vsub.f32 %v1666_v51, %v1682_v15 }
 0x2a1   : > { %v1795_v56 = vmul.f32 %v4243_v46, %v1586_v42  ;;  %v1826_v40 = vadd.f32 %v1810_v47, %v1794_v11  ;;  %v4244_v24 = vmov %v4239_v43  ;;  %v4245_v48 = vmov %v4238_v12 }
 0x2a2   : > { %v1681_v13 = vmul.f32 %v4244_v24, %v1584_v50  ;;  %v1793_v4 = vmul.f32 %v4245_v48, %v1584_v50  ;;  %v1696_v63 = vsub.f32 %v1664_v49, %v1680_v17  ;;  %v1824_v23 = vadd.f32 %v1808_v10, %v1792_v41 }
 0x2a3   : > { %v1699_v54 = vsub.f32 %v1667_v57, %v1683_v26  ;;  %v1827_v14 = vadd.f32 %v1811_v22, %v1795_v56  ;;  %v1558_v28 = vsub.f32 %v3912_v38, %v2665_v21  ;;  %v2264_v19 = vunpack.c.h.bf16 %v3990_v32 }
 0x2a4   : > { %v1697_v8 = vsub.f32 %v1665_v7, %v1681_v13  ;;  %v1825_v60 = vadd.f32 %v1809_v35, %v1793_v4  ;;  %v1573_v47 = vsub.f32 %v2696_v25, %v3908_v1  ;;  %v1556_v61 = vsub.f32 %v3918_v39, %v1386_v16 }
 0x2a5   : > { %v2329_v51 = vpack.c.bf16 %v1699_v54, %v1698_v37  ;;  %v2369_v34 = vpack.c.bf16 %v1827_v14, %v1826_v40  ;;  %v4246_v10 = vunpack.c.l.bf16 %v3958_v58  ;;  %v2296_v22 = vunpack.c.h.bf16 %v3992_v27 }
 0x2a6   : > { %v2324_v49 = vpack.c.bf16 %v1697_v8, %v1696_v63  ;;  %v2364_v52 = vpack.c.bf16 %v1825_v60, %v1824_v23  ;;  %v4247_v55 = vunpack.c.l.bf16 %v3960_v9  ;;  %v1668_v50 = vmul.f32 %v2263_v2, %v1555_v53 }
 0x2a7   : > { %v1670_v57 = vmul.f32 %v4246_v10, %v1557_v33  ;;  %2399 = vst [vmem:[%s4005_s23 + $0x28] sm:$0xff] %v2329_v51   ;;  %2407 = vst [vmem:[%s4005_s23 + $0x68] sm:$0xff] %v2369_v34   ;;  %v1589_v20 = vsub.f32 %v1573_v47, %v2664_v5  ;;  %v1571_v1 = vsub.f32 %v1528_v62, %v3910_v3  ;;  %v4249_v3 = vmov %v4246_v10 }
 0x2a8   : > { %v1814_v42 = vmul.f32 %v4247_v55, %v1557_v33  ;;  %2398 = vst [vmem:[%s4005_s23 + $0x20] sm:$0xff] %v2324_v49   ;;  %2406 = vst [vmem:[%s4005_s23 + $0x60] sm:$0xff] %v2364_v52   ;;  %v1812_v25 = vmul.f32 %v2295_v59, %v1555_v53  ;;  %v1671_v15 = vmul.f32 %v2268_v6, %v1558_v28  ;;  %v4248_v12 = vmov %v4247_v55 }
 0x2a9   : > { %v1574_v18 = vsub.f32 %v2697_v31, %v3912_v38  ;;  %v1572_v11 = vsub.f32 %v1531_v30, %v3918_v39  ;;  %v1815_v33 = vmul.f32 %v2300_v29, %v1558_v28  ;;  %v1686_v5 = vmul.f32 %v4248_v12, %v1589_v20 }
 0x2aa   : > { %v1798_v62 = vmul.f32 %v4249_v3, %v1589_v20  ;;  %v1587_v53 = vsub.f32 %v1571_v1, %v4057_v0  ;;  %v1669_v7 = vmul.f32 %v2264_v19, %v1556_v61  ;;  %v1813_v43 = vmul.f32 %v2296_v22, %v1556_v61 }
 0x2ab   : > { %v1590_v35 = vsub.f32 %v1574_v18, %v2665_v21  ;;  %v1588_v44 = vsub.f32 %v1572_v11, %v1386_v16  ;;  %v1702_v38 = vsub.f32 %v1670_v57, %v1686_v5 }
 0x2ac   : > { %v1830_v31 = vadd.f32 %v1814_v42, %v1798_v62  ;;  %v1684_v39 = vmul.f32 %v2295_v59, %v1587_v53  ;;  %v1796_v30 = vmul.f32 %v2263_v2, %v1587_v53 }
 0x2ad   : > { %v1687_v17 = vmul.f32 %v2300_v29, %v1590_v35  ;;  %v1799_v36 = vmul.f32 %v2268_v6, %v1590_v35  ;;  %v1685_v41 = vmul.f32 %v2296_v22, %v1588_v44  ;;  %v1797_v0 = vmul.f32 %v2264_v19, %v1588_v44 }
 0x2ae   : > { %v1700_v21 = vsub.f32 %v1668_v50, %v1684_v39  ;;  %v1828_v27 = vadd.f32 %v1812_v25, %v1796_v30 }
 0x2af   : > { %v1703_v59 = vsub.f32 %v1671_v15, %v1687_v17  ;;  %v1831_v32 = vadd.f32 %v1815_v33, %v1799_v36  ;;  %v1701_v2 = vsub.f32 %v1669_v7, %v1685_v41  ;;  %v1829_v9 = vadd.f32 %v1813_v43, %v1797_v0 }
 0x2b1   : > { %v2339_v58 = vpack.c.bf16 %v1703_v59, %v1702_v38  ;;  %v2379_v6 = vpack.c.bf16 %v1831_v32, %v1830_v31  ;;  %v2334_v29 = vpack.c.bf16 %v1701_v2, %v1700_v21  ;;  %v2374_v16 = vpack.c.bf16 %v1829_v9, %v1828_v27 }
 0x2b3   : > { %2401 = vst [vmem:[%s4005_s23 + $0x38] sm:$0xff] %v2339_v58   ;;  %2409 = vst [vmem:[%s4005_s23 + $0x78] sm:$0xff] %v2379_v6  }
 0x2b4   : > { %2400 = vst [vmem:[%s4005_s23 + $0x30] sm:$0xff] %v2334_v29   ;;  %2408 = vst [vmem:[%s4005_s23 + $0x70] sm:$0xff] %v2374_v16  }
 0x2b5   : > { %2970 = shalt.err (!%p2967_p0)
}
 0x2b6   : > { %s2971_s28 = scalar_lea.hbm %s4137_s24, 2048  ;;  %s2975_s12 = scalar_lea.hbm %s4196_s4, 4096 }
 0x2b7   : > { %p2972_p4 = scmp.ne.s32.totalorder %s4137_s24, %s2971_s28  ;;  %p2976_p12 = scmp.lt.u32.totalorder %s4137_s24, %s4196_s4 }
 0x2b8   : > { %p2977_p1 = scmp.lt.u32.totalorder %s2975_s12, %s2971_s28  ;;  %p2979_p13 = scmp.lt.u32.totalorder %s2971_s28, %s4137_s24 }
 0x2b9   : > { %p2973_p2 = pnand %p2972_p4, %p3243_p10 }
 0x2ba   : > { %p2978_p11 = por %p2977_p1, %p2976_p12 }
 0x2bb   : > { %p2974_p8 = pneg %p2973_p2 }
 0x2bc   : > { %p2980_p6 = por %p2979_p13, %p2978_p11 }
 0x2be   : > { %p2981_p3 = pnand %p2980_p6, %p2974_p8 }
 0x2c0   : > { %2984 = shalt.err (!%p2981_p3)
}
 0x2c1   : > { %s3056_s23 = smov 64   ;;  %s3057_s25 = smov 4  }
 0x2c2   : > { %2712 = dma.vmem_to_hbm [thread:$0]  (%p3243_p10), %s4139_s27, 2048, %s4137_s24, %s1914_s18, %s3056_s23, %s3056_s23, %s3057_s25  }
 0x2c3 PF: > { %s4250_s5 = sld [smem:[#allocation15_spill]]  ;;  %s1944_s7 = sand.u32 1, %s3027_s15  }
 0x2c4   : > { %p4252_p7 = scmp.ge.s32.totalorder %s3047_s20, 2  ;;  %s1945_s29 = scalar_lea.sflag [#allocation4], %s1944_s7 }
 0x2c9   : > { %p4251_p5 = scmp.ne.s32.totalorder %s4250_s5, 0 }
 0x2cb   : > { %p2729_p9 = pnand %p4252_p7, %p4251_p5 }
 0x2cd   : > { %3022 = dma.done.wait (!%p2729_p9), %s1945_s29, 2048  }
 0x2ce   : > { %3024 = vsyncadd (!%p2729_p9), %s1945_s29, 4294965248  ;;  %s22_s20 = sadd.s32 1, %s3047_s20   ;;  %s4253_s15 = smov %s3031_s16 }
 0x2cf   : > { %p19_p0 = scmp.ge.s32.totalorder %s22_s20, 4   ;;  %s4254_s16 = smov %s3035_s17 }
 0x2d0   : > { %s4255_s17 = smov %s3255_s13  ;;  %s4256_s18 = smov %s3043_s19 }
 0x2d1   : > { %s4257_s19 = smov %s4259_s30  ;;  %21 = sbr.rel (!%p19_p0) target bundleno = 8 (0x8), region = 100 }
 0x2d8   :  { %1950 = vsyncpa [#allocation3], 1 }
 0x2d9   :  { %1952 = vsyncpa [#allocation3 + $0x1], 1 }
 0x2da   :  { %1953 = vsyncpa [#allocation6], 1 }
 0x2db   :  { %1954 = vsyncpa [#allocation9], 1 }
 0x2dc   :  { %1955 = vsyncpa [#allocation4], 1 }
 0x2dd   :  { %1957 = vsyncpa [#allocation4 + $0x1], 1 }

</bundles_post_ra>
